<compile_context>
chip_gen: v7x
topology: tpu7x:2x2x1
jax: 0.10.0
libtpu: 0.0.40
codegen_flags: <defaults>
</compile_context>

<pallas_src>
import functools

import jax
import jax.numpy as jnp
from jax import lax
from jax.experimental import pallas as pl
from jax.experimental.pallas import tpu as pltpu


def _round_up(x, m):
    return ((x + m - 1) // m) * m


def _vmem_limit_bytes():
    """Generation-aware scoped-VMEM budget (~half of physical capacity)."""
    cap = 128 * 1024 * 1024
    try:
        info = pltpu.get_tpu_info()
        cap = int(getattr(info, "vmem_capacity_bytes", cap))
    except Exception:
        pass
    return int(min(max(cap // 2, 32 * 1024 * 1024), 100 * 1024 * 1024))


# ----------------------------------------------------------------------------
# Pallas kernel: direct conv on a flattened spatial grid.  Taps are folded
# into the MXU contraction dim; bias + PReLU (+ residual) (+ validity mask)
# are fused in the epilogue.  One (image, Cout-tile) per grid step.
# ----------------------------------------------------------------------------
def _conv_prelu_kernel(*refs, shifts, lg, tl, l_out, out_offset, res_sign,
                       res_offset, use_mask, mask_offset):
    """
    x_ref    : (1, Cin_p, L_in)     bf16   layer input (flattened common grid)
    w_ref    : (Cout_t, k*k*Cin_p)  bf16   taps folded into the contraction
    b_ref    : (Cout_t, 1)          f32    bias
    a_ref    : (1, 1)               f32    PReLU alpha (SMEM)
    res_ref  : (1, Cout_t, L_res)   bf16   optional fused residual
    mask_ref : (1, L_mask)          f32    optional validity mask
    o_ref    : (1, Cout_t, l_out)
    """
    it = iter(refs)
    x_ref = next(it)
    w_ref = next(it)
    b_ref = next(it)
    a_ref = next(it)
    res_ref = next(it) if res_sign != 0 else None
    mask_ref = next(it) if use_mask else None
    o_ref = next(it)

    tco = o_ref.shape[1]
    w = w_ref[...]                       # resident packed weights
    bias = b_ref[...]                    # (Cout_t, 1) -> lane broadcast
    alpha = a_ref[0, 0]

    # Deterministically zero the buffer regions outside the computed window
    # (the consumer's tap halo / pre-shift region).  Both are 128-aligned.
    if out_offset > 0:
        o_ref[0, :, 0:out_offset] = jnp.zeros((tco, out_offset), o_ref.dtype)
    tail = l_out - out_offset - lg
    if tail > 0:
        o_ref[0, :, out_offset + lg:l_out] = jnp.zeros((tco, tail), o_ref.dtype)

    # Static L-chunk loop: one MXU dot per chunk (accumulator stays chunk sized).
    for c0 in range(0, lg, tl):
        cw = min(tl, lg - c0)
        parts = [x_ref[0, :, c0 + s:c0 + s + cw] for s in shifts]
        rhs = parts[0] if len(parts) == 1 else jnp.concatenate(parts, axis=0)
        acc = jnp.dot(w, rhs, preferred_element_type=jnp.float32)
        acc = acc + bias
        y = jnp.where(acc >= 0.0, acc, alpha * acc)             # PReLU (f32)
        if res_ref is not None:
            r = res_ref[0, :, c0 + res_offset:c0 + res_offset + cw]
            r = r.astype(jnp.float32)
            y = y + r if res_sign > 0 else y - r
        if mask_ref is not None:
            m = mask_ref[:, c0 + mask_offset:c0 + mask_offset + cw]
            y = jnp.where(m > 0.0, y, 0.0)
        o_ref[0, :, out_offset + c0:out_offset + c0 + cw] = y.astype(o_ref.dtype)


def _conv_layer(x, w, b, alpha, *, shifts, lg, tl, l_out, out_offset=0,
                residual=None, res_sign=0, res_offset=0, mask=None,
                mask_offset=0, tco=None, out_dtype=jnp.bfloat16):
    """Fused conv + bias + PReLU (+ residual) (+ mask); grid = (Cout tiles, N)."""
    n, cinp, l_in = x.shape
    coutp, kkc = w.shape
    tco = coutp if tco is None else tco
    num_co = coutp // tco

    in_specs = [
        pl.BlockSpec((1, cinp, l_in), lambda co, i: (i, 0, 0)),
        pl.BlockSpec((tco, kkc), lambda co, i: (co, 0)),        # resident weights
        pl.BlockSpec((tco, 1), lambda co, i: (co, 0)),          # resident bias
        pl.BlockSpec(memory_space=pltpu.MemorySpace.SMEM),      # alpha scalar
    ]
    args = [x, w, b, alpha]
    if residual is not None:
        l_res = residual.shape[2]
        in_specs.append(pl.BlockSpec((1, tco, l_res), lambda co, i: (i, co, 0)))
        args.append(residual)
    if mask is not None:
        l_msk = mask.shape[1]
        in_specs.append(pl.BlockSpec((1, l_msk), lambda co, i: (0, 0)))
        args.append(mask)

    kernel = functools.partial(
        _conv_prelu_kernel, shifts=tuple(shifts), lg=lg, tl=tl, l_out=l_out,
        out_offset=out_offset, res_sign=res_sign, res_offset=res_offset,
        use_mask=mask is not None, mask_offset=mask_offset)

    flops = 2 * n * coutp * kkc * lg
    bytes_accessed = sum(int(a.size) * a.dtype.itemsize for a in args)
    bytes_accessed += n * coutp * l_out * jnp.dtype(out_dtype).itemsize

    return pl.pallas_call(
        kernel,
        out_shape=jax.ShapeDtypeStruct((n, coutp, l_out), out_dtype),
        grid=(num_co, n),
        in_specs=in_specs,
        out_specs=pl.BlockSpec((1, tco, l_out), lambda co, i: (i, co, 0)),
        compiler_params=pltpu.CompilerParams(
            dimension_semantics=("parallel", "parallel"),
            vmem_limit_bytes=_vmem_limit_bytes()),
        cost_estimate=pl.CostEstimate(flops=int(flops), transcendentals=0,
                                      bytes_accessed=int(bytes_accessed)),
    )(*args)


# ----------------------------------------------------------------------------
# D_UpprojBlock forward (stride=1, padding=0, norm=None, act=PReLU)
# ----------------------------------------------------------------------------
def d_upproj_block(x, pp, *, k, cin, cout, out_dtype=jnp.float32):
    """x: (N, Cin, H, W) f32 (NCHW).  Returns (N, Cout, H+k-1, W+k-1)."""
    n, _, h, w = x.shape
    cinp = _round_up(cin, 16)
    coutp = _round_up(cout, 16)
    tco = coutp if (coutp <= 128 or coutp % 128 != 0) else 128

    # Common flattened grid shared by all four layers.
    hg, wg = h + 2 * (k - 1), w + 2 * (k - 1)
    ho, wo = h + k - 1, w + k - 1
    lg = _round_up(hg * wg, 128)          # computed window (lane padded)
    tl = min(lg, 1024)                    # per-chunk lane width
    shift0 = (k - 1) * wg + (k - 1)       # flat offset of the (k-1,k-1) corner
    p = _round_up(shift0, 128)            # 128-aligned halo / pre-shift
    lb = lg + p                           # buffer length incl. tap halo

    taps = tuple(ki * wg + kj for ki in range(k) for kj in range(k))
    taps_d2 = tuple(p - shift0 + s for s in taps)   # deconv_2 reads pre-shifted buf

    # One-time input embed at (k-1, k-1) of the common grid (zero border).
    xg = jnp.pad(x, ((0, 0), (0, cinp - cin), (k - 1, k - 1), (k - 1, k - 1)))
    xg = xg.reshape(n, cinp, hg * wg)
    xg = jnp.pad(xg, ((0, 0), (0, 0), (0, lg - hg * wg))).astype(jnp.bfloat16)

    # Validity mask of the embedded (H, W) region (reused shifted by conv_2).
    rows = lax.broadcasted_iota(jnp.int32, (hg, wg), 0)
    cols = lax.broadcasted_iota(jnp.int32, (hg, wg), 1)
    m2d = ((rows >= k - 1) & (rows < k - 1 + h) &
           (cols >= k - 1) & (cols < k - 1 + w)).astype(jnp.float32)
    mask = jnp.zeros((1, lb), jnp.float32).at[0, :hg * wg].set(m2d.reshape(-1))

    # conv_1: 1x1 conv + PReLU, masked to the embedded valid region.
    x1 = _conv_layer(xg, pp["w1"], pp["b1"], pp["a1"],
                     shifts=(0,), lg=lg, tl=tl, l_out=lb,
                     mask=mask, mask_offset=0, tco=tco)

    # deconv_1: ConvT(k, s=1, p=0) + PReLU == conv with (k-1) zero padding.
    h0 = _conv_layer(x1, pp["wt1"], pp["bd1"], pp["a2"],
                     shifts=taps, lg=lg, tl=tl, l_out=lb, tco=tco)

    # conv_2: valid kxk conv + PReLU with fused "- x1"; output is written
    # pre-shifted by `p` lanes and masked so it is exactly deconv_2's
    # zero-padded input (no inter-layer re-embedding needed).
    diff = _conv_layer(h0, pp["w2"], pp["b2"], pp["a3"],
                       shifts=taps, lg=lg, tl=tl, l_out=lb, out_offset=p,
                       residual=x1, res_sign=-1, res_offset=shift0,
                       mask=mask, mask_offset=shift0, tco=tco)

    # deconv_2 on (L0 - x1) + PReLU with fused "+ H0".
    out = _conv_layer(diff, pp["wt2"], pp["bd2"], pp["a4"],
                      shifts=taps_d2, lg=lg, tl=tl, l_out=lg,
                      residual=h0, res_sign=1, res_offset=0,
                      tco=tco, out_dtype=out_dtype)

    out = out[:, :cout, :hg * wg].reshape(n, cout, hg, wg)
    return out[:, :, :ho, :wo]


# ----------------------------------------------------------------------------
# Parameters: PyTorch layouts at init, packed once for the kernels.
# ----------------------------------------------------------------------------
def init_params(key, in_ch, out_ch, k):
    ks = jax.random.split(key, 8)
    s = 0.1
    return {
        "w1":  s * jax.random.normal(ks[0], (out_ch, in_ch, 1, 1), jnp.float32),
        "b1":  s * jax.random.normal(ks[1], (out_ch,), jnp.float32),
        "wt1": s * jax.random.normal(ks[2], (out_ch, out_ch, k, k), jnp.float32),
        "bd1": s * jax.random.normal(ks[3], (out_ch,), jnp.float32),
        "w2":  s * jax.random.normal(ks[4], (out_ch, out_ch, k, k), jnp.float32),
        "b2":  s * jax.random.normal(ks[5], (out_ch,), jnp.float32),
        "wt2": s * jax.random.normal(ks[6], (out_ch, out_ch, k, k), jnp.float32),
        "bd2": s * jax.random.normal(ks[7], (out_ch,), jnp.float32),
        # PReLU(num_parameters=1, init=0.2) for each of the four sub-blocks.
        "a1": 0.2, "a2": 0.2, "a3": 0.2, "a4": 0.2,
    }


def prepare_params(p):
    """Hoisted weight prep: deconv flip/swap, channel pad to the bf16 sublane
    tile (16), taps folded into the contraction dim -> (Cout_p, k*k*Cin_p)."""

    def pack_conv(w):                    # (Cout, Cin, kh, kw), PyTorch Conv2d
        co, ci, kh, kw = w.shape
        cip, cop = _round_up(ci, 16), _round_up(co, 16)
        wt = jnp.transpose(w, (0, 2, 3, 1))                   # (co, kh, kw, ci)
        wt = jnp.pad(wt, ((0, cop - co), (0, 0), (0, 0), (0, cip - ci)))
        return wt.reshape(cop, kh * kw * cip).astype(jnp.bfloat16)

    def pack_deconv(wt):                 # (Cin, Cout, k, k), ConvTranspose2d
        # stride=1, pad=0: ConvT == conv with flipped kernel & swapped channels.
        return pack_conv(jnp.transpose(jnp.flip(wt, axis=(2, 3)), (1, 0, 2, 3)))

    def pack_bias(b):
        cop = _round_up(b.shape[0], 16)
        return jnp.zeros((cop, 1), jnp.float32).at[:b.shape[0], 0].set(b)

    def pack_alpha(a):
        return jnp.full((1, 1), a, jnp.float32)

    return {
        "w1": pack_conv(p["w1"]), "b1": pack_bias(p["b1"]), "a1": pack_alpha(p["a1"]),
        "wt1": pack_deconv(p["wt1"]), "bd1": pack_bias(p["bd1"]), "a2": pack_alpha(p["a2"]),
        "w2": pack_conv(p["w2"]), "b2": pack_bias(p["b2"]), "a3": pack_alpha(p["a3"]),
        "wt2": pack_deconv(p["wt2"]), "bd2": pack_bias(p["bd2"]), "a4": pack_alpha(p["a4"]),
    }


# ----------------------------------------------------------------------------
# Pure-JAX reference (f32) for a correctness check
# ----------------------------------------------------------------------------
def _reference_forward(x, p, k):
    def prelu(v, a):
        return jnp.where(v >= 0, v, a * v)

    def conv(v, w, b, pad):
        y = lax.conv_general_dilated(
            v, w, window_strides=(1, 1),
            padding=[(pad, pad), (pad, pad)],
            dimension_numbers=("NCHW", "OIHW", "NCHW"))
        return y + b[None, :, None, None]

    def tconv_w(wt):   # ConvTranspose2d(stride=1, pad=0) equivalent conv weight
        return jnp.transpose(jnp.flip(wt, axis=(2, 3)), (1, 0, 2, 3))

    x1 = prelu(conv(x, p["w1"], p["b1"], 0), p["a1"])
    h0 = prelu(conv(x1, tconv_w(p["wt1"]), p["bd1"], k - 1), p["a2"])
    l0 = prelu(conv(h0, p["w2"], p["b2"], 0), p["a3"])
    h1 = prelu(conv(l0 - x1, tconv_w(p["wt2"]), p["bd2"], k - 1), p["a4"])
    return h1 + h0


if __name__ == "__main__":
    key = jax.random.PRNGKey(0)
    k_x, k_p = jax.random.split(key)

    N, Cin, Cout, K, H, W = 2, 4, 8, 3, 16, 16
    x = jax.random.normal(k_x, (N, Cin, H, W), jnp.float32)     # NCHW, like PyTorch
    raw = init_params(k_p, Cin, Cout, K)
    params = prepare_params(raw)                                 # hoisted weight prep

    fwd = jax.jit(functools.partial(d_upproj_block, k=K, cin=Cin, cout=Cout))
    out = jax.block_until_ready(fwd(x, params))

    expected_shape = (N, Cout, H + K - 1, W + K - 1)
    assert out.shape == expected_shape, (out.shape, expected_shape)
    assert bool(jnp.all(jnp.isfinite(out)))

    ref = _reference_forward(x, raw, K)
    max_err = float(jnp.max(jnp.abs(out - ref)))
    assert bool(jnp.allclose(out, ref, atol=5e-2, rtol=5e-2)), max_err

    print("KERNEL_OK")
</pallas_src>

<mosaic_0001>
module attributes {stable_mosaic.version = 11 : i64} {
  func.func @_conv_prelu_kernel(%arg0: i32, %arg1: i32, %arg2: memref<1x16x640xbf16, #tpu.memory_space<vmem>>, %arg3: memref<16x144xbf16, #tpu.memory_space<vmem>>, %arg4: memref<16x1xf32, #tpu.memory_space<vmem>>, %arg5: memref<1x1xf32, #tpu.memory_space<smem>>, %arg6: memref<1x16x640xbf16, #tpu.memory_space<vmem>>, %arg7: memref<1x640xf32, #tpu.memory_space<vmem>>, %arg8: memref<1x16x640xbf16, #tpu.memory_space<vmem>>) attributes {dimension_semantics = [#tpu.dimension_semantics<parallel>, #tpu.dimension_semantics<parallel>], iteration_bounds = array<i64: 1, 2>, scalar_prefetch = 0 : i64, scratch_operands = 0 : i64, tpu.core_type = #tpu.core_type<tc>, window_params = [{transform_indices = @transform_0, window_bounds = array<i64: 1, 16, 640>}, {transform_indices = @transform_1, window_bounds = array<i64: 16, 144>}, {transform_indices = @transform_2, window_bounds = array<i64: 16, 1>}, {transform_indices = @transform_3, window_bounds = array<i64: 1, 1>}, {transform_indices = @transform_4, window_bounds = array<i64: 1, 16, 640>}, {pipeline_mode = #tpu.pipeline_mode<synchronous>, transform_indices = @transform_5, window_bounds = array<i64: 1, 640>}, {transform_indices = @transform_6, window_bounds = array<i64: 1, 16, 640>}]} {
    %c0 = arith.constant 0 : index
    %c0_0 = arith.constant 0 : index
    %0 = vector.load %arg3[%c0, %c0_0] : memref<16x144xbf16, #tpu.memory_space<vmem>>, vector<16x144xbf16>
    %c0_1 = arith.constant 0 : index
    %c0_2 = arith.constant 0 : index
    %1 = vector.load %arg4[%c0_1, %c0_2] : memref<16x1xf32, #tpu.memory_space<vmem>>, vector<16x1xf32>
    %c0_3 = arith.constant 0 : index
    %c0_4 = arith.constant 0 : index
    %2 = memref.load %arg5[%c0_3, %c0_4] : memref<1x1xf32, #tpu.memory_space<smem>>
    %cst = arith.constant 0.000000e+00 : bf16
    %3 = vector.broadcast %cst : bf16 to vector<16x128xbf16>
    %c0_5 = arith.constant 0 : index
    %c0_6 = arith.constant 0 : index
    %c0_7 = arith.constant 0 : index
    %4 = vector.load %arg8[%c0_5, %c0_6, %c0_7] : memref<1x16x640xbf16, #tpu.memory_space<vmem>>, vector<1x16x128xbf16>
    %5 = vector.shape_cast %4 : vector<1x16x128xbf16> to vector<16x128xbf16>
    %6 = vector.shape_cast %3 : vector<16x128xbf16> to vector<1x16x128xbf16>
    tpu.vector_store %arg8[%c0_5, %c0_6, %c0_7], %6 {strides = array<i32>} : memref<1x16x640xbf16, #tpu.memory_space<vmem>>, vector<1x16x128xbf16>,
    %c0_8 = arith.constant 0 : index
    %c0_9 = arith.constant 0 : index
    %c0_10 = arith.constant 0 : index
    %7 = vector.load %arg2[%c0_8, %c0_9, %c0_10] : memref<1x16x640xbf16, #tpu.memory_space<vmem>>, vector<1x16x512xbf16>
    %8 = vector.shape_cast %7 : vector<1x16x512xbf16> to vector<16x512xbf16>
    %c0_11 = arith.constant 0 : index
    %c0_12 = arith.constant 0 : index
    %c1 = arith.constant 1 : index
    %9 = vector.load %arg2[%c0_11, %c0_12, %c1] : memref<1x16x640xbf16, #tpu.memory_space<vmem>>, vector<1x16x512xbf16>
    %10 = vector.shape_cast %9 : vector<1x16x512xbf16> to vector<16x512xbf16>
    %c0_13 = arith.constant 0 : index
    %c0_14 = arith.constant 0 : index
    %c2 = arith.constant 2 : index
    %11 = vector.load %arg2[%c0_13, %c0_14, %c2] : memref<1x16x640xbf16, #tpu.memory_space<vmem>>, vector<1x16x512xbf16>
    %12 = vector.shape_cast %11 : vector<1x16x512xbf16> to vector<16x512xbf16>
    %c0_15 = arith.constant 0 : index
    %c0_16 = arith.constant 0 : index
    %c20 = arith.constant 20 : index
    %13 = vector.load %arg2[%c0_15, %c0_16, %c20] : memref<1x16x640xbf16, #tpu.memory_space<vmem>>, vector<1x16x512xbf16>
    %14 = vector.shape_cast %13 : vector<1x16x512xbf16> to vector<16x512xbf16>
    %c0_17 = arith.constant 0 : index
    %c0_18 = arith.constant 0 : index
    %c21 = arith.constant 21 : index
    %15 = vector.load %arg2[%c0_17, %c0_18, %c21] : memref<1x16x640xbf16, #tpu.memory_space<vmem>>, vector<1x16x512xbf16>
    %16 = vector.shape_cast %15 : vector<1x16x512xbf16> to vector<16x512xbf16>
    %c0_19 = arith.constant 0 : index
    %c0_20 = arith.constant 0 : index
    %c22 = arith.constant 22 : index
    %17 = vector.load %arg2[%c0_19, %c0_20, %c22] : memref<1x16x640xbf16, #tpu.memory_space<vmem>>, vector<1x16x512xbf16>
    %18 = vector.shape_cast %17 : vector<1x16x512xbf16> to vector<16x512xbf16>
    %c0_21 = arith.constant 0 : index
    %c0_22 = arith.constant 0 : index
    %c40 = arith.constant 40 : index
    %19 = vector.load %arg2[%c0_21, %c0_22, %c40] : memref<1x16x640xbf16, #tpu.memory_space<vmem>>, vector<1x16x512xbf16>
    %20 = vector.shape_cast %19 : vector<1x16x512xbf16> to vector<16x512xbf16>
    %c0_23 = arith.constant 0 : index
    %c0_24 = arith.constant 0 : index
    %c41 = arith.constant 41 : index
    %21 = vector.load %arg2[%c0_23, %c0_24, %c41] : memref<1x16x640xbf16, #tpu.memory_space<vmem>>, vector<1x16x512xbf16>
    %22 = vector.shape_cast %21 : vector<1x16x512xbf16> to vector<16x512xbf16>
    %c0_25 = arith.constant 0 : index
    %c0_26 = arith.constant 0 : index
    %c42 = arith.constant 42 : index
    %23 = vector.load %arg2[%c0_25, %c0_26, %c42] : memref<1x16x640xbf16, #tpu.memory_space<vmem>>, vector<1x16x512xbf16>
    %24 = vector.shape_cast %23 : vector<1x16x512xbf16> to vector<16x512xbf16>
    %25 = tpu.concatenate %8, %10, %12, %14, %16, %18, %20, %22, %24 in 0 : vector<16x512xbf16>, vector<16x512xbf16>, vector<16x512xbf16>, vector<16x512xbf16>, vector<16x512xbf16>, vector<16x512xbf16>, vector<16x512xbf16>, vector<16x512xbf16>, vector<16x512xbf16> -> vector<144x512xbf16>
    %cst_27 = arith.constant dense<0.000000e+00> : vector<16x512xf32>
    %26 = tpu.matmul %0, %25, %cst_27 {dimension_numbers = #tpu.dot_dimension_numbers<[1], [0], [0], [1], [0, 0, 1, 1], [], []>} : vector<16x144xbf16>, vector<144x512xbf16>, vector<16x512xf32> -> vector<16x512xf32>
    %27 = vector.broadcast %1 : vector<16x1xf32> to vector<16x512xf32>
    %28 = arith.addf %26, %27 : vector<16x512xf32>
    %cst_28 = arith.constant 0.000000e+00 : f32
    %29 = vector.broadcast %cst_28 : f32 to vector<16x512xf32>
    %30 = arith.cmpf oge, %28, %29 : vector<16x512xf32>
    %31 = vector.broadcast %2 : f32 to vector<16x512xf32>
    %32 = arith.mulf %31, %28 : vector<16x512xf32>
    %33 = arith.select %30, %28, %32 : vector<16x512xi1>, vector<16x512xf32>
    %c0_29 = arith.constant 0 : index
    %c0_30 = arith.constant 0 : index
    %c42_31 = arith.constant 42 : index
    %34 = vector.load %arg6[%c0_29, %c0_30, %c42_31] : memref<1x16x640xbf16, #tpu.memory_space<vmem>>, vector<1x16x512xbf16>
    %35 = vector.shape_cast %34 : vector<1x16x512xbf16> to vector<16x512xbf16>
    %36 = arith.extf %35 : vector<16x512xbf16> to vector<16x512xf32>
    %37 = arith.subf %33, %36 : vector<16x512xf32>
    %c0_32 = arith.constant 0 : index
    %c42_33 = arith.constant 42 : index
    %38 = vector.load %arg7[%c0_32, %c42_33] : memref<1x640xf32, #tpu.memory_space<vmem>>, vector<1x512xf32>
    %cst_34 = arith.constant 0.000000e+00 : f32
    %39 = vector.broadcast %cst_34 : f32 to vector<1x512xf32>
    %40 = arith.cmpf ogt, %38, %39 : vector<1x512xf32>
    %cst_35 = arith.constant 0.000000e+00 : f32
    %41 = vector.shape_cast %40 : vector<1x512xi1> to vector<1x512xi1>
    %42 = vector.broadcast %41 : vector<1x512xi1> to vector<16x512xi1>
    %43 = vector.broadcast %cst_35 : f32 to vector<16x512xf32>
    %44 = arith.select %42, %37, %43 : vector<16x512xi1>, vector<16x512xf32>
    %45 = arith.truncf %44 : vector<16x512xf32> to vector<16x512xbf16>
    %c0_36 = arith.constant 0 : index
    %c0_37 = arith.constant 0 : index
    %c128 = arith.constant 128 : index
    %46 = vector.load %arg8[%c0_36, %c0_37, %c128] : memref<1x16x640xbf16, #tpu.memory_space<vmem>>, vector<1x16x512xbf16>
    %47 = vector.shape_cast %46 : vector<1x16x512xbf16> to vector<16x512xbf16>
    %48 = vector.shape_cast %45 : vector<16x512xbf16> to vector<1x16x512xbf16>
    tpu.vector_store %arg8[%c0_36, %c0_37, %c128], %48 {strides = array<i32>} : memref<1x16x640xbf16, #tpu.memory_space<vmem>>, vector<1x16x512xbf16>,
    return
  }
  func.func @transform_0(%arg0: i32, %arg1: i32) -> (i32, i32, i32) {
    %c0_i32 = arith.constant 0 : i32
    %c0_i32_0 = arith.constant 0 : i32
    %c0_i32_1 = arith.constant 0 : i32
    return %arg1, %c0_i32, %c0_i32_0 : i32, i32, i32
  }
  func.func @transform_1(%arg0: i32, %arg1: i32) -> (i32, i32) {
    %c0_i32 = arith.constant 0 : i32
    %c0_i32_0 = arith.constant 0 : i32
    return %arg0, %c0_i32 : i32, i32
  }
  func.func @transform_2(%arg0: i32, %arg1: i32) -> (i32, i32) {
    %c0_i32 = arith.constant 0 : i32
    %c0_i32_0 = arith.constant 0 : i32
    return %arg0, %c0_i32 : i32, i32
  }
  func.func @transform_3(%arg0: i32, %arg1: i32) -> (i32, i32) {
    %c0_i32 = arith.constant 0 : i32
    %c0_i32_0 = arith.constant 0 : i32
    %c0_i32_1 = arith.constant 0 : i32
    return %c0_i32, %c0_i32_0 : i32, i32
  }
  func.func @transform_4(%arg0: i32, %arg1: i32) -> (i32, i32, i32) {
    %c0_i32 = arith.constant 0 : i32
    %c0_i32_0 = arith.constant 0 : i32
    return %arg1, %arg0, %c0_i32 : i32, i32, i32
  }
  func.func @transform_5(%arg0: i32, %arg1: i32) -> (i32, i32) {
    %c0_i32 = arith.constant 0 : i32
    %c0_i32_0 = arith.constant 0 : i32
    %c0_i32_1 = arith.constant 0 : i32
    return %c0_i32, %c0_i32_0 : i32, i32
  }
  func.func @transform_6(%arg0: i32, %arg1: i32) -> (i32, i32, i32) {
    %c0_i32 = arith.constant 0 : i32
    %c0_i32_0 = arith.constant 0 : i32
    return %arg1, %arg0, %c0_i32 : i32, i32, i32
  }
}

module attributes {stable_mosaic.version = 11 : i64} {
  func.func @_conv_prelu_kernel(%arg0: i32, %arg1: i32, %arg2: memref<1x16x512xbf16, #tpu.memory_space<vmem>>, %arg3: memref<16x16xbf16, #tpu.memory_space<vmem>>, %arg4: memref<16x1xf32, #tpu.memory_space<vmem>>, %arg5: memref<1x1xf32, #tpu.memory_space<smem>>, %arg6: memref<1x640xf32, #tpu.memory_space<vmem>>, %arg7: memref<1x16x640xbf16, #tpu.memory_space<vmem>>) attributes {dimension_semantics = [#tpu.dimension_semantics<parallel>, #tpu.dimension_semantics<parallel>], iteration_bounds = array<i64: 1, 2>, scalar_prefetch = 0 : i64, scratch_operands = 0 : i64, tpu.core_type = #tpu.core_type<tc>, window_params = [{transform_indices = @transform_0, window_bounds = array<i64: 1, 16, 512>}, {transform_indices = @transform_1, window_bounds = array<i64: 16, 16>}, {transform_indices = @transform_2, window_bounds = array<i64: 16, 1>}, {transform_indices = @transform_3, window_bounds = array<i64: 1, 1>}, {pipeline_mode = #tpu.pipeline_mode<synchronous>, transform_indices = @transform_4, window_bounds = array<i64: 1, 640>}, {transform_indices = @transform_5, window_bounds = array<i64: 1, 16, 640>}]} {
    %c0 = arith.constant 0 : index
    %c0_0 = arith.constant 0 : index
    %0 = vector.load %arg3[%c0, %c0_0] : memref<16x16xbf16, #tpu.memory_space<vmem>>, vector<16x16xbf16>
    %c0_1 = arith.constant 0 : index
    %c0_2 = arith.constant 0 : index
    %1 = vector.load %arg4[%c0_1, %c0_2] : memref<16x1xf32, #tpu.memory_space<vmem>>, vector<16x1xf32>
    %c0_3 = arith.constant 0 : index
    %c0_4 = arith.constant 0 : index
    %2 = memref.load %arg5[%c0_3, %c0_4] : memref<1x1xf32, #tpu.memory_space<smem>>
    %cst = arith.constant 0.000000e+00 : bf16
    %3 = vector.broadcast %cst : bf16 to vector<16x128xbf16>
    %c0_5 = arith.constant 0 : index
    %c0_6 = arith.constant 0 : index
    %c512 = arith.constant 512 : index
    %4 = vector.load %arg7[%c0_5, %c0_6, %c512] : memref<1x16x640xbf16, #tpu.memory_space<vmem>>, vector<1x16x128xbf16>
    %5 = vector.shape_cast %4 : vector<1x16x128xbf16> to vector<16x128xbf16>
    %6 = vector.shape_cast %3 : vector<16x128xbf16> to vector<1x16x128xbf16>
    tpu.vector_store %arg7[%c0_5, %c0_6, %c512], %6 {strides = array<i32>} : memref<1x16x640xbf16, #tpu.memory_space<vmem>>, vector<1x16x128xbf16>,
    %c0_7 = arith.constant 0 : index
    %c0_8 = arith.constant 0 : index
    %c0_9 = arith.constant 0 : index
    %7 = vector.load %arg2[%c0_7, %c0_8, %c0_9] : memref<1x16x512xbf16, #tpu.memory_space<vmem>>, vector<1x16x512xbf16>
    %8 = vector.shape_cast %7 : vector<1x16x512xbf16> to vector<16x512xbf16>
    %cst_10 = arith.constant dense<0.000000e+00> : vector<16x512xf32>
    %9 = tpu.matmul %0, %8, %cst_10 {dimension_numbers = #tpu.dot_dimension_numbers<[1], [0], [0], [1], [0, 0, 1, 1], [], []>} : vector<16x16xbf16>, vector<16x512xbf16>, vector<16x512xf32> -> vector<16x512xf32>
    %10 = vector.broadcast %1 : vector<16x1xf32> to vector<16x512xf32>
    %11 = arith.addf %9, %10 : vector<16x512xf32>
    %cst_11 = arith.constant 0.000000e+00 : f32
    %12 = vector.broadcast %cst_11 : f32 to vector<16x512xf32>
    %13 = arith.cmpf oge, %11, %12 : vector<16x512xf32>
    %14 = vector.broadcast %2 : f32 to vector<16x512xf32>
    %15 = arith.mulf %14, %11 : vector<16x512xf32>
    %16 = arith.select %13, %11, %15 : vector<16x512xi1>, vector<16x512xf32>
    %c0_12 = arith.constant 0 : index
    %c0_13 = arith.constant 0 : index
    %17 = vector.load %arg6[%c0_12, %c0_13] : memref<1x640xf32, #tpu.memory_space<vmem>>, vector<1x512xf32>
    %cst_14 = arith.constant 0.000000e+00 : f32
    %18 = vector.broadcast %cst_14 : f32 to vector<1x512xf32>
    %19 = arith.cmpf ogt, %17, %18 : vector<1x512xf32>
    %cst_15 = arith.constant 0.000000e+00 : f32
    %20 = vector.shape_cast %19 : vector<1x512xi1> to vector<1x512xi1>
    %21 = vector.broadcast %20 : vector<1x512xi1> to vector<16x512xi1>
    %22 = vector.broadcast %cst_15 : f32 to vector<16x512xf32>
    %23 = arith.select %21, %16, %22 : vector<16x512xi1>, vector<16x512xf32>
    %24 = arith.truncf %23 : vector<16x512xf32> to vector<16x512xbf16>
    %c0_16 = arith.constant 0 : index
    %c0_17 = arith.constant 0 : index
    %c0_18 = arith.constant 0 : index
    %25 = vector.load %arg7[%c0_16, %c0_17, %c0_18] : memref<1x16x640xbf16, #tpu.memory_space<vmem>>, vector<1x16x512xbf16>
    %26 = vector.shape_cast %25 : vector<1x16x512xbf16> to vector<16x512xbf16>
    %27 = vector.shape_cast %24 : vector<16x512xbf16> to vector<1x16x512xbf16>
    tpu.vector_store %arg7[%c0_16, %c0_17, %c0_18], %27 {strides = array<i32>} : memref<1x16x640xbf16, #tpu.memory_space<vmem>>, vector<1x16x512xbf16>,
    return
  }
  func.func @transform_0(%arg0: i32, %arg1: i32) -> (i32, i32, i32) {
    %c0_i32 = arith.constant 0 : i32
    %c0_i32_0 = arith.constant 0 : i32
    %c0_i32_1 = arith.constant 0 : i32
    return %arg1, %c0_i32, %c0_i32_0 : i32, i32, i32
  }
  func.func @transform_1(%arg0: i32, %arg1: i32) -> (i32, i32) {
    %c0_i32 = arith.constant 0 : i32
    %c0_i32_0 = arith.constant 0 : i32
    return %arg0, %c0_i32 : i32, i32
  }
  func.func @transform_2(%arg0: i32, %arg1: i32) -> (i32, i32) {
    %c0_i32 = arith.constant 0 : i32
    %c0_i32_0 = arith.constant 0 : i32
    return %arg0, %c0_i32 : i32, i32
  }
  func.func @transform_3(%arg0: i32, %arg1: i32) -> (i32, i32) {
    %c0_i32 = arith.constant 0 : i32
    %c0_i32_0 = arith.constant 0 : i32
    %c0_i32_1 = arith.constant 0 : i32
    return %c0_i32, %c0_i32_0 : i32, i32
  }
  func.func @transform_4(%arg0: i32, %arg1: i32) -> (i32, i32) {
    %c0_i32 = arith.constant 0 : i32
    %c0_i32_0 = arith.constant 0 : i32
    %c0_i32_1 = arith.constant 0 : i32
    return %c0_i32, %c0_i32_0 : i32, i32
  }
  func.func @transform_5(%arg0: i32, %arg1: i32) -> (i32, i32, i32) {
    %c0_i32 = arith.constant 0 : i32
    %c0_i32_0 = arith.constant 0 : i32
    return %arg1, %arg0, %c0_i32 : i32, i32, i32
  }
}

module attributes {stable_mosaic.version = 11 : i64} {
  func.func @_conv_prelu_kernel(%arg0: i32, %arg1: i32, %arg2: memref<1x16x640xbf16, #tpu.memory_space<vmem>>, %arg3: memref<16x144xbf16, #tpu.memory_space<vmem>>, %arg4: memref<16x1xf32, #tpu.memory_space<vmem>>, %arg5: memref<1x1xf32, #tpu.memory_space<smem>>, %arg6: memref<1x16x640xbf16, #tpu.memory_space<vmem>>) attributes {dimension_semantics = [#tpu.dimension_semantics<parallel>, #tpu.dimension_semantics<parallel>], iteration_bounds = array<i64: 1, 2>, scalar_prefetch = 0 : i64, scratch_operands = 0 : i64, tpu.core_type = #tpu.core_type<tc>, window_params = [{transform_indices = @transform_0, window_bounds = array<i64: 1, 16, 640>}, {transform_indices = @transform_1, window_bounds = array<i64: 16, 144>}, {transform_indices = @transform_2, window_bounds = array<i64: 16, 1>}, {transform_indices = @transform_3, window_bounds = array<i64: 1, 1>}, {transform_indices = @transform_4, window_bounds = array<i64: 1, 16, 640>}]} {
    %c0 = arith.constant 0 : index
    %c0_0 = arith.constant 0 : index
    %0 = vector.load %arg3[%c0, %c0_0] : memref<16x144xbf16, #tpu.memory_space<vmem>>, vector<16x144xbf16>
    %c0_1 = arith.constant 0 : index
    %c0_2 = arith.constant 0 : index
    %1 = vector.load %arg4[%c0_1, %c0_2] : memref<16x1xf32, #tpu.memory_space<vmem>>, vector<16x1xf32>
    %c0_3 = arith.constant 0 : index
    %c0_4 = arith.constant 0 : index
    %2 = memref.load %arg5[%c0_3, %c0_4] : memref<1x1xf32, #tpu.memory_space<smem>>
    %cst = arith.constant 0.000000e+00 : bf16
    %3 = vector.broadcast %cst : bf16 to vector<16x128xbf16>
    %c0_5 = arith.constant 0 : index
    %c0_6 = arith.constant 0 : index
    %c512 = arith.constant 512 : index
    %4 = vector.load %arg6[%c0_5, %c0_6, %c512] : memref<1x16x640xbf16, #tpu.memory_space<vmem>>, vector<1x16x128xbf16>
    %5 = vector.shape_cast %4 : vector<1x16x128xbf16> to vector<16x128xbf16>
    %6 = vector.shape_cast %3 : vector<16x128xbf16> to vector<1x16x128xbf16>
    tpu.vector_store %arg6[%c0_5, %c0_6, %c512], %6 {strides = array<i32>} : memref<1x16x640xbf16, #tpu.memory_space<vmem>>, vector<1x16x128xbf16>,
    %c0_7 = arith.constant 0 : index
    %c0_8 = arith.constant 0 : index
    %c0_9 = arith.constant 0 : index
    %7 = vector.load %arg2[%c0_7, %c0_8, %c0_9] : memref<1x16x640xbf16, #tpu.memory_space<vmem>>, vector<1x16x512xbf16>
    %8 = vector.shape_cast %7 : vector<1x16x512xbf16> to vector<16x512xbf16>
    %c0_10 = arith.constant 0 : index
    %c0_11 = arith.constant 0 : index
    %c1 = arith.constant 1 : index
    %9 = vector.load %arg2[%c0_10, %c0_11, %c1] : memref<1x16x640xbf16, #tpu.memory_space<vmem>>, vector<1x16x512xbf16>
    %10 = vector.shape_cast %9 : vector<1x16x512xbf16> to vector<16x512xbf16>
    %c0_12 = arith.constant 0 : index
    %c0_13 = arith.constant 0 : index
    %c2 = arith.constant 2 : index
    %11 = vector.load %arg2[%c0_12, %c0_13, %c2] : memref<1x16x640xbf16, #tpu.memory_space<vmem>>, vector<1x16x512xbf16>
    %12 = vector.shape_cast %11 : vector<1x16x512xbf16> to vector<16x512xbf16>
    %c0_14 = arith.constant 0 : index
    %c0_15 = arith.constant 0 : index
    %c20 = arith.constant 20 : index
    %13 = vector.load %arg2[%c0_14, %c0_15, %c20] : memref<1x16x640xbf16, #tpu.memory_space<vmem>>, vector<1x16x512xbf16>
    %14 = vector.shape_cast %13 : vector<1x16x512xbf16> to vector<16x512xbf16>
    %c0_16 = arith.constant 0 : index
    %c0_17 = arith.constant 0 : index
    %c21 = arith.constant 21 : index
    %15 = vector.load %arg2[%c0_16, %c0_17, %c21] : memref<1x16x640xbf16, #tpu.memory_space<vmem>>, vector<1x16x512xbf16>
    %16 = vector.shape_cast %15 : vector<1x16x512xbf16> to vector<16x512xbf16>
    %c0_18 = arith.constant 0 : index
    %c0_19 = arith.constant 0 : index
    %c22 = arith.constant 22 : index
    %17 = vector.load %arg2[%c0_18, %c0_19, %c22] : memref<1x16x640xbf16, #tpu.memory_space<vmem>>, vector<1x16x512xbf16>
    %18 = vector.shape_cast %17 : vector<1x16x512xbf16> to vector<16x512xbf16>
    %c0_20 = arith.constant 0 : index
    %c0_21 = arith.constant 0 : index
    %c40 = arith.constant 40 : index
    %19 = vector.load %arg2[%c0_20, %c0_21, %c40] : memref<1x16x640xbf16, #tpu.memory_space<vmem>>, vector<1x16x512xbf16>
    %20 = vector.shape_cast %19 : vector<1x16x512xbf16> to vector<16x512xbf16>
    %c0_22 = arith.constant 0 : index
    %c0_23 = arith.constant 0 : index
    %c41 = arith.constant 41 : index
    %21 = vector.load %arg2[%c0_22, %c0_23, %c41] : memref<1x16x640xbf16, #tpu.memory_space<vmem>>, vector<1x16x512xbf16>
    %22 = vector.shape_cast %21 : vector<1x16x512xbf16> to vector<16x512xbf16>
    %c0_24 = arith.constant 0 : index
    %c0_25 = arith.constant 0 : index
    %c42 = arith.constant 42 : index
    %23 = vector.load %arg2[%c0_24, %c0_25, %c42] : memref<1x16x640xbf16, #tpu.memory_space<vmem>>, vector<1x16x512xbf16>
    %24 = vector.shape_cast %23 : vector<1x16x512xbf16> to vector<16x512xbf16>
    %25 = tpu.concatenate %8, %10, %12, %14, %16, %18, %20, %22, %24 in 0 : vector<16x512xbf16>, vector<16x512xbf16>, vector<16x512xbf16>, vector<16x512xbf16>, vector<16x512xbf16>, vector<16x512xbf16>, vector<16x512xbf16>, vector<16x512xbf16>, vector<16x512xbf16> -> vector<144x512xbf16>
    %cst_26 = arith.constant dense<0.000000e+00> : vector<16x512xf32>
    %26 = tpu.matmul %0, %25, %cst_26 {dimension_numbers = #tpu.dot_dimension_numbers<[1], [0], [0], [1], [0, 0, 1, 1], [], []>} : vector<16x144xbf16>, vector<144x512xbf16>, vector<16x512xf32> -> vector<16x512xf32>
    %27 = vector.broadcast %1 : vector<16x1xf32> to vector<16x512xf32>
    %28 = arith.addf %26, %27 : vector<16x512xf32>
    %cst_27 = arith.constant 0.000000e+00 : f32
    %29 = vector.broadcast %cst_27 : f32 to vector<16x512xf32>
    %30 = arith.cmpf oge, %28, %29 : vector<16x512xf32>
    %31 = vector.broadcast %2 : f32 to vector<16x512xf32>
    %32 = arith.mulf %31, %28 : vector<16x512xf32>
    %33 = arith.select %30, %28, %32 : vector<16x512xi1>, vector<16x512xf32>
    %34 = arith.truncf %33 : vector<16x512xf32> to vector<16x512xbf16>
    %c0_28 = arith.constant 0 : index
    %c0_29 = arith.constant 0 : index
    %c0_30 = arith.constant 0 : index
    %35 = vector.load %arg6[%c0_28, %c0_29, %c0_30] : memref<1x16x640xbf16, #tpu.memory_space<vmem>>, vector<1x16x512xbf16>
    %36 = vector.shape_cast %35 : vector<1x16x512xbf16> to vector<16x512xbf16>
    %37 = vector.shape_cast %34 : vector<16x512xbf16> to vector<1x16x512xbf16>
    tpu.vector_store %arg6[%c0_28, %c0_29, %c0_30], %37 {strides = array<i32>} : memref<1x16x640xbf16, #tpu.memory_space<vmem>>, vector<1x16x512xbf16>,
    return
  }
  func.func @transform_0(%arg0: i32, %arg1: i32) -> (i32, i32, i32) {
    %c0_i32 = arith.constant 0 : i32
    %c0_i32_0 = arith.constant 0 : i32
    %c0_i32_1 = arith.constant 0 : i32
    return %arg1, %c0_i32, %c0_i32_0 : i32, i32, i32
  }
  func.func @transform_1(%arg0: i32, %arg1: i32) -> (i32, i32) {
    %c0_i32 = arith.constant 0 : i32
    %c0_i32_0 = arith.constant 0 : i32
    return %arg0, %c0_i32 : i32, i32
  }
  func.func @transform_2(%arg0: i32, %arg1: i32) -> (i32, i32) {
    %c0_i32 = arith.constant 0 : i32
    %c0_i32_0 = arith.constant 0 : i32
    return %arg0, %c0_i32 : i32, i32
  }
  func.func @transform_3(%arg0: i32, %arg1: i32) -> (i32, i32) {
    %c0_i32 = arith.constant 0 : i32
    %c0_i32_0 = arith.constant 0 : i32
    %c0_i32_1 = arith.constant 0 : i32
    return %c0_i32, %c0_i32_0 : i32, i32
  }
  func.func @transform_4(%arg0: i32, %arg1: i32) -> (i32, i32, i32) {
    %c0_i32 = arith.constant 0 : i32
    %c0_i32_0 = arith.constant 0 : i32
    return %arg1, %arg0, %c0_i32 : i32, i32, i32
  }
}

module attributes {stable_mosaic.version = 11 : i64} {
  func.func @_conv_prelu_kernel(%arg0: i32, %arg1: i32, %arg2: memref<1x16x640xbf16, #tpu.memory_space<vmem>>, %arg3: memref<16x144xbf16, #tpu.memory_space<vmem>>, %arg4: memref<16x1xf32, #tpu.memory_space<vmem>>, %arg5: memref<1x1xf32, #tpu.memory_space<smem>>, %arg6: memref<1x16x640xbf16, #tpu.memory_space<vmem>>, %arg7: memref<1x16x512xf32, #tpu.memory_space<vmem>>) attributes {dimension_semantics = [#tpu.dimension_semantics<parallel>, #tpu.dimension_semantics<parallel>], iteration_bounds = array<i64: 1, 2>, scalar_prefetch = 0 : i64, scratch_operands = 0 : i64, tpu.core_type = #tpu.core_type<tc>, window_params = [{transform_indices = @transform_0, window_bounds = array<i64: 1, 16, 640>}, {transform_indices = @transform_1, window_bounds = array<i64: 16, 144>}, {transform_indices = @transform_2, window_bounds = array<i64: 16, 1>}, {transform_indices = @transform_3, window_bounds = array<i64: 1, 1>}, {transform_indices = @transform_4, window_bounds = array<i64: 1, 16, 640>}, {transform_indices = @transform_5, window_bounds = array<i64: 1, 16, 512>}]} {
    %c0 = arith.constant 0 : index
    %c0_0 = arith.constant 0 : index
    %0 = vector.load %arg3[%c0, %c0_0] : memref<16x144xbf16, #tpu.memory_space<vmem>>, vector<16x144xbf16>
    %c0_1 = arith.constant 0 : index
    %c0_2 = arith.constant 0 : index
    %1 = vector.load %arg4[%c0_1, %c0_2] : memref<16x1xf32, #tpu.memory_space<vmem>>, vector<16x1xf32>
    %c0_3 = arith.constant 0 : index
    %c0_4 = arith.constant 0 : index
    %2 = memref.load %arg5[%c0_3, %c0_4] : memref<1x1xf32, #tpu.memory_space<smem>>
    %c0_5 = arith.constant 0 : index
    %c0_6 = arith.constant 0 : index
    %c86 = arith.constant 86 : index
    %3 = vector.load %arg2[%c0_5, %c0_6, %c86] : memref<1x16x640xbf16, #tpu.memory_space<vmem>>, vector<1x16x512xbf16>
    %4 = vector.shape_cast %3 : vector<1x16x512xbf16> to vector<16x512xbf16>
    %c0_7 = arith.constant 0 : index
    %c0_8 = arith.constant 0 : index
    %c87 = arith.constant 87 : index
    %5 = vector.load %arg2[%c0_7, %c0_8, %c87] : memref<1x16x640xbf16, #tpu.memory_space<vmem>>, vector<1x16x512xbf16>
    %6 = vector.shape_cast %5 : vector<1x16x512xbf16> to vector<16x512xbf16>
    %c0_9 = arith.constant 0 : index
    %c0_10 = arith.constant 0 : index
    %c88 = arith.constant 88 : index
    %7 = vector.load %arg2[%c0_9, %c0_10, %c88] : memref<1x16x640xbf16, #tpu.memory_space<vmem>>, vector<1x16x512xbf16>
    %8 = vector.shape_cast %7 : vector<1x16x512xbf16> to vector<16x512xbf16>
    %c0_11 = arith.constant 0 : index
    %c0_12 = arith.constant 0 : index
    %c106 = arith.constant 106 : index
    %9 = vector.load %arg2[%c0_11, %c0_12, %c106] : memref<1x16x640xbf16, #tpu.memory_space<vmem>>, vector<1x16x512xbf16>
    %10 = vector.shape_cast %9 : vector<1x16x512xbf16> to vector<16x512xbf16>
    %c0_13 = arith.constant 0 : index
    %c0_14 = arith.constant 0 : index
    %c107 = arith.constant 107 : index
    %11 = vector.load %arg2[%c0_13, %c0_14, %c107] : memref<1x16x640xbf16, #tpu.memory_space<vmem>>, vector<1x16x512xbf16>
    %12 = vector.shape_cast %11 : vector<1x16x512xbf16> to vector<16x512xbf16>
    %c0_15 = arith.constant 0 : index
    %c0_16 = arith.constant 0 : index
    %c108 = arith.constant 108 : index
    %13 = vector.load %arg2[%c0_15, %c0_16, %c108] : memref<1x16x640xbf16, #tpu.memory_space<vmem>>, vector<1x16x512xbf16>
    %14 = vector.shape_cast %13 : vector<1x16x512xbf16> to vector<16x512xbf16>
    %c0_17 = arith.constant 0 : index
    %c0_18 = arith.constant 0 : index
    %c126 = arith.constant 126 : index
    %15 = vector.load %arg2[%c0_17, %c0_18, %c126] : memref<1x16x640xbf16, #tpu.memory_space<vmem>>, vector<1x16x512xbf16>
    %16 = vector.shape_cast %15 : vector<1x16x512xbf16> to vector<16x512xbf16>
    %c0_19 = arith.constant 0 : index
    %c0_20 = arith.constant 0 : index
    %c127 = arith.constant 127 : index
    %17 = vector.load %arg2[%c0_19, %c0_20, %c127] : memref<1x16x640xbf16, #tpu.memory_space<vmem>>, vector<1x16x512xbf16>
    %18 = vector.shape_cast %17 : vector<1x16x512xbf16> to vector<16x512xbf16>
    %c0_21 = arith.constant 0 : index
    %c0_22 = arith.constant 0 : index
    %c128 = arith.constant 128 : index
    %19 = vector.load %arg2[%c0_21, %c0_22, %c128] : memref<1x16x640xbf16, #tpu.memory_space<vmem>>, vector<1x16x512xbf16>
    %20 = vector.shape_cast %19 : vector<1x16x512xbf16> to vector<16x512xbf16>
    %21 = tpu.concatenate %4, %6, %8, %10, %12, %14, %16, %18, %20 in 0 : vector<16x512xbf16>, vector<16x512xbf16>, vector<16x512xbf16>, vector<16x512xbf16>, vector<16x512xbf16>, vector<16x512xbf16>, vector<16x512xbf16>, vector<16x512xbf16>, vector<16x512xbf16> -> vector<144x512xbf16>
    %cst = arith.constant dense<0.000000e+00> : vector<16x512xf32>
    %22 = tpu.matmul %0, %21, %cst {dimension_numbers = #tpu.dot_dimension_numbers<[1], [0], [0], [1], [0, 0, 1, 1], [], []>} : vector<16x144xbf16>, vector<144x512xbf16>, vector<16x512xf32> -> vector<16x512xf32>
    %23 = vector.broadcast %1 : vector<16x1xf32> to vector<16x512xf32>
    %24 = arith.addf %22, %23 : vector<16x512xf32>
    %cst_23 = arith.constant 0.000000e+00 : f32
    %25 = vector.broadcast %cst_23 : f32 to vector<16x512xf32>
    %26 = arith.cmpf oge, %24, %25 : vector<16x512xf32>
    %27 = vector.broadcast %2 : f32 to vector<16x512xf32>
    %28 = arith.mulf %27, %24 : vector<16x512xf32>
    %29 = arith.select %26, %24, %28 : vector<16x512xi1>, vector<16x512xf32>
    %c0_24 = arith.constant 0 : index
    %c0_25 = arith.constant 0 : index
    %c0_26 = arith.constant 0 : index
    %30 = vector.load %arg6[%c0_24, %c0_25, %c0_26] : memref<1x16x640xbf16, #tpu.memory_space<vmem>>, vector<1x16x512xbf16>
    %31 = vector.shape_cast %30 : vector<1x16x512xbf16> to vector<16x512xbf16>
    %32 = arith.extf %31 : vector<16x512xbf16> to vector<16x512xf32>
    %33 = arith.addf %29, %32 : vector<16x512xf32>
    %c0_27 = arith.constant 0 : index
    %c0_28 = arith.constant 0 : index
    %c0_29 = arith.constant 0 : index
    %34 = vector.load %arg7[%c0_27, %c0_28, %c0_29] : memref<1x16x512xf32, #tpu.memory_space<vmem>>, vector<1x16x512xf32>
    %35 = vector.shape_cast %34 : vector<1x16x512xf32> to vector<16x512xf32>
    %36 = vector.shape_cast %33 : vector<16x512xf32> to vector<1x16x512xf32>
    tpu.vector_store %arg7[%c0_27, %c0_28, %c0_29], %36 {strides = array<i32>} : memref<1x16x512xf32, #tpu.memory_space<vmem>>, vector<1x16x512xf32>,
    return
  }
  func.func @transform_0(%arg0: i32, %arg1: i32) -> (i32, i32, i32) {
    %c0_i32 = arith.constant 0 : i32
    %c0_i32_0 = arith.constant 0 : i32
    %c0_i32_1 = arith.constant 0 : i32
    return %arg1, %c0_i32, %c0_i32_0 : i32, i32, i32
  }
  func.func @transform_1(%arg0: i32, %arg1: i32) -> (i32, i32) {
    %c0_i32 = arith.constant 0 : i32
    %c0_i32_0 = arith.constant 0 : i32
    return %arg0, %c0_i32 : i32, i32
  }
  func.func @transform_2(%arg0: i32, %arg1: i32) -> (i32, i32) {
    %c0_i32 = arith.constant 0 : i32
    %c0_i32_0 = arith.constant 0 : i32
    return %arg0, %c0_i32 : i32, i32
  }
  func.func @transform_3(%arg0: i32, %arg1: i32) -> (i32, i32) {
    %c0_i32 = arith.constant 0 : i32
    %c0_i32_0 = arith.constant 0 : i32
    %c0_i32_1 = arith.constant 0 : i32
    return %c0_i32, %c0_i32_0 : i32, i32
  }
  func.func @transform_4(%arg0: i32, %arg1: i32) -> (i32, i32, i32) {
    %c0_i32 = arith.constant 0 : i32
    %c0_i32_0 = arith.constant 0 : i32
    return %arg1, %arg0, %c0_i32 : i32, i32, i32
  }
  func.func @transform_5(%arg0: i32, %arg1: i32) -> (i32, i32, i32) {
    %c0_i32 = arith.constant 0 : i32
    %c0_i32_0 = arith.constant 0 : i32
    return %arg1, %arg0, %c0_i32 : i32, i32, i32
  }
}

</mosaic_0001>

<bundles_post_ra>
// kernel: d_upproj_block.4
= control target key start
LH: loop header
LB: loop body
LE: loop exit
PB: predicated region body
PF: predicated region fallthrough
CT: control target
= control target key end

     0   :  { %s1372_s0 = inlined_call_operand.hbm [shape: bf16[2,16,512], index: 0, kind: input, shape index: {}]   ;;  %s1373_s1 = inlined_call_operand.hbm [shape: bf16[16,16], index: 1, kind: input, shape index: {}]   ;;  %s1374_s2 = inlined_call_operand.hbm [shape: f32[16,1], index: 2, kind: input, shape index: {}]   ;;  %s1375_s3 = inlined_call_operand.<no memory space> [shape: f32[1,1], index: 3, kind: input, shape index: {}]   ;;  %s1376_s4 = inlined_call_operand.hbm [shape: f32[1,640], index: 4, kind: input, shape index: {}]   ;;  %s1377_s5 = inlined_call_operand.hbm [shape: bf16[2,16,640], index: 5, kind: output, shape index: {}]  }
   0x1   :  { %1382 = sst [smem:[#allocation16_spill]] %s1373_s1 }
   0x2   :  { %10 = sst [smem:[#allocation2]] %s1375_s3 }
   0x3   :  { %11 = vsyncpa [#allocation4], 0 }
   0x4   :  { %13 = vsyncpa [#allocation4 + $0x1], 0 }
   0x5   :  { %14 = vsyncpa [#allocation7], 0 }
   0x6   :  { %15 = vsyncpa [#allocation10], 0 }
   0x7   :  { %16 = vsyncpa [#allocation5], 0 }
   0x8   :  { %18 = vsyncpa [#allocation5 + $0x1], 0  ;;  %s1073_s20 = smov 0   ;;  %s1075_s21 = smov 0  }
   0x9   :  { %s1077_s22 = smov 0   ;;  %s1079_s23 = smov 0  }
   0xa   :  { %s1081_s24 = smov 0   ;;  %s1083_s25 = smov 0  }
   0xb LB: > { %s674_s3 = sadd.s32 4294967295, %s1024_s25   ;;  %s675_s26 = sadd.s32 4294967294, %s1024_s25   ;;  %s1024_s25 = sphi %s1083_s25, %s24_s25   ;;  %s1020_s24 = sphi %s1081_s24, %s1404_s24   ;;  %s1016_s23 = sphi %s1079_s23, %s1403_s23   ;;  %s1012_s22 = sphi %s1077_s22, %s1402_s22   ;;  %s1008_s21 = sphi %s1075_s21, %s1401_s21   ;;  %s1004_s20 = sphi %s1073_s20, %s1400_s20  }
   0xc   : > { %p56_p0 = scmp.ne.s32.totalorder %s1008_s21, %s1004_s20  ;;  %p1107_p1 = scmp.eq.s32.totalorder %s674_s3, 0 }
   0xd   : > { %p1111_p2 = scmp.eq.s32.totalorder %s674_s3, 1  ;;  %p182_p3 = scmp.eq.s32.totalorder %s675_s26, 1 }
   0xe   : > { %s1383_s27 = scalar_select %p1107_p1, 1, 0 }
   0xf   : > { %s1384_s28 = scalar_select %p1111_p2, 1, 0 }
  0x10   : > { %p1117_p4 = por %p1107_p1, %p56_p0  ;;  %p676_p5 = scmp.ge.s32.totalorder %s1024_s25, 1 }
  0x11   : > { %p1122_p6 = por %p182_p3, %p56_p0  ;;  %p189_p7 = scmp.lt.s32.totalorder %s1024_s25, 3 }
  0x12   : > { %s1385_s29 = scalar_select %p1117_p4, 1, 0 }
  0x13   : > { %s1386_s30 = scalar_select %p1122_p6, 1, 0 }
  0x14   : > { %p1127_p8 = pnand %p676_p5, %p189_p7  ;;  %s1026_s7 = smov [#allocation6]  }
  0x15   : > { %s204_s8 = sshll.u32 %s1026_s7, 4  ;;  %s1027_s10 = smov [#allocation8]   ;;  %s1131_s8 = int_to_ptr.vmem [resolvable:$true] %s204_s8 }
  0x16   : > { %s1387_s6 = scalar_select %p1127_p8, 1, 0 }
  0x17   : > { %p726_p9 = pneg %p1127_p8  ;;  %s220_s11 = sshll.u32 %s1027_s10, 4  ;;  %s1142_s11 = int_to_ptr.vmem [resolvable:$true] %s220_s11 }
  0x18   : > { %s1389_s1 = sld [smem:[#allocation16_spill]] }
  0x19   : > { %p1138_p11 = pnand %p726_p9, %p1107_p1 }
  0x1b   : > { %p1152_p13 = pneg %p1138_p11 }
  0x1e   : > { %s820_s14 = scalar_lea.hbm %s1389_s1, 128 }
  0x1f   : > { %p821_p12 = scmp.ne.s32.totalorder %s1389_s1, %s820_s14  ;;  %p827_p5 = scmp.lt.u32.totalorder %s820_s14, %s1389_s1 }
  0x21   : > { %p823_p0 = pnand %p1152_p13, %p821_p12 }
  0x23   : > { %p824_p3 = pneg %p823_p0 }
  0x25   : > { %p829_p7 = pnand %p827_p5, %p824_p3 }
  0x27   : > { %832 = shalt.err (!%p829_p7)
}
  0x28   : > { %s833_s3 = scalar_lea.vmem %s1131_s8, 128  ;;  %p841_p1 = scmp.lt.s32.totalorder %s1131_s8, %s1131_s8 }
  0x29   : > { %p834_p9 = scmp.ne.s32.totalorder %s1131_s8, %s833_s3  ;;  %p842_p4 = scmp.lt.s32.totalorder %s833_s3, %s833_s3 }
  0x2b   : > { %p836_p10 = pnand %p834_p9, %p1152_p13  ;;  %p843_p12 = por %p842_p4, %p841_p1 }
  0x2d   : > { %p837_p6 = pneg %p836_p10 }
  0x2f   : > { %p844_p0 = pnand %p843_p12, %p837_p6 }
  0x31   : > { %847 = shalt.err (!%p844_p0)
}
  0x32   : > { %s1028_s26 = smov 64   ;;  %s1029_s7 = smov 4  }
  0x33   : > { %729 = dma.hbm_to_vmem [thread:$0]  (!%p1138_p11), %s1389_s1, 128, %s1131_s8, [#allocation7], %s1028_s26, %s1028_s26, %s1029_s7  }
  0x34   : > { %s848_s15 = scalar_lea.hbm %s1374_s2, 256 }
  0x35   : > { %p849_p1 = scmp.ne.s32.totalorder %s1374_s2, %s848_s15  ;;  %p855_p10 = scmp.lt.u32.totalorder %s848_s15, %s1374_s2 }
  0x37   : > { %p851_p4 = pnand %p849_p1, %p1152_p13 }
  0x39   : > { %p852_p6 = pneg %p851_p4 }
  0x3b   : > { %p857_p3 = pnand %p855_p10, %p852_p6 }
  0x3d   : > { %860 = shalt.err (!%p857_p3)
}
  0x3e   : > { %s861_s8 = scalar_lea.vmem %s1142_s11, 256  ;;  %p869_p12 = scmp.lt.s32.totalorder %s1142_s11, %s1142_s11 }
  0x3f   : > { %p862_p5 = scmp.ne.s32.totalorder %s1142_s11, %s861_s8  ;;  %p870_p0 = scmp.lt.s32.totalorder %s861_s8, %s861_s8 }
  0x41   : > { %p864_p7 = pnand %p862_p5, %p1152_p13  ;;  %p871_p1 = por %p870_p0, %p869_p12 }
  0x43   : > { %p865_p9 = pneg %p864_p7 }
  0x45   : > { %p872_p4 = pnand %p871_p1, %p865_p9 }
  0x47   : > { %875 = shalt.err (!%p872_p4)
}
  0x48   : > { %s1030_s26 = smov 128   ;;  %s1031_s7 = smov 8  }
  0x49   : > { %732 = dma.hbm_to_vmem [thread:$0]  (!%p1138_p11), %s1374_s2, 256, %s1142_s11, [#allocation7], %s1030_s26, %s1030_s26, %s1031_s7  }
  0x4a   : > { %s1032_s13 = smov [#allocation9]   ;;  %s876_s18 = scalar_lea.hbm %s1376_s4, 80 }
  0x4b   : > { %s237_s14 = sshll.u32 %s1032_s13, 4  ;;  %p877_p6 = scmp.ne.s32.totalorder %s1376_s4, %s876_s18  ;;  %s238_s14 = int_to_ptr.vmem [resolvable:$true] %s237_s14 }
  0x4c   : > { %p883_p5 = scmp.lt.u32.totalorder %s876_s18, %s1376_s4 }
  0x4d   : > { %p879_p10 = pnand %p877_p6, %p1152_p13 }
  0x4f   : > { %p880_p3 = pneg %p879_p10 }
  0x51   : > { %p885_p7 = pnand %p883_p5, %p880_p3 }
  0x53   : > { %888 = shalt.err (!%p885_p7)
}
  0x54   : > { %s889_s11 = scalar_lea.vmem %s238_s14, 80  ;;  %s896_s26 = scalar_lea.vmem %s238_s14, 96 }
  0x55   : > { %p890_p9 = scmp.ne.s32.totalorder %s238_s14, %s889_s11  ;;  %p897_p1 = scmp.lt.s32.totalorder %s238_s14, %s238_s14 }
  0x56   : > { %p898_p4 = scmp.lt.s32.totalorder %s896_s26, %s889_s11 }
  0x57   : > { %p892_p12 = pnand %p890_p9, %p1152_p13 }
  0x58   : > { %p899_p8 = por %p898_p4, %p897_p1 }
  0x59   : > { %p893_p0 = pneg %p892_p12 }
  0x5b   : > { %p900_p2 = pnand %p899_p8, %p893_p0 }
  0x5d   : > { %903 = shalt.err (!%p900_p2)
}
  0x5e   : > { %735 = dma.hbm_to_vmem [thread:$0]  (!%p1138_p11), %s1376_s4, 80, %s238_s14, [#allocation10]  }
  0x5f   : > { %s33_s1 = sadd.s32 1, %s1020_s24  ;;  %s43_s17 = sadd.s32 1, %s1012_s22 }
  0x60   : > { %p34_p8 = scmp.ge.s32.totalorder %s33_s1, 2  ;;  %p50_p2 = scmp.ne.s32.totalorder %s1012_s22, %s1008_s21 }
  0x61   : > { %p51_p13 = scmp.eq.s32.totalorder %s1024_s25, 0  ;;  %p1392_p10 = scmp.ne.s32.totalorder %s1384_s28, 0 }
  0x62   : > { %s1406_s1 = smov (%p34_p8, %s33_s1), 0  ;;  %p747_p11 = scmp.lt.s32.totalorder %s1024_s25, 2 }
  0x63   : > { %p1221_p6 = por %p51_p13, %p50_p2  ;;  %p1227_p3 = por %p1392_p10, %p50_p2 }
  0x64   : > { %s40_s13 = ssub.s32 %s1020_s24, %s1406_s1  ;;  %s248_s14 = sand.u32 1, %s1012_s22  }
  0x65   : > { %p41_p5 = scmp.eq.s32.totalorder %s40_s13, 0  ;;  %s681_s15 = sshll.u32 %s248_s14, 5 }
  0x66   : > { %s703_s18 = sshll.u32 %s1020_s24, 9  ;;  %s252_s28 = scalar_lea.vmem [#allocation3], %s681_s15 }
  0x67   : > { %s1236_s16 = scalar_select %p41_p5, %s1012_s22, %s43_s17  }
  0x68   : > { %s1242_s8 = scalar_lea.hbm %s1372_s0, %s703_s18  ;;  %s259_s11 = sshll.u32 %s252_s28, 4  ;;  %s1244_s11 = int_to_ptr.vmem [resolvable:$true] %s259_s11 }
  0x69   : > { %p1248_p7 = pnand %p747_p11, %p1221_p6  ;;  %s1252_s7 = scalar_lea.sflag [#allocation4], %s248_s14 }
  0x6a   : > { %s904_s10 = scalar_lea.hbm %s1242_s8, 512  ;;  %s909_s9 = scalar_lea.hbm %s1372_s0, 1024 }
  0x6b   : > { %p905_p9 = scmp.ne.s32.totalorder %s1242_s8, %s904_s10  ;;  %p906_p12 = pneg %p1248_p7 }
  0x6c   : > { %p910_p4 = scmp.lt.u32.totalorder %s1242_s8, %s1372_s0  ;;  %p911_p8 = scmp.lt.u32.totalorder %s909_s9, %s904_s10 }
  0x6d   : > { %p907_p0 = pnand %p906_p12, %p905_p9  ;;  %p913_p13 = scmp.lt.u32.totalorder %s904_s10, %s1242_s8 }
  0x6e   : > { %p912_p2 = por %p911_p8, %p910_p4 }
  0x6f   : > { %p908_p1 = pneg %p907_p0 }
  0x70   : > { %p914_p6 = por %p913_p13, %p912_p2 }
  0x72   : > { %p915_p10 = pnand %p914_p6, %p908_p1 }
  0x74   : > { %918 = shalt.err (!%p915_p10)
}
  0x75   : > { %s919_s14 = scalar_lea.vmem %s1244_s11, 512  ;;  %s1033_s19 = smov [#allocation3]  }
  0x76   : > { %p920_p11 = scmp.ne.s32.totalorder %s1244_s11, %s919_s14  ;;  %s924_s3 = sshll.u32 %s1033_s19, 4  ;;  %s925_s3 = int_to_ptr.vmem [resolvable:$false] %s924_s3 }
  0x77   : > { %s926_s28 = scalar_lea.vmem %s925_s3, 1024  ;;  %p927_p0 = scmp.lt.s32.totalorder %s1244_s11, %s925_s3 }
  0x78   : > { %p922_p5 = pnand %p920_p11, %p906_p12  ;;  %p928_p4 = scmp.lt.s32.totalorder %s926_s28, %s919_s14 }
  0x7a   : > { %p923_p9 = pneg %p922_p5  ;;  %p929_p8 = por %p928_p4, %p927_p0 }
  0x7c   : > { %p930_p2 = pnand %p929_p8, %p923_p9 }
  0x7e   : > { %933 = shalt.err (!%p930_p2)
}
  0x7f   : > { %s1034_s10 = smov 256   ;;  %s1035_s17 = smov 16  }
  0x80   : > { %739 = dma.hbm_to_vmem [thread:$0]  (!%p1248_p7), %s1242_s8, 512, %s1244_s11, %s1252_s7, %s1034_s10, %s1034_s10, %s1035_s17  }
  0x81   : > { %p1395_p12 = scmp.ne.s32.totalorder %s1387_s6, 0 }
  0x82   : > { %s1283_s13 = sand.u32 (!%p1395_p12), 1, %s1008_s21   ;;  %p1396_p1 = scmp.ne.s32.totalorder (!%p1395_p12), %s1385_s29, 0 }
  0x83   : > { %271 = sbr.rel (%p1395_p12) target bundleno = 393 (0x189), region = 40  ;;  %s685_s9 = sshll.u32 (!%p1395_p12), %s1283_s13, 5 }
  0x84   : > { %s274_s15 = scalar_lea.sflag (!%p1395_p12), [#allocation4], %s1283_s13  ;;  %s277_s18 = scalar_lea.vmem (!%p1395_p12), [#allocation3], %s685_s9 }
  0x8a   : > { %987 = dma.done.wait (%p1396_p1), %s274_s15, 512  }
  0x8b   : > { %989 = vsyncadd (%p1396_p1), %s274_s15, 4294966784  ;;  %p1397_p13 = scmp.ne.s32.totalorder %s1383_s27, 0 }
  0x8d   : > { %991 = dma.done.wait (%p1397_p13), [#allocation7], 384  }
  0x8e   : > { %993 = vsyncadd (%p1397_p13), [#allocation7], 4294966912 }
  0x8f   : > { %995 = dma.done.wait (%p1397_p13), [#allocation10], 80  }
  0x90   : > { %997 = vsyncadd (%p1397_p13), [#allocation10], 4294967216  ;;  %s708_s6 = smul.u32 40, %s1283_s13  ;;  %v1036_v0 = vmov 0   ;;  %v813_v1 = vld [vmem:[%s277_s18 + $0x4] ss:$16 sps:$4 sm:$0xff]   ;;  %v484_v8 = vlaneseq }
  0x91   : > { %402 = vmatprep.mubr.bf16.mxu0 %v1036_v0  ;;  %445 = vmatprep.mubr.bf16.mxu1 %v1036_v0  ;;  %v815_v2 = vld [vmem:[%s277_s18 + $0xc] ss:$16 sps:$4 sm:$0xff]   ;;  %v817_v3 = vld [vmem:[%s277_s18] ss:$16 sps:$4 sm:$0xff]   ;;  %v818_v4 = vld [vmem:[%s277_s18 + $0x8] ss:$16 sps:$4 sm:$0xff]  }
  0x92   : > { %812 = vset.pattern.permute.xlu0 %v1036_v0  ;;  %s1300_s29 = scalar_lea.vmem [#allocation11], %s708_s6  ;;  %370 = vmatprep.subr.bf16.mxu0 %v813_v1  ;;  %v819_v5 = vld [vmem:[#allocation6] sm:$0xff]   ;;  %v322_v6 = vld [vmem:[#allocation8] sm:$0xff]  ;;  %vm366_vm0 = vcmask 130048   ;;  %v323_v7 = vld [vmem:[#allocation8 + $0x8] sm:$0xff]  ;;  %v485_v10 = vshrl.u32 %v484_v8, 7 }
  0x93   : > { %325 = vst [vmem:[%s1300_s29 + $0x10] sm:$0xf] %v1036_v0  ;;  %326 = vst [vmem:[%s1300_s29 + $0x24] sm:$0xf] %v1036_v0  ;;  %413 = vmatprep.subr.bf16.mxu1 %v815_v2  ;;  %371 = vmatpush1.bf16.msra.mxu0 %v817_v3  ;;  %v481_v9 = vld [vmem:[#allocation9] sm:$0xf] }
  0x94   : > { %414 = vmatpush1.bf16.msra.mxu1 %v818_v4  ;;  %333 = vperm.xlu0 %812, %v322_v6   ;;  %vm482_vm1 = vcmp.gt.f32.partialorder %v481_v9, 0.0  ;;  %s324_s27 = sld [smem:[#allocation2]]  ;;  %v486_v11 = vsub.s32 0, %v485_v10  ;;  %v494_v12 = vsub.s32 2, %v485_v10  ;;  %v490_v14 = vsub.s32 1, %v485_v10  ;;  %s709_s8 = smul.u32 640, %s1016_s23 }
  0x95   : > { %v483_v13 = vsel %vm482_vm1, 1, %v1036_v0  ;;  %v498_v15 = vsub.s32 3, %v485_v10  ;;  %s557_s11 = sshll.u32 %s1300_s29, 4  ;;  %s541_s23 = scalar_lea.sflag [#allocation5], %s1283_s13  ;;  %s1321_s11 = int_to_ptr.vmem [resolvable:$true] %s557_s11 }
  0x96   : > { %694 = vmatmul.mubr.msk.bf16.vlgmr.msra.gmra.mrb[0].mxu0 %vm366_vm0, %v819_v5  ;;  %v487_v16 = vrot.slane %v483_v13, %v486_v11  ;;  %v495_v17 = vrot.slane %v483_v13, %v494_v12  ;;  %v491_v19 = vrot.slane %v483_v13, %v490_v14  ;;  %s1319_s14 = scalar_lea.hbm %s1377_s5, %s709_s8  ;;  %s934_s19 = scalar_lea.vmem %s1321_s11, 640 }
  0x97   : > { %695 = vmatmul.mubr.msk.bf16.vlgmr.msra.gmra.mrb[0].mxu1 %vm366_vm0, %v819_v5  ;;  %v499_v20 = vrot.slane %v483_v13, %v498_v15  ;;  %p935_p7 = scmp.ne.s32.totalorder %s1321_s11, %s934_s19  ;;  %s1037_s3 = smov [#allocation11]  }
  0x98   : > { %338 = vperm.xlu0 %812, %v323_v7   ;;  %vm500_vm2 = vcmp.eq.s32.totalorder %v487_v16, 1  ;;  %vm502_vm3 = vcmp.eq.s32.totalorder %v495_v17, 1  ;;  %vm501_vm4 = vcmp.eq.s32.totalorder %v491_v19, 1  ;;  %s938_s28 = sshll.u32 %s1037_s3, 4  ;;  %s939_s28 = int_to_ptr.vmem [resolvable:$false] %s938_s28 }
  0x99   : > { %vm503_vm5 = vcmp.eq.s32.totalorder %v499_v20, 1  ;;  %p936_p6 = pnand %p935_p7, %p1227_p3  ;;  %s940_s10 = scalar_lea.vmem %s939_s28, 1280 }
  0x9a   : > { %v464_v22 = vstv %s324_s27  ;;  %p941_p11 = scmp.lt.s32.totalorder %s1321_s11, %s939_s28  ;;  %p942_p5 = scmp.lt.s32.totalorder %s940_s10, %s934_s19 }
  0x9b   : > { %p937_p10 = pneg %p936_p6 }
  0x9c   : > { %p943_p9 = por %p942_p5, %p941_p11 }
  0x9e   : > { %p944_p0 = pnand %p943_p9, %p937_p10 }
 0x113   : > { %v334_v18 = vpop.permute.xlu0 %333 }
 0x117   : > { %v339_v36 = vpop.permute.xlu0 %338 }
 0x169   : > { %v404_v21 = vpop.f32.mrb[0].mxu0 }
 0x16a   : > { %v447_v23 = vpop.f32.mrb[0].mxu1  ;;  %v405_v24 = vadd.f32 %v404_v21, %v334_v18  ;;  %v406_v26 = vpop.f32.mrb[1].mxu0 }
 0x16b   : > { %v448_v25 = vadd.f32 %v447_v23, %v334_v18  ;;  %v449_v27 = vpop.f32.mrb[1].mxu1  ;;  %v407_v28 = vadd.f32 %v406_v26, %v334_v18  ;;  %v408_v30 = vpop.f32.mrb[2].mxu0 }
 0x16c   : > { %v450_v29 = vadd.f32 %v449_v27, %v334_v18  ;;  %v451_v31 = vpop.f32.mrb[2].mxu1  ;;  %vm456_vm6 = vcmp.ge.f32.partialorder %v405_v24, 0.0  ;;  %v465_v32 = vmul.f32 %v464_v22, %v405_v24  ;;  %v410_v34 = vpop.f32.mrb[3].mxu0  ;;  %v409_v41 = vadd.f32 %v408_v30, %v339_v36 }
 0x16d   : > { %vm458_vm7 = vcmp.ge.f32.partialorder %v448_v25, 0.0  ;;  %v467_v33 = vmul.f32 %v464_v22, %v448_v25  ;;  %v453_v35 = vpop.f32.mrb[3].mxu1  ;;  %vm457_vm8 = vcmp.ge.f32.partialorder %v407_v28, 0.0  ;;  %v466_v37 = vmul.f32 %v464_v22, %v407_v28 }
 0x16e   : > { %vm459_vm9 = vcmp.ge.f32.partialorder %v450_v29, 0.0  ;;  %v468_v38 = vmul.f32 %v464_v22, %v450_v29  ;;  %v473_v39 = vsel %vm456_vm6, %v405_v24, %v465_v32  ;;  %v452_v42 = vadd.f32 %v451_v31, %v339_v36 }
 0x16f   : > { %v475_v40 = vsel %vm458_vm7, %v448_v25, %v467_v33  ;;  %v504_v43 = vsel %vm500_vm2, %v473_v39, 0.0  ;;  %v474_v45 = vsel %vm457_vm8, %v407_v28, %v466_v37  ;;  %vm460_vm10 = vcmp.ge.f32.partialorder %v409_v41, 0.0 }
 0x170   : > { %v506_v44 = vsel %vm502_vm3, %v475_v40, 0.0  ;;  %v476_v46 = vsel %vm459_vm9, %v450_v29, %v468_v38  ;;  %v505_v47 = vsel %vm501_vm4, %v474_v45, 0.0  ;;  %v469_v49 = vmul.f32 %v464_v22, %v409_v41 }
 0x171   : > { %v507_v48 = vsel %vm503_vm5, %v476_v46, 0.0  ;;  %v704_v50 = vpack.c.bf16 %v505_v47, %v504_v43  ;;  %vm462_vm11 = vcmp.ge.f32.partialorder %v452_v42, 0.0  ;;  %v471_v52 = vmul.f32 %v464_v22, %v452_v42 }
 0x172   : > { %v705_v51 = vpack.c.bf16 %v507_v48, %v506_v44  ;;  %v477_v53 = vsel %vm460_vm10, %v409_v41, %v469_v49  ;;  %v411_v54 = vadd.f32 %v410_v34, %v339_v36  ;;  %v454_v55 = vadd.f32 %v453_v35, %v339_v36 }
 0x173   : > { %536 = vst [vmem:[%s1300_s29] sm:$0xff] %v704_v50  ;;  %v479_v56 = vsel %vm462_vm11, %v452_v42, %v471_v52  ;;  %v508_v58 = vsel %vm500_vm2, %v477_v53, 0.0 }
 0x174   : > { %537 = vst [vmem:[%s1300_s29 + $0x8] sm:$0xff] %v705_v51  ;;  %vm461_vm12 = vcmp.ge.f32.partialorder %v411_v54, 0.0  ;;  %v470_v57 = vmul.f32 %v464_v22, %v411_v54  ;;  %vm463_vm13 = vcmp.ge.f32.partialorder %v454_v55, 0.0  ;;  %v472_v59 = vmul.f32 %v464_v22, %v454_v55 }
 0x175   : > { %v510_v60 = vsel %vm502_vm3, %v479_v56, 0.0 }
 0x176   : > { %v478_v61 = vsel %vm461_vm12, %v411_v54, %v470_v57  ;;  %v480_v63 = vsel %vm463_vm13, %v454_v55, %v472_v59 }
 0x177   : > { %v509_v62 = vsel %vm501_vm4, %v478_v61, 0.0  ;;  %v511_v1 = vsel %vm503_vm5, %v480_v63, 0.0 }
 0x178   : > { %v706_v0 = vpack.c.bf16 %v509_v62, %v508_v58  ;;  %v707_v2 = vpack.c.bf16 %v511_v1, %v510_v60 }
 0x17a   : > { %538 = vst [vmem:[%s1300_s29 + $0x14] sm:$0xff] %v706_v0  ;;  %539 = vst [vmem:[%s1300_s29 + $0x1c] sm:$0xff] %v707_v2 }
 0x17b   : > { %947 = shalt.err (!%p944_p0)
}
 0x17c   : > { %s948_s17 = scalar_lea.hbm %s1319_s14, 640  ;;  %s952_s18 = scalar_lea.hbm %s1377_s5, 1280 }
 0x17d   : > { %p949_p4 = scmp.ne.s32.totalorder %s1319_s14, %s948_s17  ;;  %p953_p12 = scmp.lt.u32.totalorder %s1319_s14, %s1377_s5 }
 0x17e   : > { %p954_p1 = scmp.lt.u32.totalorder %s952_s18, %s948_s17  ;;  %p956_p7 = scmp.lt.u32.totalorder %s948_s17, %s1319_s14 }
 0x17f   : > { %p950_p8 = pnand %p949_p4, %p1227_p3 }
 0x180   : > { %p955_p13 = por %p954_p1, %p953_p12 }
 0x181   : > { %p951_p2 = pneg %p950_p8 }
 0x182   : > { %p957_p6 = por %p956_p7, %p955_p13 }
 0x184   : > { %p958_p10 = pnand %p957_p6, %p951_p2 }
 0x186   : > { %961 = shalt.err (!%p958_p10)
}
 0x187   : > { %s1038_s27 = smov 320   ;;  %s1039_s8 = smov 20  }
 0x188   : > { %724 = dma.vmem_to_hbm [thread:$0]  (%p1227_p3), %s1321_s11, 640, %s1319_s14, %s541_s23, %s1038_s27, %s1038_s27, %s1039_s8  }
 0x189 PF: > { %s572_s26 = sand.u32 1, %s1004_s20   ;;  %p1398_p11 = scmp.ne.s32.totalorder %s1386_s30, 0 }
 0x18a   : > { %p1399_p5 = scmp.ge.s32.totalorder %s1024_s25, 2  ;;  %s573_s7 = scalar_lea.sflag [#allocation5], %s572_s26 }
 0x18c   : > { %p741_p9 = pnand %p1399_p5, %p1398_p11 }
 0x18e   : > { %999 = dma.done.wait (!%p741_p9), %s573_s7, 640  }
 0x18f   : > { %1001 = vsyncadd (!%p741_p9), %s573_s7, 4294966656  ;;  %s24_s25 = sadd.s32 1, %s1024_s25   ;;  %s1400_s20 = smov %s1008_s21 }
 0x190   : > { %p21_p0 = scmp.ge.s32.totalorder %s24_s25, 4   ;;  %s1401_s21 = smov %s1012_s22 }
 0x191   : > { %s1402_s22 = smov %s1236_s16  ;;  %s1403_s23 = smov %s1020_s24 }
 0x192   : > { %s1404_s24 = smov %s1406_s1  ;;  %23 = sbr.rel (!%p21_p0) target bundleno = 11 (0xb), region = 99 }
 0x199   :  { %578 = vsyncpa [#allocation4], 1 }
 0x19a   :  { %580 = vsyncpa [#allocation4 + $0x1], 1 }
 0x19b   :  { %581 = vsyncpa [#allocation7], 1 }
 0x19c   :  { %582 = vsyncpa [#allocation10], 1 }
 0x19d   :  { %583 = vsyncpa [#allocation5], 1 }
 0x19e   :  { %585 = vsyncpa [#allocation5 + $0x1], 1 }

// kernel: d_upproj_block.6
= control target key start
LH: loop header
LB: loop body
LE: loop exit
PB: predicated region body
PF: predicated region fallthrough
CT: control target
= control target key end

     0   :  { %s2049_s0 = inlined_call_operand.hbm [shape: bf16[2,16,640], index: 0, kind: input, shape index: {}]   ;;  %s2050_s1 = inlined_call_operand.hbm [shape: bf16[16,144], index: 1, kind: input, shape index: {}]   ;;  %s2051_s2 = inlined_call_operand.hbm [shape: f32[16,1], index: 2, kind: input, shape index: {}]   ;;  %s2052_s3 = inlined_call_operand.<no memory space> [shape: f32[1,1], index: 3, kind: input, shape index: {}]   ;;  %s2053_s4 = inlined_call_operand.hbm [shape: bf16[2,16,640], index: 4, kind: input, shape index: {}]   ;;  %s2054_s5 = inlined_call_operand.hbm [shape: f32[1,640], index: 5, kind: input, shape index: {}]   ;;  %s2055_s6 = inlined_call_operand.hbm [shape: bf16[2,16,640], index: 6, kind: output, shape index: {}]  }
   0x1   :  { %2061 = sst [smem:[#allocation19_spill]] %s2049_s0 }
   0x2   :  { %2062 = sst [smem:[#allocation20_spill]] %s2050_s1 }
   0x3   :  { %2063 = sst [smem:[#allocation21_spill]] %s2051_s2 }
   0x4   :  { %11 = sst [smem:[#allocation2]] %s2052_s3 }
   0x5   :  { %12 = vsyncpa [#allocation4], 0 }
   0x6   :  { %14 = vsyncpa [#allocation4 + $0x1], 0 }
   0x7   :  { %15 = vsyncpa [#allocation7], 0 }
   0x8   :  { %16 = vsyncpa [#allocation10], 0 }
   0x9   :  { %18 = vsyncpa [#allocation10 + $0x1], 0 }
   0xa   :  { %19 = vsyncpa [#allocation5], 0 }
   0xb   :  { %21 = vsyncpa [#allocation5 + $0x1], 0  ;;  %s1625_s23 = smov 0   ;;  %s1627_s24 = smov 0  }
   0xc   :  { %s1629_s25 = smov 0   ;;  %s1631_s26 = smov 0  }
   0xd   :  { %s1633_s27 = smov 0   ;;  %s1635_s28 = smov 0  }
   0xe LB: > { %s1656_s3 = sadd.s32 4294967295, %s1563_s28   ;;  %s1108_s29 = sadd.s32 4294967294, %s1563_s28   ;;  %s1563_s28 = sphi %s1635_s28, %s27_s28   ;;  %s1559_s27 = sphi %s1633_s27, %s2090_s27   ;;  %s1555_s26 = sphi %s1631_s26, %s2089_s26   ;;  %s1551_s25 = sphi %s1629_s25, %s2088_s25   ;;  %s1547_s24 = sphi %s1627_s24, %s2087_s24   ;;  %s1543_s23 = sphi %s1625_s23, %s2086_s23  }
   0xf   : > { %p59_p0 = scmp.ne.s32.totalorder %s1547_s24, %s1543_s23  ;;  %p2056_p1 = scmp.eq.s32.totalorder %s1656_s3, 0 }
  0x10   : > { %p213_p3 = scmp.eq.s32.totalorder %s1108_s29, 1  ;;  %p1109_p5 = scmp.ge.s32.totalorder %s1563_s28, 1 }
  0x11   : > { %p1665_p4 = por %p2056_p1, %p59_p0  ;;  %p220_p7 = scmp.lt.s32.totalorder %s1563_s28, 3 }
  0x12   : > { %p1670_p6 = por %p213_p3, %p59_p0  ;;  %s1565_s9 = smov [#allocation6]  }
  0x13   : > { %s2064_s30 = scalar_select %p1665_p4, 1, 0 }
  0x14   : > { %s2065_s7 = scalar_select %p1670_p6, 1, 0 }
  0x15   : > { %p1675_p8 = pnand %p1109_p5, %p220_p7  ;;  %s236_s10 = sshll.u32 %s1565_s9, 4  ;;  %s1679_s10 = int_to_ptr.vmem [resolvable:$true] %s236_s10 }
  0x16   : > { %2066 = sst [smem:[#allocation18_spill]] %s2065_s7  ;;  %s1566_s12 = smov [#allocation11]  }
  0x17   : > { %s2067_s8 = scalar_select %p1675_p8, 1, 0 }
  0x18   : > { %p1172_p9 = pneg %p1675_p8  ;;  %s269_s13 = sshll.u32 %s1566_s12, 4  ;;  %s1690_s13 = int_to_ptr.vmem [resolvable:$true] %s269_s13 }
  0x19   : > { %s1567_s14 = smov [#allocation8]   ;;  %s2069_s1 = sld [smem:[#allocation20_spill]] }
  0x1a   : > { %p1686_p11 = pnand %p1172_p9, %p2056_p1  ;;  %s1692_s15 = sshll.u32 %s1567_s14, 4  ;;  %s253_s15 = int_to_ptr.vmem [resolvable:$true] %s1692_s15 }
  0x1c   : > { %p1702_p13 = pneg %p1686_p11 }
  0x1f   : > { %s1325_s18 = scalar_lea.hbm %s2069_s1, 256 }
  0x20   : > { %p1326_p12 = scmp.ne.s32.totalorder %s2069_s1, %s1325_s18  ;;  %p1332_p5 = scmp.lt.u32.totalorder %s1325_s18, %s2069_s1 }
  0x22   : > { %p1328_p0 = pnand %p1702_p13, %p1326_p12 }
  0x24   : > { %p1329_p3 = pneg %p1328_p0 }
  0x26   : > { %p1334_p7 = pnand %p1332_p5, %p1329_p3 }
  0x28   : > { %1337 = shalt.err (!%p1334_p7)
}
  0x29   : > { %s1338_s9 = scalar_lea.vmem %s1679_s10, 256  ;;  %p1346_p2 = scmp.lt.s32.totalorder %s1679_s10, %s1679_s10 }
  0x2a   : > { %p1339_p9 = scmp.ne.s32.totalorder %s1679_s10, %s1338_s9  ;;  %p1347_p6 = scmp.lt.s32.totalorder %s1338_s9, %s1338_s9 }
  0x2c   : > { %p1341_p10 = pnand %p1339_p9, %p1702_p13  ;;  %p1348_p12 = por %p1347_p6, %p1346_p2 }
  0x2e   : > { %p1342_p1 = pneg %p1341_p10 }
  0x30   : > { %p1349_p0 = pnand %p1348_p12, %p1342_p1 }
  0x32   : > { %1352 = shalt.err (!%p1349_p0)
}
  0x33   : > { %s1568_s12 = smov 128   ;;  %s1569_s14 = smov 8  }
  0x34   : > { %1175 = dma.hbm_to_vmem [thread:$0]  (!%p1686_p11), %s2069_s1, 256, %s1679_s10, [#allocation7], %s1568_s12, %s1568_s12, %s1569_s14  }
  0x35   : > { %s1353_s20 = scalar_lea.hbm %s2054_s5, 80 }
  0x36   : > { %p1354_p1 = scmp.ne.s32.totalorder %s2054_s5, %s1353_s20  ;;  %p1360_p10 = scmp.lt.u32.totalorder %s1353_s20, %s2054_s5 }
  0x38   : > { %p1356_p2 = pnand %p1354_p1, %p1702_p13 }
  0x3a   : > { %p1357_p6 = pneg %p1356_p2 }
  0x3c   : > { %p1362_p3 = pnand %p1360_p10, %p1357_p6 }
  0x3e   : > { %1365 = shalt.err (!%p1362_p3)
}
  0x3f   : > { %s1366_s10 = scalar_lea.vmem %s1690_s13, 80  ;;  %s1373_s16 = scalar_lea.vmem %s1690_s13, 96 }
  0x40   : > { %p1367_p5 = scmp.ne.s32.totalorder %s1690_s13, %s1366_s10  ;;  %p1374_p12 = scmp.lt.s32.totalorder %s1690_s13, %s1690_s13 }
  0x41   : > { %p1375_p0 = scmp.lt.s32.totalorder %s1373_s16, %s1366_s10 }
  0x42   : > { %p1369_p7 = pnand %p1367_p5, %p1702_p13 }
  0x43   : > { %p1376_p1 = por %p1375_p0, %p1374_p12 }
  0x44   : > { %p1370_p9 = pneg %p1369_p7 }
  0x46   : > { %p1377_p2 = pnand %p1376_p1, %p1370_p9 }
  0x48   : > { %1380 = shalt.err (!%p1377_p2)
}
  0x49   : > { %1181 = dma.hbm_to_vmem [thread:$0]  (!%p1686_p11), %s2054_s5, 80, %s1690_s13, [#allocation10]  }
  0x4a   : > { %s2071_s2 = sld [smem:[#allocation21_spill]] }
  0x50   : > { %s1381_s20 = scalar_lea.hbm %s2071_s2, 256 }
  0x51   : > { %p1382_p6 = scmp.ne.s32.totalorder %s2071_s2, %s1381_s20  ;;  %p1388_p5 = scmp.lt.u32.totalorder %s1381_s20, %s2071_s2 }
  0x53   : > { %p1384_p10 = pnand %p1382_p6, %p1702_p13 }
  0x55   : > { %p1385_p3 = pneg %p1384_p10 }
  0x57   : > { %p1390_p7 = pnand %p1388_p5, %p1385_p3 }
  0x59   : > { %1393 = shalt.err (!%p1390_p7)
}
  0x5a   : > { %s1394_s16 = scalar_lea.vmem %s253_s15, 256  ;;  %p1402_p1 = scmp.lt.s32.totalorder %s253_s15, %s253_s15 }
  0x5b   : > { %p1395_p9 = scmp.ne.s32.totalorder %s253_s15, %s1394_s16  ;;  %p1403_p2 = scmp.lt.s32.totalorder %s1394_s16, %s1394_s16 }
  0x5d   : > { %p1397_p12 = pnand %p1395_p9, %p1702_p13  ;;  %p1404_p4 = por %p1403_p2, %p1402_p1 }
  0x5f   : > { %p1398_p0 = pneg %p1397_p12 }
  0x61   : > { %p1405_p8 = pnand %p1404_p4, %p1398_p0 }
  0x63   : > { %1408 = shalt.err (!%p1405_p8)
}
  0x64   : > { %1178 = dma.hbm_to_vmem [thread:$0]  (!%p1686_p11), %s2071_s2, 256, %s253_s15, [#allocation7], %s1568_s12, %s1568_s12, %s1569_s14  }
  0x65   : > { %s46_s21 = sadd.s32 1, %s1551_s25  ;;  %s36_s11 = sadd.s32 1, %s1559_s27 }
  0x66   : > { %p53_p4 = scmp.ne.s32.totalorder %s1551_s25, %s1547_s24  ;;  %p37_p8 = scmp.ge.s32.totalorder %s36_s11, 2 }
  0x67   : > { %p54_p13 = scmp.eq.s32.totalorder %s1563_s28, 0  ;;  %p2072_p6 = scmp.eq.s32.totalorder %s1656_s3, 1 }
  0x68   : > { %p1196_p3 = scmp.lt.s32.totalorder %s1563_s28, 2  ;;  %s2092_s11 = smov (%p37_p8, %s36_s11), 0 }
  0x69   : > { %p1779_p10 = por %p2072_p6, %p53_p4  ;;  %p55_p5 = por %p54_p13, %p53_p4 }
  0x6a   : > { %s280_s18 = sand.u32 1, %s1551_s25   ;;  %s43_s15 = ssub.s32 %s1559_s27, %s2092_s11 }
  0x6b   : > { %p44_p11 = scmp.eq.s32.totalorder %s43_s15, 0  ;;  %s1789_s12 = smul.u32 40, %s280_s18 }
  0x6c   : > { %s2060_s14 = smul.u32 640, %s1559_s27  ;;  %p1792_p7 = pnand %p1196_p3, %p55_p5 }
  0x6d   : > { %s1797_s20 = scalar_select %p44_p11, %s1551_s25, %s46_s21  }
  0x6e   : > { %s2075_s0 = sld [smem:[#allocation19_spill]]  ;;  %s284_s10 = scalar_lea.vmem [#allocation3], %s1789_s12 }
  0x6f   : > { %s291_s16 = sshll.u32 %s284_s10, 4  ;;  %s301_s13 = sand.u32 1, %s1563_s28   ;;  %s1807_s16 = int_to_ptr.vmem [resolvable:$true] %s291_s16 }
  0x70   : > { %s1810_s7 = scalar_lea.sflag [#allocation4], %s280_s18  ;;  %p1411_p12 = pneg %p1792_p7 }
  0x74   : > { %s1804_s9 = scalar_lea.hbm %s2075_s0, %s2060_s14  ;;  %s1414_s29 = scalar_lea.hbm %s2075_s0, 1280 }
  0x75   : > { %s1409_s15 = scalar_lea.hbm %s1804_s9, 640  ;;  %p1415_p2 = scmp.lt.u32.totalorder %s1804_s9, %s2075_s0 }
  0x76   : > { %p1410_p9 = scmp.ne.s32.totalorder %s1804_s9, %s1409_s15  ;;  %p1416_p4 = scmp.lt.u32.totalorder %s1414_s29, %s1409_s15 }
  0x77   : > { %p1418_p13 = scmp.lt.u32.totalorder %s1409_s15, %s1804_s9 }
  0x78   : > { %p1412_p0 = pnand %p1411_p12, %p1410_p9  ;;  %p1417_p8 = por %p1416_p4, %p1415_p2 }
  0x7a   : > { %p1413_p1 = pneg %p1412_p0  ;;  %p1419_p6 = por %p1418_p13, %p1417_p8 }
  0x7c   : > { %p1420_p3 = pnand %p1419_p6, %p1413_p1 }
  0x7e   : > { %1423 = shalt.err (!%p1420_p3)
}
  0x7f   : > { %s1424_s18 = scalar_lea.vmem %s1807_s16, 640  ;;  %s1570_s10 = smov [#allocation3]  }
  0x80   : > { %p1425_p5 = scmp.ne.s32.totalorder %s1807_s16, %s1424_s18  ;;  %s1429_s21 = sshll.u32 %s1570_s10, 4  ;;  %s1430_s21 = int_to_ptr.vmem [resolvable:$false] %s1429_s21 }
  0x81   : > { %s1431_s1 = scalar_lea.vmem %s1430_s21, 1280  ;;  %p1432_p0 = scmp.lt.s32.totalorder %s1807_s16, %s1430_s21 }
  0x82   : > { %p1427_p11 = pnand %p1425_p5, %p1411_p12  ;;  %p1433_p2 = scmp.lt.s32.totalorder %s1431_s1, %s1424_s18 }
  0x84   : > { %p1428_p9 = pneg %p1427_p11  ;;  %p1434_p4 = por %p1433_p2, %p1432_p0 }
  0x86   : > { %p1435_p8 = pnand %p1434_p4, %p1428_p9 }
  0x88   : > { %1438 = shalt.err (!%p1435_p8)
}
  0x89   : > { %s1571_s14 = smov 320   ;;  %s1572_s15 = smov 20  }
  0x8a   : > { %1185 = dma.hbm_to_vmem [thread:$0]  (!%p1792_p7), %s1804_s9, 640, %s1807_s16, %s1810_s7, %s1571_s14, %s1571_s14, %s1572_s15  }
  0x8b   : > { %s2076_s22 = smul.u32 640, %s1559_s27  ;;  %s305_s21 = scalar_lea.vmem [#allocation9], %s1789_s12 }
  0x8c   : > { %s315_s1 = sshll.u32 %s305_s21, 4  ;;  %s1853_s0 = scalar_lea.sflag [#allocation10], %s301_s13  ;;  %s1849_s1 = int_to_ptr.vmem [resolvable:$true] %s315_s1 }
  0x8d   : > { %s1846_s10 = scalar_lea.hbm %s2053_s4, %s2076_s22  ;;  %s1444_s7 = scalar_lea.hbm %s2053_s4, 1280 }
  0x8e   : > { %s1439_s2 = scalar_lea.hbm %s1846_s10, 640  ;;  %p1445_p3 = scmp.lt.u32.totalorder %s1846_s10, %s2053_s4 }
  0x8f   : > { %p1440_p1 = scmp.ne.s32.totalorder %s1846_s10, %s1439_s2  ;;  %p1446_p5 = scmp.lt.u32.totalorder %s1444_s7, %s1439_s2 }
  0x90   : > { %p1448_p9 = scmp.lt.u32.totalorder %s1439_s2, %s1846_s10 }
  0x91   : > { %p1442_p13 = pnand %p1440_p1, %p1411_p12  ;;  %p1447_p11 = por %p1446_p5, %p1445_p3 }
  0x93   : > { %p1443_p6 = pneg %p1442_p13  ;;  %p1449_p0 = por %p1448_p9, %p1447_p11 }
  0x95   : > { %p1450_p2 = pnand %p1449_p0, %p1443_p6 }
  0x97   : > { %1453 = shalt.err (!%p1450_p2)
}
  0x98   : > { %s1454_s12 = scalar_lea.vmem %s1849_s1, 640  ;;  %s1573_s13 = smov [#allocation9]  }
  0x99   : > { %p1455_p4 = scmp.ne.s32.totalorder %s1849_s1, %s1454_s12  ;;  %s1459_s18 = sshll.u32 %s1573_s13, 4  ;;  %s1460_s18 = int_to_ptr.vmem [resolvable:$false] %s1459_s18 }
  0x9a   : > { %s1461_s21 = scalar_lea.vmem %s1460_s18, 1280  ;;  %p1462_p13 = scmp.lt.s32.totalorder %s1849_s1, %s1460_s18 }
  0x9b   : > { %p1457_p8 = pnand %p1455_p4, %p1411_p12  ;;  %p1463_p3 = scmp.lt.s32.totalorder %s1461_s21, %s1454_s12 }
  0x9d   : > { %p1458_p1 = pneg %p1457_p8  ;;  %p1464_p5 = por %p1463_p3, %p1462_p13 }
  0x9f   : > { %p1465_p11 = pnand %p1464_p5, %p1458_p1 }
  0xa1   : > { %1468 = shalt.err (!%p1465_p11)
}
  0xa2   : > { %1188 = dma.hbm_to_vmem [thread:$0]  (!%p1792_p7), %s1846_s10, 640, %s1849_s1, %s1853_s0, %s1571_s14, %s1571_s14, %s1572_s15  }
  0xa3   : > { %p2077_p12 = scmp.ne.s32.totalorder %s2067_s8, 0 }
  0xa4   : > { %s1885_s2 = sand.u32 (!%p2077_p12), 1, %s1547_s24   ;;  %p2078_p6 = scmp.ne.s32.totalorder (!%p2077_p12), %s2064_s30, 0 }
  0xa5   : > { %327 = sbr.rel (%p2077_p12) target bundleno = 867 (0x363), region = 44  ;;  %s330_s19 = scalar_lea.sflag (!%p2077_p12), [#allocation4], %s1885_s2 }
  0xa6   : > { %s1888_s9 = smul.u32 (!%p2077_p12), 40, %s1885_s2 }
  0xa8   : > { %s333_s16 = scalar_lea.vmem (!%p2077_p12), [#allocation3], %s1888_s9 }
  0xac   : > { %1522 = dma.done.wait (%p2078_p6), %s330_s19, 640  }
  0xad   : > { %1524 = vsyncadd (%p2078_p6), %s330_s19, 4294966656  ;;  %p2079_p7 = scmp.eq.s32.totalorder %s1656_s3, 0 }
  0xaf   : > { %1526 = dma.done.wait (%p2079_p7), [#allocation7], 512   ;;  %p2080_p9 = pmov %p2079_p7 }
  0xb0   : > { %s346_s0 = sand.u32 1, %s1656_s3   ;;  %s1902_s14 = scalar_lea.vmem [#allocation9], %s1888_s9 }
  0xb1   : > { %1528 = vsyncadd (%p2080_p9), [#allocation7], 4294966784  ;;  %s347_s8 = scalar_lea.sflag [#allocation10], %s346_s0 }
  0xb2   : > { %1530 = dma.done.wait (%p2078_p6), %s347_s8, 640  }
  0xb3   : > { %1532 = vsyncadd (%p2078_p6), %s347_s8, 4294966656  ;;  %p2081_p0 = pmov %p2079_p7 }
  0xb5   : > { %1534 = dma.done.wait (%p2081_p0), [#allocation10], 80   ;;  %p2082_p2 = pmov %p2081_p0 }
  0xb6   : > { %v1315_v0 = vld [vmem:[%s333_s16 + $0xc] ss:$20 sps:$4 sm:$0xff]   ;;  %v1317_v1 = vld [vmem:[%s333_s16 + $0x4] ss:$20 sps:$4 sm:$0xff]   ;;  %s1574_s15 = smov 127   ;;  %s1575_s30 = smov 126  }
  0xb7   : > { %1536 = vsyncadd (%p2082_p2), [#allocation10], 4294967216  ;;  %457 = vrot.lane.b32.xlu1 %v1315_v0, %s1574_s15  ;;  %v1912_v2 = vld [vmem:[%s333_s16 + $0x10] ss:$20 sps:$4 sm:$0xff]   ;;  %669 = vmatprep.subr.bf16.mxu1 %v1315_v0  ;;  %v1320_v3 = vld [vmem:[%s333_s16 + $0x8] ss:$20 sps:$4 sm:$0xff]  }
  0xb8   : > { %453 = vrot.lane.b32.xlu0 %v1317_v1, %s1574_s15  ;;  %v1321_v4 = vld [vmem:[%s333_s16] ss:$20 sps:$4 sm:$0xff]   ;;  %626 = vmatprep.subr.bf16.mxu0 %v1317_v1  ;;  %s1576_s3 = smov 108   ;;  %s1577_s10 = smov 107   ;;  %vm622_vm0 = vcmask 130048   ;;  %v1582_v6 = vmov 0  }
  0xb9   : > { %670 = vmatpush1.bf16.msra.mxu1 %v1320_v3  ;;  %627 = vmatpush1.bf16.msra.mxu0 %v1321_v4  ;;  %s1578_s1 = smov 106   ;;  %s1579_s7 = smov 88   ;;  %v1324_v5 = vld [vmem:[#allocation6 + $0x4] ss:$8 sps:$4 sm:$0xff]   ;;  %v396_v11 = vld [vmem:[#allocation8 + $0x8] sm:$0xff]  ;;  %v395_v16 = vld [vmem:[#allocation8] sm:$0xff] }
  0xba   : > { %s1580_s22 = smov 87   ;;  %1131 = vmatprep.mubr.msk.bf16.mxu0 %vm622_vm0, %v1324_v5  ;;  %1132 = vmatprep.mubr.msk.bf16.mxu1 %vm622_vm0, %v1324_v5  ;;  %s1581_s29 = smov 86   ;;  %v737_v7 = vld [vmem:[%s1902_s14] sm:$0xff]  ;;  %v738_v8 = vld [vmem:[%s1902_s14 + $0x8] sm:$0xff]  ;;  %v740_v15 = vld [vmem:[%s1902_s14 + $0x14] sm:$0xff]  ;;  %vm461_vm1 = vcmask 1039360  }
  0xbb   : > { %459 = vrot.lane.b32.xlu1 %v1912_v2, %s1574_s15  ;;  %s1924_s12 = scalar_lea.vmem [#allocation12], %s1888_s9  ;;  %1268 = vset.pattern.permute.xlu0 %v1582_v6  ;;  %v743_v9 = vunpack.c.l.bf16 %v737_v7  ;;  %v744_v10 = vunpack.c.h.bf16 %v737_v7  ;;  %v745_v12 = vunpack.c.l.bf16 %v738_v8  ;;  %v746_v13 = vunpack.c.h.bf16 %v738_v8  ;;  %v739_v14 = vld [vmem:[%s1902_s14 + $0x10] ss:$20 sps:$4 sm:$0xff]   ;;  %v741_v17 = vld [vmem:[%s1902_s14 + $0x1c] sm:$0xff]  ;;  %s397_s13 = sld [smem:[#allocation2]] }
  0xbc   : > { %455 = vrot.lane.b32.xlu0 %v1320_v3, %s1574_s15  ;;  %1269 = vset.pattern.permute.xlu1 %v1582_v6  ;;  %398 = vst [vmem:[%s1924_s12] sm:$0xf] %v1582_v6  ;;  %399 = vst [vmem:[%s1924_s12 + $0x14] sm:$0xf] %v1582_v6  ;;  %v747_v19 = vunpack.c.l.bf16 %v739_v14  ;;  %v748_v20 = vunpack.c.l.bf16 %v740_v15  ;;  %v749_v22 = vunpack.c.h.bf16 %v740_v15  ;;  %v750_v23 = vunpack.c.l.bf16 %v741_v17  ;;  %s1583_s18 = smov 42   ;;  %s1153_s21 = smul.u32 640, %s1555_s26 }
  0xbd   : > { %v1270_v18 = vpack.i.bf16 %v744_v10, %v743_v9  ;;  %v1275_v21 = vpack.i.bf16 %v746_v13, %v745_v12  ;;  %v751_v25 = vunpack.c.h.bf16 %v741_v17  ;;  %v752_v26 = vunpack.c.h.bf16 %v739_v14  ;;  %s965_s9 = sshll.u32 %s1924_s12, 4  ;;  %s949_s26 = scalar_lea.sflag [#allocation5], %s1885_s2  ;;  %s1996_s9 = int_to_ptr.vmem [resolvable:$true] %s965_s9 }
  0xbe   : > { %v1280_v24 = vpack.i.bf16 %v748_v20, %v747_v19  ;;  %v1285_v27 = vpack.i.bf16 %v750_v23, %v749_v22  ;;  %vm480_vm2 = vcmask 1031168   ;;  %vm499_vm3 = vcmask 883712   ;;  %s1994_s0 = scalar_lea.hbm %s2055_s6, %s1153_s21  ;;  %s1469_s8 = scalar_lea.vmem %s1996_s9, 640 }
  0xbf   : > { %472 = vrot.lane.b32.xlu1 %v1317_v1, %s1575_s30  ;;  %v1290_v28 = vpack.i.bf16 %v752_v26, %v751_v25  ;;  %vm518_vm4 = vcmask 875520   ;;  %vm537_vm5 = vcmask 867328   ;;  %vm556_vm6 = vcmask 719872   ;;  %p1470_p4 = scmp.ne.s32.totalorder %s1996_s9, %s1469_s8  ;;  %s1584_s14 = smov [#allocation12]  }
  0xc0   : > { %451 = vrot.lane.b32.xlu0 %v1321_v4, %s1574_s15  ;;  %vm575_vm7 = vcmask 711680   ;;  %vm594_vm8 = vcmask 703488   ;;  %s1473_s15 = sshll.u32 %s1584_s14, 4  ;;  %s1474_s15 = int_to_ptr.vmem [resolvable:$false] %s1473_s15 }
  0xc1   : > { %p1471_p8 = pnand %p1470_p4, %p1779_p10  ;;  %p1476_p13 = scmp.lt.s32.totalorder %s1996_s9, %s1474_s15 }
  0xc3   : > { %476 = vrot.lane.b32.xlu1 %v1315_v0, %s1575_s30  ;;  %p1472_p1 = pneg %p1471_p8 }
  0xc4   : > { %474 = vrot.lane.b32.xlu0 %v1320_v3, %s1575_s30 }
  0xc7   : > { %470 = vrot.lane.b32.xlu1 %v1321_v4, %s1575_s30 }
  0xc8   : > { %478 = vrot.lane.b32.xlu0 %v1912_v2, %s1575_s30  ;;  %s1475_s30 = scalar_lea.vmem %s1474_s15, 1280 }
  0xc9   : > { %p1477_p3 = scmp.lt.s32.totalorder %s1475_s30, %s1469_s8 }
  0xcb   : > { %493 = vrot.lane.b32.xlu1 %v1320_v3, %s1576_s3  ;;  %p1478_p5 = por %p1477_p3, %p1476_p13 }
  0xcc   : > { %491 = vrot.lane.b32.xlu0 %v1317_v1, %s1576_s3 }
  0xcd   : > { %p1479_p11 = pnand %p1478_p5, %p1472_p1 }
  0xcf   : > { %497 = vrot.lane.b32.xlu1 %v1912_v2, %s1576_s3 }
  0xd0   : > { %495 = vrot.lane.b32.xlu0 %v1315_v0, %s1576_s3 }
  0xd3   : > { %510 = vrot.lane.b32.xlu1 %v1317_v1, %s1577_s10 }
  0xd4   : > { %489 = vrot.lane.b32.xlu0 %v1321_v4, %s1576_s3 }
  0xd7   : > { %514 = vrot.lane.b32.xlu1 %v1315_v0, %s1577_s10 }
  0xd8   : > { %512 = vrot.lane.b32.xlu0 %v1320_v3, %s1577_s10 }
  0xdb   : > { %508 = vrot.lane.b32.xlu1 %v1321_v4, %s1577_s10 }
  0xdc   : > { %516 = vrot.lane.b32.xlu0 %v1912_v2, %s1577_s10 }
  0xdf   : > { %531 = vrot.lane.b32.xlu1 %v1320_v3, %s1578_s1 }
  0xe0   : > { %529 = vrot.lane.b32.xlu0 %v1317_v1, %s1578_s1 }
  0xe3   : > { %535 = vrot.lane.b32.xlu1 %v1912_v2, %s1578_s1 }
  0xe4   : > { %533 = vrot.lane.b32.xlu0 %v1315_v0, %s1578_s1 }
  0xe7   : > { %548 = vrot.lane.b32.xlu1 %v1317_v1, %s1579_s7 }
  0xe8   : > { %527 = vrot.lane.b32.xlu0 %v1321_v4, %s1578_s1 }
  0xeb   : > { %552 = vrot.lane.b32.xlu1 %v1315_v0, %s1579_s7 }
  0xec   : > { %550 = vrot.lane.b32.xlu0 %v1320_v3, %s1579_s7 }
  0xef   : > { %546 = vrot.lane.b32.xlu1 %v1321_v4, %s1579_s7 }
  0xf0   : > { %554 = vrot.lane.b32.xlu0 %v1912_v2, %s1579_s7 }
  0xf3   : > { %569 = vrot.lane.b32.xlu1 %v1320_v3, %s1580_s22 }
  0xf4   : > { %567 = vrot.lane.b32.xlu0 %v1317_v1, %s1580_s22 }
  0xf7   : > { %573 = vrot.lane.b32.xlu1 %v1912_v2, %s1580_s22 }
  0xf8   : > { %571 = vrot.lane.b32.xlu0 %v1315_v0, %s1580_s22 }
  0xfb   : > { %586 = vrot.lane.b32.xlu1 %v1317_v1, %s1581_s29 }
  0xfc   : > { %565 = vrot.lane.b32.xlu0 %v1321_v4, %s1580_s22 }
  0xff   : > { %590 = vrot.lane.b32.xlu1 %v1315_v0, %s1581_s29 }
 0x100   : > { %588 = vrot.lane.b32.xlu0 %v1320_v3, %s1581_s29 }
 0x103   : > { %584 = vrot.lane.b32.xlu1 %v1321_v4, %s1581_s29 }
 0x104   : > { %592 = vrot.lane.b32.xlu0 %v1912_v2, %s1581_s29 }
 0x107   : > { %610 = vperm.xlu1 %1269, %v396_v11  }
 0x108   : > { %605 = vperm.xlu0 %1268, %v395_v16  }
 0x10b   : > { %1271 = vrot.lane.b32.xlu1 %v1270_v18, %s1581_s29 }
 0x10c   : > { %1276 = vrot.lane.b32.xlu0 %v1275_v21, %s1581_s29 }
 0x10f   : > { %1281 = vrot.lane.b32.xlu1 %v1280_v24, %s1581_s29 }
 0x110   : > { %1286 = vrot.lane.b32.xlu0 %v1285_v27, %s1581_s29 }
 0x113   : > { %1291 = vrot.lane.b32.xlu1 %v1290_v28, %s1581_s29 }
 0x129   : > { %v458_v29 = vpop.permute.xlu1 %457 }
 0x12a   : > { %v454_v30 = vpop.permute.xlu0 %453 }
 0x12d   : > { %v460_v31 = vpop.permute.xlu1 %459 }
 0x12e   : > { %v456_v32 = vpop.permute.xlu0 %455  ;;  %v465_v33 = vsel %vm461_vm1, %v458_v29, %v460_v31 }
 0x12f   : > { %v463_v34 = vsel %vm461_vm1, %v454_v30, %v456_v32  ;;  %671 = vmatprep.subr.bf16.mxu1 %v465_v33  ;;  %v464_v35 = vsel %vm461_vm1, %v456_v32, %v458_v29 }
 0x130   : > { %628 = vmatprep.subr.bf16.mxu0 %v463_v34  ;;  %672 = vmatpush1.bf16.msra.mxu1 %v464_v35 }
 0x131   : > { %v473_v36 = vpop.permute.xlu1 %472 }
 0x132   : > { %v452_v37 = vpop.permute.xlu0 %451 }
 0x133   : > { %v462_v38 = vsel %vm461_vm1, %v452_v37, %v454_v30 }
 0x134   : > { %629 = vmatpush1.bf16.msra.mxu0 %v462_v38 }
 0x135   : > { %v477_v39 = vpop.permute.xlu1 %476 }
 0x136   : > { %v475_v40 = vpop.permute.xlu0 %474 }
 0x137   : > { %v482_v41 = vsel %vm480_vm2, %v473_v36, %v475_v40  ;;  %v483_v46 = vsel %vm480_vm2, %v475_v40, %v477_v39 }
 0x138   : > { %630 = vmatprep.subr.bf16.mxu0 %v482_v41 }
 0x139   : > { %v471_v42 = vpop.permute.xlu1 %470 }
 0x13a   : > { %v479_v43 = vpop.permute.xlu0 %478  ;;  %v481_v44 = vsel %vm480_vm2, %v471_v42, %v473_v36  ;;  %v1322_v36 = vld [vmem:[#allocation6] ss:$8 sps:$4 sm:$0xff]  }
 0x13b   : > { %631 = vmatpush1.bf16.msra.mxu0 %v481_v44  ;;  %v484_v45 = vsel %vm480_vm2, %v477_v39, %v479_v43  ;;  %vm860_vm2 = vcmask 343040  }
 0x13c   : > { %673 = vmatprep.subr.bf16.mxu1 %v484_v45 }
 0x13d   : > { %674 = vmatpush1.bf16.msra.mxu1 %v483_v46  ;;  %v494_v47 = vpop.permute.xlu1 %493 }
 0x13e   : > { %v492_v48 = vpop.permute.xlu0 %491 }
 0x13f   : > { %v501_v49 = vsel %vm499_vm3, %v492_v48, %v494_v47 }
 0x140   : > { %632 = vmatprep.subr.bf16.mxu0 %v501_v49 }
 0x141   : > { %v498_v50 = vpop.permute.xlu1 %497 }
 0x142   : > { %v496_v51 = vpop.permute.xlu0 %495 }
 0x143   : > { %v503_v52 = vsel %vm499_vm3, %v496_v51, %v498_v50  ;;  %v502_v53 = vsel %vm499_vm3, %v494_v47, %v496_v51 }
 0x144   : > { %675 = vmatprep.subr.bf16.mxu1 %v503_v52 }
 0x145   : > { %676 = vmatpush1.bf16.msra.mxu1 %v502_v53  ;;  %v511_v54 = vpop.permute.xlu1 %510 }
 0x146   : > { %v490_v55 = vpop.permute.xlu0 %489 }
 0x147   : > { %v500_v56 = vsel %vm499_vm3, %v490_v55, %v492_v48 }
 0x148   : > { %633 = vmatpush1.bf16.msra.mxu0 %v500_v56 }
 0x149   : > { %v515_v57 = vpop.permute.xlu1 %514 }
 0x14a   : > { %v513_v58 = vpop.permute.xlu0 %512 }
 0x14b   : > { %v520_v59 = vsel %vm518_vm4, %v511_v54, %v513_v58  ;;  %v521_v0 = vsel %vm518_vm4, %v513_v58, %v515_v57 }
 0x14c   : > { %634 = vmatprep.subr.bf16.mxu0 %v520_v59  ;;  %v720_v59 = vstv %s397_s13 }
 0x14d   : > { %v509_v60 = vpop.permute.xlu1 %508 }
 0x14e   : > { %v517_v61 = vpop.permute.xlu0 %516  ;;  %v519_v62 = vsel %vm518_vm4, %v509_v60, %v511_v54 }
 0x14f   : > { %635 = vmatpush1.bf16.msra.mxu0 %v519_v62  ;;  %v522_v63 = vsel %vm518_vm4, %v515_v57, %v517_v61 }
 0x150   : > { %677 = vmatprep.subr.bf16.mxu1 %v522_v63 }
 0x151   : > { %678 = vmatpush1.bf16.msra.mxu1 %v521_v0  ;;  %v532_v1 = vpop.permute.xlu1 %531 }
 0x152   : > { %v530_v2 = vpop.permute.xlu0 %529 }
 0x153   : > { %v539_v3 = vsel %vm537_vm5, %v530_v2, %v532_v1 }
 0x154   : > { %636 = vmatprep.subr.bf16.mxu0 %v539_v3 }
 0x155   : > { %v536_v4 = vpop.permute.xlu1 %535 }
 0x156   : > { %v534_v5 = vpop.permute.xlu0 %533 }
 0x157   : > { %v541_v7 = vsel %vm537_vm5, %v534_v5, %v536_v4  ;;  %v540_v8 = vsel %vm537_vm5, %v532_v1, %v534_v5 }
 0x158   : > { %679 = vmatprep.subr.bf16.mxu1 %v541_v7 }
 0x159   : > { %680 = vmatpush1.bf16.msra.mxu1 %v540_v8  ;;  %v549_v9 = vpop.permute.xlu1 %548 }
 0x15a   : > { %v528_v10 = vpop.permute.xlu0 %527 }
 0x15b   : > { %v538_v11 = vsel %vm537_vm5, %v528_v10, %v530_v2 }
 0x15c   : > { %637 = vmatpush1.bf16.msra.mxu0 %v538_v11 }
 0x15d   : > { %v553_v12 = vpop.permute.xlu1 %552 }
 0x15e   : > { %v551_v13 = vpop.permute.xlu0 %550 }
 0x15f   : > { %v558_v14 = vsel %vm556_vm6, %v549_v9, %v551_v13  ;;  %v559_v19 = vsel %vm556_vm6, %v551_v13, %v553_v12 }
 0x160   : > { %638 = vmatprep.subr.bf16.mxu0 %v558_v14 }
 0x161   : > { %v547_v15 = vpop.permute.xlu1 %546 }
 0x162   : > { %v555_v16 = vpop.permute.xlu0 %554  ;;  %v557_v17 = vsel %vm556_vm6, %v547_v15, %v549_v9 }
 0x163   : > { %639 = vmatpush1.bf16.msra.mxu0 %v557_v17  ;;  %v560_v18 = vsel %vm556_vm6, %v553_v12, %v555_v16 }
 0x164   : > { %681 = vmatprep.subr.bf16.mxu1 %v560_v18 }
 0x165   : > { %682 = vmatpush1.bf16.msra.mxu1 %v559_v19  ;;  %v570_v20 = vpop.permute.xlu1 %569 }
 0x166   : > { %v568_v21 = vpop.permute.xlu0 %567 }
 0x167   : > { %v577_v22 = vsel %vm575_vm7, %v568_v21, %v570_v20 }
 0x168   : > { %640 = vmatprep.subr.bf16.mxu0 %v577_v22 }
 0x169   : > { %v574_v23 = vpop.permute.xlu1 %573 }
 0x16a   : > { %v572_v24 = vpop.permute.xlu0 %571 }
 0x16b   : > { %v579_v25 = vsel %vm575_vm7, %v572_v24, %v574_v23  ;;  %v578_v26 = vsel %vm575_vm7, %v570_v20, %v572_v24 }
 0x16c   : > { %683 = vmatprep.subr.bf16.mxu1 %v579_v25 }
 0x16d   : > { %684 = vmatpush1.bf16.msra.mxu1 %v578_v26  ;;  %v587_v27 = vpop.permute.xlu1 %586 }
 0x16e   : > { %v566_v28 = vpop.permute.xlu0 %565 }
 0x16f   : > { %v576_v29 = vsel %vm575_vm7, %v566_v28, %v568_v21 }
 0x170   : > { %641 = vmatpush1.bf16.msra.mxu0 %v576_v29 }
 0x171   : > { %v591_v30 = vpop.permute.xlu1 %590 }
 0x172   : > { %v589_v31 = vpop.permute.xlu0 %588 }
 0x173   : > { %v596_v32 = vsel %vm594_vm8, %v587_v27, %v589_v31  ;;  %v597_v38 = vsel %vm594_vm8, %v589_v31, %v591_v30 }
 0x174   : > { %642 = vmatprep.subr.bf16.mxu0 %v596_v32 }
 0x175   : > { %v585_v33 = vpop.permute.xlu1 %584 }
 0x176   : > { %v593_v34 = vpop.permute.xlu0 %592  ;;  %v595_v35 = vsel %vm594_vm8, %v585_v33, %v587_v27 }
 0x177   : > { %643 = vmatpush1.bf16.msra.mxu0 %v595_v35  ;;  %v598_v37 = vsel %vm594_vm8, %v591_v30, %v593_v34 }
 0x178   : > { %685 = vmatprep.subr.bf16.mxu1 %v598_v37 }
 0x179   : > { %686 = vmatpush1.bf16.msra.mxu1 %v597_v38 }
 0x17a   : > { %659 = vmatmul.mubr.bf16.vlgmr.msra.gmra.mrb[0].mxu0 %v1322_v36 }
 0x17c   : > { %702 = vmatmul.mubr.bf16.vlgmr.msra.gmra.mrb[0].mxu1 %v1322_v36 }
 0x186   : > { %v611_v39 = vpop.permute.xlu1 %610 }
 0x187   : > { %v606_v40 = vpop.permute.xlu0 %605 }
 0x18a   : > { %v1272_v41 = vpop.permute.xlu1 %1271 }
 0x18b   : > { %v1277_v42 = vpop.permute.xlu0 %1276  ;;  %v1274_v46 = vunpack.i.h.bf16 %v1272_v41  ;;  %v1273_v47 = vunpack.i.l.bf16 %v1272_v41 }
 0x18c   : > { %v1278_v48 = vunpack.i.l.bf16 %v1277_v42  ;;  %v1279_v49 = vunpack.i.h.bf16 %v1277_v42 }
 0x18d   : > { %v784_v56 = vsel %vm594_vm8, %v1273_v47, %v1274_v46  ;;  %v808_v47 = vld [vmem:[#allocation11] sm:$0x1f] }
 0x18e   : > { %v1282_v43 = vpop.permute.xlu1 %1281  ;;  %v785_v57 = vsel %vm594_vm8, %v1274_v46, %v1278_v48  ;;  %v786_v60 = vsel %vm594_vm8, %v1278_v48, %v1279_v49  ;;  %v811_v46 = vlaneseq  ;;  %vm809_vm1 = vcmp.gt.f32.partialorder %v808_v47, 0.0 }
 0x18f   : > { %v1287_v44 = vpop.permute.xlu0 %1286  ;;  %v1284_v50 = vunpack.i.h.bf16 %v1282_v43  ;;  %v1283_v51 = vunpack.i.l.bf16 %v1282_v43 }
 0x190   : > { %v1288_v52 = vunpack.i.l.bf16 %v1287_v44  ;;  %v1289_v53 = vunpack.i.h.bf16 %v1287_v44  ;;  %v812_v48 = vshrl.u32 %v811_v46, 7 }
 0x191   : > { %v787_v62 = vsel %vm594_vm8, %v1279_v49, %v1283_v51  ;;  %v810_v51 = vsel %vm809_vm1, 1, %v1582_v6 }
 0x192   : > { %v1292_v45 = vpop.permute.xlu1 %1291  ;;  %v788_v0 = vsel %vm594_vm8, %v1284_v50, %v1288_v52  ;;  %v789_v4 = vsel %vm594_vm8, %v1288_v52, %v1289_v53  ;;  %v813_v49 = vsub.s32 0, %v812_v48  ;;  %v829_v50 = vsub.s32 4, %v812_v48 }
 0x193   : > { %v1294_v54 = vunpack.i.h.bf16 %v1292_v45  ;;  %v1293_v55 = vunpack.i.l.bf16 %v1292_v45  ;;  %v821_v52 = vsub.s32 2, %v812_v48 }
 0x195   : > { %v790_v5 = vsel %vm594_vm8, %v1289_v53, %v1293_v55  ;;  %v791_v7 = vsel %vm594_vm8, %v1293_v55, %v1294_v54  ;;  %v825_v53 = vsub.s32 3, %v812_v48  ;;  %v817_v54 = vsub.s32 1, %v812_v48 }
 0x196   : > { %v814_v55 = vrot.slane %v810_v51, %v813_v49 }
 0x198   : > { %vm831_vm3 = vcmp.eq.s32.totalorder %v814_v55, 1 }
 0x24d   : > { %v660_v58 = vpop.f32.mrb[0].mxu0 }
 0x24e   : > { %v661_v61 = vadd.f32 %v660_v58, %v606_v40  ;;  %v662_v63 = vpop.f32.mrb[1].mxu0  ;;  %v826_v58 = vrot.slane %v810_v51, %v825_v53 }
 0x24f   : > { %v663_v1 = vadd.f32 %v662_v63, %v606_v40  ;;  %v703_v2 = vpop.f32.mrb[0].mxu1  ;;  %v664_v3 = vpop.f32.mrb[2].mxu0 }
 0x250   : > { %vm712_vm9 = vcmp.ge.f32.partialorder %v661_v61, 0.0  ;;  %v721_v8 = vmul.f32 %v720_v59, %v661_v61  ;;  %v704_v9 = vadd.f32 %v703_v2, %v606_v40  ;;  %v665_v10 = vadd.f32 %v664_v3, %v611_v39  ;;  %v705_v11 = vpop.f32.mrb[1].mxu1  ;;  %v666_v12 = vpop.f32.mrb[3].mxu0 }
 0x251   : > { %vm713_vm10 = vcmp.ge.f32.partialorder %v663_v1, 0.0  ;;  %v722_v13 = vmul.f32 %v720_v59, %v663_v1  ;;  %v706_v14 = vadd.f32 %v705_v11, %v606_v40  ;;  %v667_v15 = vadd.f32 %v666_v12, %v611_v39  ;;  %v707_v16 = vpop.f32.mrb[2].mxu1 }
 0x252   : > { %v729_v17 = vsel %vm712_vm9, %v661_v61, %v721_v8  ;;  %vm714_vm11 = vcmp.ge.f32.partialorder %v704_v9, 0.0  ;;  %v723_v18 = vmul.f32 %v720_v59, %v704_v9  ;;  %vm716_vm12 = vcmp.ge.f32.partialorder %v665_v10, 0.0  ;;  %v709_v19 = vpop.f32.mrb[3].mxu1 }
 0x253   : > { %v730_v20 = vsel %vm713_vm10, %v663_v1, %v722_v13  ;;  %v725_v21 = vmul.f32 %v720_v59, %v665_v10  ;;  %vm715_vm13 = vcmp.ge.f32.partialorder %v706_v14, 0.0  ;;  %v724_v22 = vmul.f32 %v720_v59, %v706_v14 }
 0x254   : > { %v731_v23 = vsel %vm714_vm11, %v704_v9, %v723_v18  ;;  %vm717_vm14 = vcmp.ge.f32.partialorder %v667_v15, 0.0  ;;  %v726_v24 = vmul.f32 %v720_v59, %v667_v15  ;;  %v708_v25 = vadd.f32 %v707_v16, %v611_v39 }
 0x255   : > { %v733_v26 = vsel %vm716_vm12, %v665_v10, %v725_v21  ;;  %v732_v27 = vsel %vm715_vm13, %v706_v14, %v724_v22  ;;  %v710_v28 = vadd.f32 %v709_v19, %v611_v39  ;;  %v800_v29 = vsub.f32 %v729_v17, %v784_v56 }
 0x256   : > { %v734_v30 = vsel %vm717_vm14, %v667_v15, %v726_v24  ;;  %vm718_vm15 = vcmp.ge.f32.partialorder %v708_v25, 0.0  ;;  %v727_v31 = vmul.f32 %v720_v59, %v708_v25  ;;  %v801_v32 = vsub.f32 %v730_v20, %v785_v57 }
 0x257   : > { %vm719_vm0 = vcmp.ge.f32.partialorder %v710_v28, 0.0  ;;  %v728_v33 = vmul.f32 %v720_v59, %v710_v28  ;;  %v802_v34 = vsub.f32 %v731_v23, %v786_v60  ;;  %v803_v35 = vsub.f32 %v732_v27, %v787_v62 }
 0x258   : > { %v735_v36 = vsel %vm718_vm15, %v708_v25, %v727_v31  ;;  %v1295_v37 = vpack.i.bf16 %v801_v32, %v800_v29  ;;  %v804_v38 = vsub.f32 %v733_v26, %v788_v0  ;;  %v805_v40 = vsub.f32 %v734_v30, %v789_v4 }
 0x259   : > { %v736_v41 = vsel %vm719_vm0, %v710_v28, %v728_v33  ;;  %v1300_v42 = vpack.i.bf16 %v803_v35, %v802_v34  ;;  %v806_v43 = vsub.f32 %v735_v36, %v790_v5  ;;  %v830_v56 = vrot.slane %v810_v51, %v829_v50 }
 0x25a   : > { %1296 = vrot.lane.b32.xlu0 %v1295_v37, %s1583_s18  ;;  %v1305_v44 = vpack.i.bf16 %v805_v40, %v804_v38  ;;  %v807_v39 = vsub.f32 %v736_v41, %v791_v7  ;;  %v822_v57 = vrot.slane %v810_v51, %v821_v52  ;;  %v818_v59 = vrot.slane %v810_v51, %v817_v54 }
 0x25b   : > { %1301 = vrot.lane.b32.xlu1 %v1300_v42, %s1583_s18  ;;  %vm835_vm4 = vcmp.eq.s32.totalorder %v830_v56, 1  ;;  %vm834_vm6 = vcmp.eq.s32.totalorder %v826_v58, 1  ;;  %vm931_vm9 = vcmask 1043456  }
 0x25c   : > { %v1310_v45 = vpack.i.bf16 %v807_v39, %v806_v43  ;;  %vm833_vm5 = vcmp.eq.s32.totalorder %v822_v57, 1  ;;  %vm832_vm7 = vcmp.eq.s32.totalorder %v818_v59, 1 }
 0x25e   : > { %1306 = vrot.lane.b32.xlu0 %v1305_v44, %s1583_s18 }
 0x25f   : > { %1311 = vrot.lane.b32.xlu1 %v1310_v45, %s1583_s18 }
 0x2cc   : > { %v1297_v60 = vpop.permute.xlu0 %1296 }
 0x2cd   : > { %v1299_v61 = vunpack.i.h.bf16 %v1297_v60  ;;  %v1298_v62 = vunpack.i.l.bf16 %v1297_v60  ;;  %v1302_v63 = vpop.permute.xlu1 %1301 }
 0x2ce   : > { %v1304_v0 = vunpack.i.h.bf16 %v1302_v63  ;;  %v1303_v1 = vunpack.i.l.bf16 %v1302_v63 }
 0x2cf   : > { %v861_v6 = vsel %vm860_vm2, %v1298_v62, %v1299_v61  ;;  %v877_v2 = vsel %vm831_vm3, %v1298_v62, 0.0 }
 0x2d0   : > { %v881_v3 = vsel %vm835_vm4, %v1304_v0, 0.0  ;;  %v1307_v4 = vpop.permute.xlu0 %1306  ;;  %v862_v5 = vsel %vm860_vm2, %v1299_v61, %v1303_v1  ;;  %v863_v7 = vsel %vm860_vm2, %v1303_v1, %v1304_v0  ;;  %v878_v16 = vsel %vm832_vm7, %v861_v6, 0.0 }
 0x2d1   : > { %v1309_v8 = vunpack.i.h.bf16 %v1307_v4  ;;  %v1308_v9 = vunpack.i.l.bf16 %v1307_v4  ;;  %v1312_v10 = vpop.permute.xlu1 %1311  ;;  %v1144_v11 = vpack.c.bf16 %v881_v3, %v881_v3  ;;  %v879_v12 = vsel %vm833_vm5, %v862_v5, 0.0 }
 0x2d2   : > { %v1314_v13 = vunpack.i.h.bf16 %v1312_v10  ;;  %v1313_v14 = vunpack.i.l.bf16 %v1312_v10  ;;  %v880_v15 = vsel %vm834_vm6, %v863_v7, 0.0  ;;  %v1142_v23 = vpack.c.bf16 %v878_v16, %v877_v2 }
 0x2d3   : > { %v882_v17 = vsel %vm831_vm3, %v1308_v9, 0.0  ;;  %917 = vrot.lane.b32.xlu0 %v1144_v11, %s1581_s29  ;;  %v1143_v18 = vpack.c.bf16 %v880_v15, %v879_v12  ;;  %v864_v19 = vsel %vm860_vm2, %v1308_v9, %v1309_v8 }
 0x2d4   : > { %v883_v20 = vsel %vm832_vm7, %v864_v19, 0.0  ;;  %v865_v21 = vsel %vm860_vm2, %v1309_v8, %v1313_v14  ;;  %v866_v22 = vsel %vm860_vm2, %v1313_v14, %v1314_v13  ;;  %v886_v27 = vsel %vm835_vm4, %v1314_v13, 0.0 }
 0x2d5   : > { %915 = vrot.lane.b32.xlu1 %v1143_v18, %s1581_s29  ;;  %v1145_v24 = vpack.c.bf16 %v883_v20, %v882_v17  ;;  %v884_v25 = vsel %vm833_vm5, %v865_v21, 0.0  ;;  %v885_v26 = vsel %vm834_vm6, %v866_v22, 0.0  ;;  %v1147_v29 = vpack.c.bf16 %v886_v27, %v886_v27 }
 0x2d6   : > { %v1146_v28 = vpack.c.bf16 %v885_v26, %v884_v25 }
 0x2d7   : > { %913 = vrot.lane.b32.xlu0 %v1142_v23, %s1581_s29 }
 0x2d9   : > { %919 = vrot.lane.b32.xlu1 %v1145_v24, %s1581_s29 }
 0x2db   : > { %921 = vrot.lane.b32.xlu0 %v1146_v28, %s1581_s29 }
 0x2dd   : > { %923 = vrot.lane.b32.xlu1 %v1147_v29, %s1581_s29 }
 0x345   : > { %v918_v30 = vpop.permute.xlu0 %917 }
 0x346   : > { %v927_v31 = vrot.slane %v918_v30, 4 }
 0x347   : > { %v916_v32 = vpop.permute.xlu1 %915 }
 0x348   : > { %v926_v33 = vrot.slane %v916_v32, 4 }
 0x349   : > { %v914_v34 = vpop.permute.xlu0 %913 }
 0x34a   : > { %v934_v35 = vsel %vm931_vm9, %v926_v33, %v927_v31  ;;  %v925_v36 = vrot.slane %v914_v34, 4 }
 0x34b   : > { %v935_v37 = vsel %vm594_vm8, %v916_v32, %v934_v35  ;;  %v920_v38 = vpop.permute.xlu1 %919 }
 0x34c   : > { %945 = vst [vmem:[%s1924_s12 + $0xc] sm:$0xff] %v935_v37  ;;  %v932_v40 = vsel %vm931_vm9, %v925_v36, %v926_v33  ;;  %v928_v43 = vrot.slane %v920_v38, 4 }
 0x34d   : > { %v933_v41 = vsel %vm594_vm8, %v914_v34, %v932_v40  ;;  %v922_v42 = vpop.permute.xlu0 %921 }
 0x34e   : > { %944 = vst [vmem:[%s1924_s12 + $0x4] sm:$0xff] %v933_v41  ;;  %v929_v44 = vrot.slane %v922_v42, 4 }
 0x34f   : > { %v924_v39 = vpop.permute.xlu1 %923 }
 0x350   : > { %v936_v45 = vsel %vm931_vm9, %v928_v43, %v929_v44  ;;  %v930_v46 = vrot.slane %v924_v39, 4 }
 0x351   : > { %v937_v47 = vsel %vm594_vm8, %v920_v38, %v936_v45 }
 0x352   : > { %946 = vst [vmem:[%s1924_s12 + $0x18] sm:$0xff] %v937_v47  ;;  %v938_v48 = vsel %vm931_vm9, %v929_v44, %v930_v46 }
 0x353   : > { %v939_v49 = vsel %vm594_vm8, %v922_v42, %v938_v48 }
 0x354   : > { %947 = vst [vmem:[%s1924_s12 + $0x20] sm:$0xff] %v939_v49 }
 0x355   : > { %1482 = shalt.err (!%p1479_p11)
}
 0x356   : > { %s1483_s3 = scalar_lea.hbm %s1994_s0, 640  ;;  %s1487_s7 = scalar_lea.hbm %s2055_s6, 1280 }
 0x357   : > { %p1484_p12 = scmp.ne.s32.totalorder %s1994_s0, %s1483_s3  ;;  %p1488_p9 = scmp.lt.u32.totalorder %s1994_s0, %s2055_s6 }
 0x358   : > { %p1489_p0 = scmp.lt.u32.totalorder %s1487_s7, %s1483_s3  ;;  %p1491_p4 = scmp.lt.u32.totalorder %s1483_s3, %s1994_s0 }
 0x359   : > { %p1485_p6 = pnand %p1484_p12, %p1779_p10 }
 0x35a   : > { %p1490_p2 = por %p1489_p0, %p1488_p9 }
 0x35b   : > { %p1486_p7 = pneg %p1485_p6 }
 0x35c   : > { %p1492_p8 = por %p1491_p4, %p1490_p2 }
 0x35e   : > { %p1493_p1 = pnand %p1492_p8, %p1486_p7 }
 0x360   : > { %1496 = shalt.err (!%p1493_p1)
}
 0x361   : > { %s1585_s12 = smov 320   ;;  %s1586_s13 = smov 20  }
 0x362   : > { %1170 = dma.vmem_to_hbm [thread:$0]  (%p1779_p10), %s1996_s9, 640, %s1994_s0, %s949_s26, %s1585_s12, %s1585_s12, %s1586_s13  }
 0x363 PF: > { %s2083_s18 = sld [smem:[#allocation18_spill]]  ;;  %s980_s21 = sand.u32 1, %s1543_s23  }
 0x364   : > { %p2085_p3 = scmp.ge.s32.totalorder %s1563_s28, 2  ;;  %s981_s19 = scalar_lea.sflag [#allocation5], %s980_s21 }
 0x369   : > { %p2084_p13 = scmp.ne.s32.totalorder %s2083_s18, 0 }
 0x36b   : > { %p1190_p5 = pnand %p2085_p3, %p2084_p13 }
 0x36d   : > { %1538 = dma.done.wait (!%p1190_p5), %s981_s19, 640  }
 0x36e   : > { %1540 = vsyncadd (!%p1190_p5), %s981_s19, 4294966656  ;;  %s27_s28 = sadd.s32 1, %s1563_s28   ;;  %s2086_s23 = smov %s1547_s24 }
 0x36f   : > { %p24_p11 = scmp.ge.s32.totalorder %s27_s28, 4   ;;  %s2087_s24 = smov %s1551_s25 }
 0x370   : > { %s2088_s25 = smov %s1797_s20  ;;  %s2089_s26 = smov %s1559_s27 }
 0x371   : > { %s2090_s27 = smov %s2092_s11  ;;  %26 = sbr.rel (!%p24_p11) target bundleno = 14 (0xe), region = 116 }
 0x378   :  { %986 = vsyncpa [#allocation4], 1 }
 0x379   :  { %988 = vsyncpa [#allocation4 + $0x1], 1 }
 0x37a   :  { %989 = vsyncpa [#allocation7], 1 }
 0x37b   :  { %990 = vsyncpa [#allocation10], 1 }
 0x37c   :  { %992 = vsyncpa [#allocation10 + $0x1], 1 }
 0x37d   :  { %993 = vsyncpa [#allocation5], 1 }
 0x37e   :  { %995 = vsyncpa [#allocation5 + $0x1], 1 }

// kernel: d_upproj_block.5
= control target key start
LH: loop header
LB: loop body
LE: loop exit
PB: predicated region body
PF: predicated region fallthrough
CT: control target
= control target key end

     0   :  { %s1412_s0 = inlined_call_operand.hbm [shape: bf16[2,16,640], index: 0, kind: input, shape index: {}]   ;;  %s1413_s1 = inlined_call_operand.hbm [shape: bf16[16,144], index: 1, kind: input, shape index: {}]   ;;  %s1414_s2 = inlined_call_operand.hbm [shape: f32[16,1], index: 2, kind: input, shape index: {}]   ;;  %s1415_s3 = inlined_call_operand.<no memory space> [shape: f32[1,1], index: 3, kind: input, shape index: {}]   ;;  %s1416_s4 = inlined_call_operand.hbm [shape: bf16[2,16,640], index: 4, kind: output, shape index: {}]  }
   0x1   :  { %9 = sst [smem:[#allocation2]] %s1415_s3 }
   0x2   :  { %10 = vsyncpa [#allocation4], 0 }
   0x3   :  { %12 = vsyncpa [#allocation4 + $0x1], 0 }
   0x4   :  { %13 = vsyncpa [#allocation7], 0 }
   0x5   :  { %14 = vsyncpa [#allocation5], 0 }
   0x6   :  { %16 = vsyncpa [#allocation5 + $0x1], 0  ;;  %s1146_s17 = smov 0   ;;  %s1148_s18 = smov 0  }
   0x7   :  { %s1150_s19 = smov 0   ;;  %s1152_s20 = smov 0  }
   0x8   :  { %s1154_s21 = smov 0   ;;  %s1156_s22 = smov 0  }
   0x9 LB: > { %s777_s3 = sadd.s32 4294967295, %s1097_s22   ;;  %s778_s23 = sadd.s32 4294967294, %s1097_s22   ;;  %s1097_s22 = sphi %s1156_s22, %s22_s22   ;;  %s1093_s21 = sphi %s1154_s21, %s1438_s21   ;;  %s1089_s20 = sphi %s1152_s20, %s1437_s20   ;;  %s1085_s19 = sphi %s1150_s19, %s1436_s19   ;;  %s1081_s18 = sphi %s1148_s18, %s1435_s18   ;;  %s1077_s17 = sphi %s1146_s17, %s1434_s17  }
   0xa   : > { %p54_p0 = scmp.ne.s32.totalorder %s1081_s18, %s1077_s17  ;;  %p1180_p1 = scmp.eq.s32.totalorder %s777_s3, 0 }
   0xb   : > { %p1184_p2 = scmp.eq.s32.totalorder %s777_s3, 1  ;;  %p159_p3 = scmp.eq.s32.totalorder %s778_s23, 1 }
   0xc   : > { %s1421_s24 = scalar_select %p1180_p1, 1, 0 }
   0xd   : > { %p1190_p4 = por %p1180_p1, %p54_p0  ;;  %p779_p5 = scmp.ge.s32.totalorder %s1097_s22, 1 }
   0xe   : > { %p1195_p6 = por %p159_p3, %p54_p0  ;;  %p166_p7 = scmp.lt.s32.totalorder %s1097_s22, 3 }
   0xf   : > { %s1423_s26 = scalar_select %p1190_p4, 1, 0 }
  0x10   : > { %s1424_s27 = scalar_select %p1195_p6, 1, 0 }
  0x11   : > { %p1200_p8 = pnand %p779_p5, %p166_p7  ;;  %s1099_s29 = smov [#allocation6]  }
  0x12   : > { %s182_s30 = sshll.u32 %s1099_s29, 4  ;;  %s1100_s6 = smov [#allocation8]   ;;  %s1204_s30 = int_to_ptr.vmem [resolvable:$true] %s182_s30 }
  0x13   : > { %p827_p9 = pneg %p1200_p8  ;;  %s198_s7 = sshll.u32 %s1100_s6, 4  ;;  %s1215_s7 = int_to_ptr.vmem [resolvable:$true] %s198_s7 }
  0x14   : > { %s925_s10 = scalar_lea.hbm %s1413_s1, 256 }
  0x15   : > { %p1211_p11 = pnand %p827_p9, %p1180_p1  ;;  %p926_p12 = scmp.ne.s32.totalorder %s1413_s1, %s925_s10 }
  0x16   : > { %p932_p5 = scmp.lt.u32.totalorder %s925_s10, %s1413_s1 }
  0x17   : > { %p927_p13 = pneg %p1211_p11 }
  0x19   : > { %p928_p0 = pnand %p927_p13, %p926_p12 }
  0x1b   : > { %p929_p3 = pneg %p928_p0 }
  0x1d   : > { %p934_p7 = pnand %p932_p5, %p929_p3 }
  0x1f   : > { %937 = shalt.err (!%p934_p7)
}
  0x20   : > { %s938_s15 = scalar_lea.vmem %s1204_s30, 256  ;;  %p946_p1 = scmp.lt.s32.totalorder %s1204_s30, %s1204_s30 }
  0x21   : > { %p939_p9 = scmp.ne.s32.totalorder %s1204_s30, %s938_s15  ;;  %p947_p12 = scmp.lt.s32.totalorder %s938_s15, %s938_s15 }
  0x23   : > { %p941_p10 = pnand %p939_p9, %p927_p13  ;;  %p948_p0 = por %p947_p12, %p946_p1 }
  0x25   : > { %p942_p6 = pneg %p941_p10 }
  0x27   : > { %p949_p4 = pnand %p948_p0, %p942_p6 }
  0x29   : > { %952 = shalt.err (!%p949_p4)
}
  0x2a   : > { %s1101_s16 = smov 128   ;;  %s1102_s3 = smov 8  }
  0x2b   : > { %830 = dma.hbm_to_vmem [thread:$0]  (!%p1211_p11), %s1413_s1, 256, %s1204_s30, [#allocation7], %s1101_s16, %s1101_s16, %s1102_s3  }
  0x2c   : > { %s953_s9 = scalar_lea.hbm %s1414_s2, 256 }
  0x2d   : > { %p954_p1 = scmp.ne.s32.totalorder %s1414_s2, %s953_s9  ;;  %p960_p10 = scmp.lt.u32.totalorder %s953_s9, %s1414_s2 }
  0x2f   : > { %p956_p4 = pnand %p954_p1, %p927_p13 }
  0x31   : > { %p957_p6 = pneg %p956_p4 }
  0x33   : > { %p962_p3 = pnand %p960_p10, %p957_p6 }
  0x35   : > { %965 = shalt.err (!%p962_p3)
}
  0x36   : > { %s966_s30 = scalar_lea.vmem %s1215_s7, 256  ;;  %p974_p12 = scmp.lt.s32.totalorder %s1215_s7, %s1215_s7 }
  0x37   : > { %p967_p5 = scmp.ne.s32.totalorder %s1215_s7, %s966_s30  ;;  %p975_p0 = scmp.lt.s32.totalorder %s966_s30, %s966_s30 }
  0x39   : > { %p969_p7 = pnand %p967_p5, %p927_p13  ;;  %p976_p1 = por %p975_p0, %p974_p12 }
  0x3b   : > { %p970_p9 = pneg %p969_p7 }
  0x3d   : > { %p977_p4 = pnand %p976_p1, %p970_p9 }
  0x3f   : > { %980 = shalt.err (!%p977_p4)
}
  0x40   : > { %833 = dma.hbm_to_vmem [thread:$0]  (!%p1211_p11), %s1414_s2, 256, %s1215_s7, [#allocation7], %s1101_s16, %s1101_s16, %s1102_s3  }
  0x41   : > { %s31_s23 = sadd.s32 1, %s1093_s21  ;;  %s41_s29 = sadd.s32 1, %s1085_s19 }
  0x42   : > { %p32_p13 = scmp.ge.s32.totalorder %s31_s23, 2  ;;  %p48_p6 = scmp.ne.s32.totalorder %s1085_s19, %s1081_s18 }
  0x43   : > { %p49_p10 = scmp.eq.s32.totalorder %s1097_s22, 0  ;;  %p844_p3 = scmp.lt.s32.totalorder %s1097_s22, 2 }
  0x44   : > { %s1440_s23 = smov (%p32_p13, %s31_s23), 0  ;;  %p1279_p7 = por %p1184_p2, %p48_p6 }
  0x45   : > { %p50_p5 = por %p49_p10, %p48_p6  ;;  %s38_s6 = ssub.s32 %s1093_s21, %s1440_s23 }
  0x46   : > { %s1427_s5 = scalar_select %p1279_p7, 1, 0 }
  0x47   : > { %s215_s8 = sand.u32 1, %s1085_s19   ;;  %p39_p9 = scmp.eq.s32.totalorder %s38_s6, 0 }
  0x48   : > { %s811_s7 = smul.u32 40, %s215_s8  ;;  %p1286_p11 = pnand %p844_p3, %p50_p5 }
  0x49   : > { %s1291_s3 = scalar_select %p39_p9, %s1085_s19, %s41_s29  }
  0x4a   : > { %s812_s9 = smul.u32 640, %s1093_s21  ;;  %s219_s10 = scalar_lea.vmem [#allocation3], %s811_s7 }
  0x4b   : > { %s226_s11 = sshll.u32 %s219_s10, 4  ;;  %s1301_s30 = scalar_lea.sflag [#allocation4], %s215_s8  ;;  %s1299_s11 = int_to_ptr.vmem [resolvable:$true] %s226_s11 }
  0x4c   : > { %s1297_s13 = scalar_lea.hbm %s1412_s0, %s812_s9  ;;  %p983_p12 = pneg %p1286_p11 }
  0x4d   : > { %s981_s14 = scalar_lea.hbm %s1297_s13, 640  ;;  %s986_s6 = scalar_lea.hbm %s1412_s0, 1280 }
  0x4e   : > { %p982_p2 = scmp.ne.s32.totalorder %s1297_s13, %s981_s14  ;;  %p987_p4 = scmp.lt.u32.totalorder %s1297_s13, %s1412_s0 }
  0x4f   : > { %p988_p13 = scmp.lt.u32.totalorder %s986_s6, %s981_s14  ;;  %p990_p10 = scmp.lt.u32.totalorder %s981_s14, %s1297_s13 }
  0x50   : > { %p984_p0 = pnand %p983_p12, %p982_p2 }
  0x51   : > { %p989_p6 = por %p988_p13, %p987_p4 }
  0x52   : > { %p985_p1 = pneg %p984_p0 }
  0x53   : > { %p991_p3 = por %p990_p10, %p989_p6 }
  0x55   : > { %p992_p5 = pnand %p991_p3, %p985_p1 }
  0x57   : > { %995 = shalt.err (!%p992_p5)
}
  0x58   : > { %s996_s8 = scalar_lea.vmem %s1299_s11, 640  ;;  %s1103_s10 = smov [#allocation3]  }
  0x59   : > { %p997_p9 = scmp.ne.s32.totalorder %s1299_s11, %s996_s8  ;;  %s1001_s25 = sshll.u32 %s1103_s10, 4  ;;  %s1002_s25 = int_to_ptr.vmem [resolvable:$false] %s1001_s25 }
  0x5a   : > { %s1003_s12 = scalar_lea.vmem %s1002_s25, 1280  ;;  %p1004_p7 = scmp.lt.s32.totalorder %s1299_s11, %s1002_s25 }
  0x5b   : > { %p999_p2 = pnand %p997_p9, %p983_p12  ;;  %p1005_p4 = scmp.lt.s32.totalorder %s1003_s12, %s996_s8 }
  0x5d   : > { %p1000_p0 = pneg %p999_p2  ;;  %p1006_p13 = por %p1005_p4, %p1004_p7 }
  0x5f   : > { %p1007_p6 = pnand %p1006_p13, %p1000_p0 }
  0x61   : > { %1010 = shalt.err (!%p1007_p6)
}
  0x62   : > { %s1104_s14 = smov 320   ;;  %s1105_s15 = smov 20  }
  0x63   : > { %837 = dma.hbm_to_vmem [thread:$0]  (!%p1286_p11), %s1297_s13, 640, %s1299_s11, %s1301_s30, %s1104_s14, %s1104_s14, %s1105_s15  }
  0x64   : > { %238 = sbr.rel (%p1200_p8) target bundleno = 550 (0x226), region = 36  ;;  %s1332_s29 = sand.u32 (!%p1200_p8), 1, %s1081_s18  }
  0x65   : > { %s813_s6 = smul.u32 (!%p1200_p8), 40, %s1332_s29  ;;  %s241_s7 = scalar_lea.sflag (!%p1200_p8), [#allocation4], %s1332_s29 }
  0x66   : > { %p1429_p7 = scmp.ne.s32.totalorder (!%p1200_p8), %s1423_s26, 0 }
  0x67   : > { %s244_s9 = scalar_lea.vmem (!%p1200_p8), [#allocation3], %s813_s6 }
  0x6b   : > { %1064 = dma.done.wait (%p1429_p7), %s241_s7, 640  }
  0x6c   : > { %1066 = vsyncadd (%p1429_p7), %s241_s7, 4294966656  ;;  %p1430_p11 = scmp.ne.s32.totalorder %s1421_s24, 0 }
  0x6e   : > { %1068 = dma.done.wait (%p1430_p11), [#allocation7], 512  }
  0x6f   : > { %1070 = vsyncadd (%p1430_p11), [#allocation7], 4294966784  ;;  %v915_v0 = vld [vmem:[%s244_s9 + $0xc] ss:$20 sps:$4 sm:$0xff]   ;;  %v917_v1 = vld [vmem:[%s244_s9 + $0x4] ss:$20 sps:$4 sm:$0xff]  }
  0x70   : > { %s1106_s28 = smov 127   ;;  %v919_v2 = vld [vmem:[%s244_s9 + $0x10] ss:$20 sps:$4 sm:$0xff]   ;;  %557 = vmatprep.subr.bf16.mxu1 %v915_v0  ;;  %v920_v3 = vld [vmem:[%s244_s9 + $0x8] ss:$20 sps:$4 sm:$0xff]   ;;  %514 = vmatprep.subr.bf16.mxu0 %v917_v1  ;;  %s1107_s26 = smov 126  }
  0x71   : > { %345 = vrot.lane.b32.xlu1 %v915_v0, %s1106_s28  ;;  %341 = vrot.lane.b32.xlu0 %v917_v1, %s1106_s28  ;;  %v921_v4 = vld [vmem:[%s244_s9] ss:$20 sps:$4 sm:$0xff]   ;;  %s1108_s24 = smov 108   ;;  %s1109_s16 = smov 107   ;;  %vm510_vm0 = vcmask 130048   ;;  %v1114_v6 = vmov 0  }
  0x72   : > { %558 = vmatpush1.bf16.msra.mxu1 %v920_v3  ;;  %515 = vmatpush1.bf16.msra.mxu0 %v921_v4  ;;  %s1110_s11 = smov 106   ;;  %s1111_s13 = smov 88   ;;  %v924_v5 = vld [vmem:[#allocation6 + $0x4] ss:$8 sps:$4 sm:$0xff]   ;;  %v284_v7 = vld [vmem:[#allocation8 + $0x8] sm:$0xff]  ;;  %v283_v8 = vld [vmem:[#allocation8] sm:$0xff] }
  0x73   : > { %s1112_s30 = smov 87   ;;  %798 = vmatprep.mubr.msk.bf16.mxu0 %vm510_vm0, %v924_v5  ;;  %799 = vmatprep.mubr.msk.bf16.mxu1 %vm510_vm0, %v924_v5  ;;  %s1113_s8 = smov 86   ;;  %vm349_vm1 = vcmask 1039360   ;;  %vm368_vm2 = vcmask 1031168   ;;  %vm387_vm3 = vcmask 883712   ;;  %vm406_vm4 = vcmask 875520  }
  0x74   : > { %913 = vset.pattern.permute.xlu0 %v1114_v6  ;;  %s1348_s10 = scalar_lea.vmem [#allocation9], %s813_s6  ;;  %914 = vset.pattern.permute.xlu1 %v1114_v6  ;;  %vm425_vm5 = vcmask 867328   ;;  %vm444_vm6 = vcmask 719872   ;;  %vm463_vm7 = vcmask 711680   ;;  %vm482_vm8 = vcmask 703488   ;;  %s285_s25 = sld [smem:[#allocation2]] }
  0x75   : > { %347 = vrot.lane.b32.xlu1 %v919_v2, %s1106_s28  ;;  %343 = vrot.lane.b32.xlu0 %v920_v3, %s1106_s28  ;;  %286 = vst [vmem:[%s1348_s10 + $0x10] sm:$0xf] %v1114_v6  ;;  %287 = vst [vmem:[%s1348_s10 + $0x24] sm:$0xf] %v1114_v6  ;;  %s670_s12 = sshll.u32 %s1348_s10, 4  ;;  %s814_s14 = smul.u32 640, %s1089_s20  ;;  %s1356_s12 = int_to_ptr.vmem [resolvable:$true] %s670_s12 }
  0x76   : > { %s654_s20 = scalar_lea.sflag [#allocation5], %s1332_s29  ;;  %s1011_s9 = scalar_lea.vmem %s1356_s12, 640 }
  0x77   : > { %s1362_s7 = scalar_lea.hbm %s1416_s4, %s814_s14  ;;  %p1012_p8 = scmp.ne.s32.totalorder %s1356_s12, %s1011_s9 }
  0x78   : > { %p1431_p12 = scmp.ne.s32.totalorder %s1427_s5, 0 }
  0x79   : > { %360 = vrot.lane.b32.xlu1 %v917_v1, %s1107_s26  ;;  %339 = vrot.lane.b32.xlu0 %v921_v4, %s1106_s28  ;;  %s1115_s28 = smov [#allocation9]  }
  0x7a   : > { %p1013_p1 = pnand %p1012_p8, %p1431_p12 }
  0x7c   : > { %p1014_p10 = pneg %p1013_p1 }
  0x7d   : > { %364 = vrot.lane.b32.xlu1 %v915_v0, %s1107_s26  ;;  %362 = vrot.lane.b32.xlu0 %v920_v3, %s1107_s26 }
  0x81   : > { %358 = vrot.lane.b32.xlu1 %v921_v4, %s1107_s26  ;;  %366 = vrot.lane.b32.xlu0 %v919_v2, %s1107_s26  ;;  %s1015_s26 = sshll.u32 %s1115_s28, 4  ;;  %s1016_s26 = int_to_ptr.vmem [resolvable:$false] %s1015_s26 }
  0x82   : > { %p1018_p3 = scmp.lt.s32.totalorder %s1356_s12, %s1016_s26 }
  0x85   : > { %381 = vrot.lane.b32.xlu1 %v920_v3, %s1108_s24  ;;  %379 = vrot.lane.b32.xlu0 %v917_v1, %s1108_s24 }
  0x89   : > { %385 = vrot.lane.b32.xlu1 %v919_v2, %s1108_s24  ;;  %383 = vrot.lane.b32.xlu0 %v915_v0, %s1108_s24 }
  0x8d   : > { %398 = vrot.lane.b32.xlu1 %v917_v1, %s1109_s16  ;;  %377 = vrot.lane.b32.xlu0 %v921_v4, %s1108_s24  ;;  %s1017_s24 = scalar_lea.vmem %s1016_s26, 1280 }
  0x8e   : > { %p1019_p5 = scmp.lt.s32.totalorder %s1017_s24, %s1011_s9 }
  0x90   : > { %p1020_p9 = por %p1019_p5, %p1018_p3 }
  0x91   : > { %402 = vrot.lane.b32.xlu1 %v915_v0, %s1109_s16  ;;  %400 = vrot.lane.b32.xlu0 %v920_v3, %s1109_s16 }
  0x92   : > { %p1021_p2 = pnand %p1020_p9, %p1014_p10 }
  0x95   : > { %396 = vrot.lane.b32.xlu1 %v921_v4, %s1109_s16  ;;  %404 = vrot.lane.b32.xlu0 %v919_v2, %s1109_s16 }
  0x99   : > { %419 = vrot.lane.b32.xlu1 %v920_v3, %s1110_s11  ;;  %417 = vrot.lane.b32.xlu0 %v917_v1, %s1110_s11 }
  0x9d   : > { %423 = vrot.lane.b32.xlu1 %v919_v2, %s1110_s11  ;;  %421 = vrot.lane.b32.xlu0 %v915_v0, %s1110_s11 }
  0xa1   : > { %436 = vrot.lane.b32.xlu1 %v917_v1, %s1111_s13  ;;  %415 = vrot.lane.b32.xlu0 %v921_v4, %s1110_s11 }
  0xa5   : > { %440 = vrot.lane.b32.xlu1 %v915_v0, %s1111_s13  ;;  %438 = vrot.lane.b32.xlu0 %v920_v3, %s1111_s13 }
  0xa9   : > { %434 = vrot.lane.b32.xlu1 %v921_v4, %s1111_s13  ;;  %442 = vrot.lane.b32.xlu0 %v919_v2, %s1111_s13 }
  0xad   : > { %457 = vrot.lane.b32.xlu1 %v920_v3, %s1112_s30  ;;  %455 = vrot.lane.b32.xlu0 %v917_v1, %s1112_s30 }
  0xb1   : > { %461 = vrot.lane.b32.xlu1 %v919_v2, %s1112_s30  ;;  %459 = vrot.lane.b32.xlu0 %v915_v0, %s1112_s30 }
  0xb5   : > { %474 = vrot.lane.b32.xlu1 %v917_v1, %s1113_s8  ;;  %453 = vrot.lane.b32.xlu0 %v921_v4, %s1112_s30 }
  0xb9   : > { %478 = vrot.lane.b32.xlu1 %v915_v0, %s1113_s8  ;;  %476 = vrot.lane.b32.xlu0 %v920_v3, %s1113_s8 }
  0xbd   : > { %472 = vrot.lane.b32.xlu1 %v921_v4, %s1113_s8  ;;  %480 = vrot.lane.b32.xlu0 %v919_v2, %s1113_s8 }
  0xc1   : > { %498 = vperm.xlu1 %914, %v284_v7   ;;  %493 = vperm.xlu0 %913, %v283_v8  }
  0xe3   : > { %v346_v9 = vpop.permute.xlu1 %345  ;;  %v342_v10 = vpop.permute.xlu0 %341 }
  0xe7   : > { %v348_v11 = vpop.permute.xlu1 %347  ;;  %v344_v12 = vpop.permute.xlu0 %343 }
  0xe8   : > { %v353_v13 = vsel %vm349_vm1, %v346_v9, %v348_v11  ;;  %v351_v14 = vsel %vm349_vm1, %v342_v10, %v344_v12  ;;  %v352_v15 = vsel %vm349_vm1, %v344_v12, %v346_v9 }
  0xe9   : > { %559 = vmatprep.subr.bf16.mxu1 %v353_v13  ;;  %516 = vmatprep.subr.bf16.mxu0 %v351_v14 }
  0xea   : > { %560 = vmatpush1.bf16.msra.mxu1 %v352_v15  ;;  %v922_v15 = vld [vmem:[#allocation6] ss:$8 sps:$4 sm:$0xff]  }
  0xeb   : > { %v361_v16 = vpop.permute.xlu1 %360  ;;  %v340_v17 = vpop.permute.xlu0 %339 }
  0xec   : > { %v350_v18 = vsel %vm349_vm1, %v340_v17, %v342_v10 }
  0xed   : > { %517 = vmatpush1.bf16.msra.mxu0 %v350_v18 }
  0xef   : > { %v365_v19 = vpop.permute.xlu1 %364  ;;  %v363_v20 = vpop.permute.xlu0 %362 }
  0xf0   : > { %v370_v21 = vsel %vm368_vm2, %v361_v16, %v363_v20  ;;  %v371_v26 = vsel %vm368_vm2, %v363_v20, %v365_v19  ;;  %v608_v20 = vstv %s285_s25 }
  0xf1   : > { %518 = vmatprep.subr.bf16.mxu0 %v370_v21 }
  0xf3   : > { %v359_v22 = vpop.permute.xlu1 %358  ;;  %v367_v23 = vpop.permute.xlu0 %366 }
  0xf4   : > { %v369_v24 = vsel %vm368_vm2, %v359_v22, %v361_v16  ;;  %v372_v25 = vsel %vm368_vm2, %v365_v19, %v367_v23 }
  0xf5   : > { %519 = vmatpush1.bf16.msra.mxu0 %v369_v24  ;;  %561 = vmatprep.subr.bf16.mxu1 %v372_v25 }
  0xf6   : > { %562 = vmatpush1.bf16.msra.mxu1 %v371_v26 }
  0xf7   : > { %v382_v27 = vpop.permute.xlu1 %381  ;;  %v380_v28 = vpop.permute.xlu0 %379 }
  0xf8   : > { %v389_v29 = vsel %vm387_vm3, %v380_v28, %v382_v27 }
  0xf9   : > { %520 = vmatprep.subr.bf16.mxu0 %v389_v29 }
  0xfb   : > { %v386_v30 = vpop.permute.xlu1 %385  ;;  %v384_v31 = vpop.permute.xlu0 %383 }
  0xfc   : > { %v391_v32 = vsel %vm387_vm3, %v384_v31, %v386_v30  ;;  %v390_v33 = vsel %vm387_vm3, %v382_v27, %v384_v31 }
  0xfd   : > { %563 = vmatprep.subr.bf16.mxu1 %v391_v32 }
  0xfe   : > { %564 = vmatpush1.bf16.msra.mxu1 %v390_v33 }
  0xff   : > { %v399_v34 = vpop.permute.xlu1 %398  ;;  %v378_v35 = vpop.permute.xlu0 %377 }
 0x100   : > { %v388_v36 = vsel %vm387_vm3, %v378_v35, %v380_v28 }
 0x101   : > { %521 = vmatpush1.bf16.msra.mxu0 %v388_v36 }
 0x103   : > { %v403_v37 = vpop.permute.xlu1 %402  ;;  %v401_v38 = vpop.permute.xlu0 %400 }
 0x104   : > { %v408_v39 = vsel %vm406_vm4, %v399_v34, %v401_v38  ;;  %v409_v44 = vsel %vm406_vm4, %v401_v38, %v403_v37 }
 0x105   : > { %522 = vmatprep.subr.bf16.mxu0 %v408_v39 }
 0x107   : > { %v397_v40 = vpop.permute.xlu1 %396  ;;  %v405_v41 = vpop.permute.xlu0 %404 }
 0x108   : > { %v407_v42 = vsel %vm406_vm4, %v397_v40, %v399_v34  ;;  %v410_v43 = vsel %vm406_vm4, %v403_v37, %v405_v41 }
 0x109   : > { %523 = vmatpush1.bf16.msra.mxu0 %v407_v42  ;;  %565 = vmatprep.subr.bf16.mxu1 %v410_v43 }
 0x10a   : > { %566 = vmatpush1.bf16.msra.mxu1 %v409_v44 }
 0x10b   : > { %v420_v45 = vpop.permute.xlu1 %419  ;;  %v418_v46 = vpop.permute.xlu0 %417 }
 0x10c   : > { %v427_v47 = vsel %vm425_vm5, %v418_v46, %v420_v45 }
 0x10d   : > { %524 = vmatprep.subr.bf16.mxu0 %v427_v47 }
 0x10f   : > { %v424_v48 = vpop.permute.xlu1 %423  ;;  %v422_v49 = vpop.permute.xlu0 %421 }
 0x110   : > { %v429_v50 = vsel %vm425_vm5, %v422_v49, %v424_v48  ;;  %v428_v51 = vsel %vm425_vm5, %v420_v45, %v422_v49 }
 0x111   : > { %567 = vmatprep.subr.bf16.mxu1 %v429_v50 }
 0x112   : > { %568 = vmatpush1.bf16.msra.mxu1 %v428_v51 }
 0x113   : > { %v437_v52 = vpop.permute.xlu1 %436  ;;  %v416_v53 = vpop.permute.xlu0 %415 }
 0x114   : > { %v426_v54 = vsel %vm425_vm5, %v416_v53, %v418_v46 }
 0x115   : > { %525 = vmatpush1.bf16.msra.mxu0 %v426_v54 }
 0x117   : > { %v441_v55 = vpop.permute.xlu1 %440  ;;  %v439_v56 = vpop.permute.xlu0 %438 }
 0x118   : > { %v446_v57 = vsel %vm444_vm6, %v437_v52, %v439_v56  ;;  %v447_v62 = vsel %vm444_vm6, %v439_v56, %v441_v55 }
 0x119   : > { %526 = vmatprep.subr.bf16.mxu0 %v446_v57 }
 0x11b   : > { %v435_v58 = vpop.permute.xlu1 %434  ;;  %v443_v59 = vpop.permute.xlu0 %442 }
 0x11c   : > { %v445_v60 = vsel %vm444_vm6, %v435_v58, %v437_v52  ;;  %v448_v61 = vsel %vm444_vm6, %v441_v55, %v443_v59 }
 0x11d   : > { %527 = vmatpush1.bf16.msra.mxu0 %v445_v60  ;;  %569 = vmatprep.subr.bf16.mxu1 %v448_v61 }
 0x11e   : > { %570 = vmatpush1.bf16.msra.mxu1 %v447_v62 }
 0x11f   : > { %v458_v63 = vpop.permute.xlu1 %457  ;;  %v456_v0 = vpop.permute.xlu0 %455 }
 0x120   : > { %v465_v1 = vsel %vm463_vm7, %v456_v0, %v458_v63 }
 0x121   : > { %528 = vmatprep.subr.bf16.mxu0 %v465_v1 }
 0x123   : > { %v462_v2 = vpop.permute.xlu1 %461  ;;  %v460_v3 = vpop.permute.xlu0 %459 }
 0x124   : > { %v467_v4 = vsel %vm463_vm7, %v460_v3, %v462_v2  ;;  %v466_v5 = vsel %vm463_vm7, %v458_v63, %v460_v3 }
 0x125   : > { %571 = vmatprep.subr.bf16.mxu1 %v467_v4 }
 0x126   : > { %572 = vmatpush1.bf16.msra.mxu1 %v466_v5 }
 0x127   : > { %v475_v6 = vpop.permute.xlu1 %474  ;;  %v454_v7 = vpop.permute.xlu0 %453 }
 0x128   : > { %v464_v8 = vsel %vm463_vm7, %v454_v7, %v456_v0 }
 0x129   : > { %529 = vmatpush1.bf16.msra.mxu0 %v464_v8 }
 0x12b   : > { %v479_v9 = vpop.permute.xlu1 %478  ;;  %v477_v10 = vpop.permute.xlu0 %476 }
 0x12c   : > { %v484_v11 = vsel %vm482_vm8, %v475_v6, %v477_v10  ;;  %v485_v17 = vsel %vm482_vm8, %v477_v10, %v479_v9 }
 0x12d   : > { %530 = vmatprep.subr.bf16.mxu0 %v484_v11 }
 0x12f   : > { %v473_v12 = vpop.permute.xlu1 %472  ;;  %v481_v13 = vpop.permute.xlu0 %480 }
 0x130   : > { %v483_v14 = vsel %vm482_vm8, %v473_v12, %v475_v6  ;;  %v486_v16 = vsel %vm482_vm8, %v479_v9, %v481_v13 }
 0x131   : > { %531 = vmatpush1.bf16.msra.mxu0 %v483_v14  ;;  %573 = vmatprep.subr.bf16.mxu1 %v486_v16 }
 0x132   : > { %574 = vmatpush1.bf16.msra.mxu1 %v485_v17 }
 0x134   : > { %547 = vmatmul.mubr.bf16.vlgmr.msra.gmra.mrb[0].mxu0 %v922_v15 }
 0x135   : > { %590 = vmatmul.mubr.bf16.vlgmr.msra.gmra.mrb[0].mxu1 %v922_v15 }
 0x140   : > { %v494_v18 = vpop.permute.xlu0 %493  ;;  %v499_v21 = vpop.permute.xlu1 %498 }
 0x207   : > { %v548_v19 = vpop.f32.mrb[0].mxu0 }
 0x208   : > { %v549_v22 = vadd.f32 %v548_v19, %v494_v18  ;;  %v550_v23 = vpop.f32.mrb[1].mxu0  ;;  %v591_v25 = vpop.f32.mrb[0].mxu1 }
 0x209   : > { %v551_v24 = vadd.f32 %v550_v23, %v494_v18  ;;  %v552_v26 = vpop.f32.mrb[2].mxu0  ;;  %v592_v28 = vadd.f32 %v591_v25, %v494_v18  ;;  %v593_v30 = vpop.f32.mrb[1].mxu1 }
 0x20a   : > { %vm600_vm9 = vcmp.ge.f32.partialorder %v549_v22, 0.0  ;;  %v609_v27 = vmul.f32 %v608_v20, %v549_v22  ;;  %v553_v29 = vadd.f32 %v552_v26, %v499_v21  ;;  %v554_v31 = vpop.f32.mrb[3].mxu0  ;;  %v594_v33 = vadd.f32 %v593_v30, %v494_v18  ;;  %v595_v35 = vpop.f32.mrb[2].mxu1 }
 0x20b   : > { %vm601_vm10 = vcmp.ge.f32.partialorder %v551_v24, 0.0  ;;  %v610_v32 = vmul.f32 %v608_v20, %v551_v24  ;;  %v555_v34 = vadd.f32 %v554_v31, %v499_v21  ;;  %vm602_vm11 = vcmp.ge.f32.partialorder %v592_v28, 0.0  ;;  %v597_v38 = vpop.f32.mrb[3].mxu1 }
 0x20c   : > { %v617_v36 = vsel %vm600_vm9, %v549_v22, %v609_v27  ;;  %v611_v37 = vmul.f32 %v608_v20, %v592_v28  ;;  %vm604_vm12 = vcmp.ge.f32.partialorder %v553_v29, 0.0  ;;  %v613_v40 = vmul.f32 %v608_v20, %v553_v29 }
 0x20d   : > { %v618_v39 = vsel %vm601_vm10, %v551_v24, %v610_v32  ;;  %vm603_vm13 = vcmp.ge.f32.partialorder %v594_v33, 0.0  ;;  %v612_v41 = vmul.f32 %v608_v20, %v594_v33  ;;  %vm605_vm14 = vcmp.ge.f32.partialorder %v555_v34, 0.0 }
 0x20e   : > { %v807_v42 = vpack.c.bf16 %v618_v39, %v617_v36  ;;  %v619_v43 = vsel %vm602_vm11, %v592_v28, %v611_v37  ;;  %v614_v44 = vmul.f32 %v608_v20, %v555_v34  ;;  %v621_v45 = vsel %vm604_vm12, %v553_v29, %v613_v40 }
 0x20f   : > { %v620_v46 = vsel %vm603_vm13, %v594_v33, %v612_v41  ;;  %v596_v47 = vadd.f32 %v595_v35, %v499_v21  ;;  %v598_v48 = vadd.f32 %v597_v38, %v499_v21 }
 0x210   : > { %649 = vst [vmem:[%s1348_s10] sm:$0xff] %v807_v42  ;;  %v808_v49 = vpack.c.bf16 %v620_v46, %v619_v43  ;;  %v622_v50 = vsel %vm605_vm14, %v555_v34, %v614_v44 }
 0x211   : > { %v809_v51 = vpack.c.bf16 %v622_v50, %v621_v45  ;;  %vm606_vm15 = vcmp.ge.f32.partialorder %v596_v47, 0.0  ;;  %v615_v52 = vmul.f32 %v608_v20, %v596_v47  ;;  %vm607_vm0 = vcmp.ge.f32.partialorder %v598_v48, 0.0 }
 0x212   : > { %650 = vst [vmem:[%s1348_s10 + $0x8] sm:$0xff] %v808_v49  ;;  %v616_v53 = vmul.f32 %v608_v20, %v598_v48 }
 0x213   : > { %651 = vst [vmem:[%s1348_s10 + $0x14] sm:$0xff] %v809_v51  ;;  %v623_v54 = vsel %vm606_vm15, %v596_v47, %v615_v52 }
 0x214   : > { %v624_v55 = vsel %vm607_vm0, %v598_v48, %v616_v53 }
 0x215   : > { %v810_v56 = vpack.c.bf16 %v624_v55, %v623_v54 }
 0x217   : > { %652 = vst [vmem:[%s1348_s10 + $0x1c] sm:$0xff] %v810_v56 }
 0x218   : > { %1024 = shalt.err (!%p1021_p2)
}
 0x219   : > { %s1025_s16 = scalar_lea.hbm %s1362_s7, 640  ;;  %s1029_s30 = scalar_lea.hbm %s1416_s4, 1280 }
 0x21a   : > { %p1026_p0 = scmp.ne.s32.totalorder %s1362_s7, %s1025_s16  ;;  %p1030_p6 = scmp.lt.u32.totalorder %s1362_s7, %s1416_s4 }
 0x21b   : > { %p1031_p7 = scmp.lt.u32.totalorder %s1029_s30, %s1025_s16  ;;  %p1033_p8 = scmp.lt.u32.totalorder %s1025_s16, %s1362_s7 }
 0x21c   : > { %p1027_p4 = pnand %p1026_p0, %p1431_p12 }
 0x21d   : > { %p1032_p11 = por %p1031_p7, %p1030_p6 }
 0x21e   : > { %p1028_p13 = pneg %p1027_p4 }
 0x21f   : > { %p1034_p1 = por %p1033_p8, %p1032_p11 }
 0x221   : > { %p1035_p10 = pnand %p1034_p1, %p1028_p13 }
 0x223   : > { %1038 = shalt.err (!%p1035_p10)
}
 0x224   : > { %s1116_s25 = smov 320   ;;  %s1117_s14 = smov 20  }
 0x225   : > { %825 = dma.vmem_to_hbm [thread:$0]  (%p1431_p12), %s1356_s12, 640, %s1362_s7, %s654_s20, %s1116_s25, %s1116_s25, %s1117_s14  }
 0x226 PF: > { %s685_s15 = sand.u32 1, %s1077_s17   ;;  %p1432_p3 = scmp.ne.s32.totalorder %s1424_s27, 0 }
 0x227   : > { %p1433_p5 = scmp.ge.s32.totalorder %s1097_s22, 2  ;;  %s686_s6 = scalar_lea.sflag [#allocation5], %s685_s15 }
 0x229   : > { %p839_p9 = pnand %p1433_p5, %p1432_p3 }
 0x22b   : > { %1072 = dma.done.wait (!%p839_p9), %s686_s6, 640  }
 0x22c   : > { %1074 = vsyncadd (!%p839_p9), %s686_s6, 4294966656  ;;  %s22_s22 = sadd.s32 1, %s1097_s22   ;;  %s1434_s17 = smov %s1081_s18 }
 0x22d   : > { %p19_p2 = scmp.ge.s32.totalorder %s22_s22, 4   ;;  %s1435_s18 = smov %s1085_s19 }
 0x22e   : > { %s1436_s19 = smov %s1291_s3  ;;  %s1437_s20 = smov %s1093_s21 }
 0x22f   : > { %s1438_s21 = smov %s1440_s23  ;;  %21 = sbr.rel (!%p19_p2) target bundleno = 9 (0x9), region = 91 }
 0x236   :  { %691 = vsyncpa [#allocation4], 1 }
 0x237   :  { %693 = vsyncpa [#allocation4 + $0x1], 1 }
 0x238   :  { %694 = vsyncpa [#allocation7], 1 }
 0x239   :  { %695 = vsyncpa [#allocation5], 1 }
 0x23a   :  { %697 = vsyncpa [#allocation5 + $0x1], 1 }

// kernel: d_upproj_block.7
= control target key start
LH: loop header
LB: loop body
LE: loop exit
PB: predicated region body
PF: predicated region fallthrough
CT: control target
= control target key end

     0   :  { %s1885_s0 = inlined_call_operand.hbm [shape: bf16[2,16,640], index: 0, kind: input, shape index: {}]   ;;  %s1886_s1 = inlined_call_operand.hbm [shape: bf16[16,144], index: 1, kind: input, shape index: {}]   ;;  %s1887_s2 = inlined_call_operand.hbm [shape: f32[16,1], index: 2, kind: input, shape index: {}]   ;;  %s1888_s3 = inlined_call_operand.<no memory space> [shape: f32[1,1], index: 3, kind: input, shape index: {}]   ;;  %s1889_s4 = inlined_call_operand.hbm [shape: bf16[2,16,640], index: 4, kind: input, shape index: {}]   ;;  %s1890_s5 = inlined_call_operand.hbm [shape: f32[2,16,512], index: 5, kind: output, shape index: {}]  }
   0x1   :  { %1896 = sst [smem:[#allocation16_spill]] %s1885_s0 }
   0x2   :  { %1897 = sst [smem:[#allocation17_spill]] %s1886_s1 }
   0x3   :  { %1898 = sst [smem:[#allocation18_spill]] %s1887_s2 }
   0x4   :  { %10 = sst [smem:[#allocation2]] %s1888_s3 }
   0x5   :  { %11 = vsyncpa [#allocation4], 0 }
   0x6   :  { %13 = vsyncpa [#allocation4 + $0x1], 0 }
   0x7   :  { %14 = vsyncpa [#allocation7], 0 }
   0x8   :  { %15 = vsyncpa [#allocation10], 0 }
   0x9   :  { %17 = vsyncpa [#allocation10 + $0x1], 0 }
   0xa   :  { %18 = vsyncpa [#allocation5], 0 }
   0xb   :  { %20 = vsyncpa [#allocation5 + $0x1], 0  ;;  %s1418_s20 = smov 0   ;;  %s1420_s21 = smov 0  }
   0xc   :  { %s1422_s22 = smov 0   ;;  %s1424_s23 = smov 0  }
   0xd   :  { %s1426_s24 = smov 0   ;;  %s1428_s25 = smov 0  }
   0xe LB: > { %s998_s3 = sadd.s32 4294967295, %s1362_s25   ;;  %s999_s26 = sadd.s32 4294967294, %s1362_s25   ;;  %s1362_s25 = sphi %s1428_s25, %s26_s25   ;;  %s1358_s24 = sphi %s1426_s24, %s1920_s24   ;;  %s1354_s23 = sphi %s1424_s23, %s1919_s23   ;;  %s1350_s22 = sphi %s1422_s22, %s1918_s22   ;;  %s1346_s21 = sphi %s1420_s21, %s1917_s21   ;;  %s1342_s20 = sphi %s1418_s20, %s1916_s20  }
   0xf   : > { %p58_p0 = scmp.ne.s32.totalorder %s1346_s21, %s1342_s20  ;;  %p1452_p1 = scmp.eq.s32.totalorder %s998_s3, 0 }
  0x10   : > { %p1456_p2 = scmp.eq.s32.totalorder %s998_s3, 1  ;;  %p191_p3 = scmp.eq.s32.totalorder %s999_s26, 1 }
  0x11   : > { %s1899_s27 = scalar_select %p1452_p1, 1, 0 }
  0x12   : > { %p1462_p4 = por %p1452_p1, %p58_p0  ;;  %p1000_p5 = scmp.ge.s32.totalorder %s1362_s25, 1 }
  0x13   : > { %p1467_p6 = por %p191_p3, %p58_p0  ;;  %p198_p7 = scmp.lt.s32.totalorder %s1362_s25, 3 }
  0x14   : > { %s1901_s29 = scalar_select %p1462_p4, 1, 0 }
  0x15   : > { %s1902_s30 = scalar_select %p1467_p6, 1, 0 }
  0x16   : > { %p1472_p8 = pnand %p1000_p5, %p198_p7  ;;  %s1364_s7 = smov [#allocation6]  }
  0x17   : > { %s214_s8 = sshll.u32 %s1364_s7, 4  ;;  %s1365_s10 = smov [#allocation8]   ;;  %s1476_s8 = int_to_ptr.vmem [resolvable:$true] %s214_s8 }
  0x18   : > { %p1048_p9 = pneg %p1472_p8  ;;  %s230_s11 = sshll.u32 %s1365_s10, 4  ;;  %s1487_s11 = int_to_ptr.vmem [resolvable:$true] %s230_s11 }
  0x19   : > { %s1905_s1 = sld [smem:[#allocation17_spill]] }
  0x1a   : > { %p1483_p11 = pnand %p1048_p9, %p1452_p1 }
  0x1c   : > { %p1158_p13 = pneg %p1483_p11 }
  0x1f   : > { %s1156_s14 = scalar_lea.hbm %s1905_s1, 256 }
  0x20   : > { %p1157_p12 = scmp.ne.s32.totalorder %s1905_s1, %s1156_s14  ;;  %p1163_p5 = scmp.lt.u32.totalorder %s1156_s14, %s1905_s1 }
  0x22   : > { %p1159_p0 = pnand %p1158_p13, %p1157_p12 }
  0x24   : > { %p1160_p3 = pneg %p1159_p0 }
  0x26   : > { %p1165_p7 = pnand %p1163_p5, %p1160_p3 }
  0x28   : > { %1168 = shalt.err (!%p1165_p7)
}
  0x29   : > { %s1169_s19 = scalar_lea.vmem %s1476_s8, 256  ;;  %p1177_p1 = scmp.lt.s32.totalorder %s1476_s8, %s1476_s8 }
  0x2a   : > { %p1170_p9 = scmp.ne.s32.totalorder %s1476_s8, %s1169_s19  ;;  %p1178_p12 = scmp.lt.s32.totalorder %s1169_s19, %s1169_s19 }
  0x2c   : > { %p1172_p10 = pnand %p1170_p9, %p1158_p13  ;;  %p1179_p0 = por %p1178_p12, %p1177_p1 }
  0x2e   : > { %p1173_p6 = pneg %p1172_p10 }
  0x30   : > { %p1180_p4 = pnand %p1179_p0, %p1173_p6 }
  0x32   : > { %1183 = shalt.err (!%p1180_p4)
}
  0x33   : > { %s1366_s3 = smov 128   ;;  %s1367_s26 = smov 8  }
  0x34   : > { %1051 = dma.hbm_to_vmem [thread:$0]  (!%p1483_p11), %s1905_s1, 256, %s1476_s8, [#allocation7], %s1366_s3, %s1366_s3, %s1367_s26  }
  0x35   : > { %s1906_s2 = sld [smem:[#allocation18_spill]] }
  0x3b   : > { %s1184_s14 = scalar_lea.hbm %s1906_s2, 256 }
  0x3c   : > { %p1185_p1 = scmp.ne.s32.totalorder %s1906_s2, %s1184_s14  ;;  %p1191_p10 = scmp.lt.u32.totalorder %s1184_s14, %s1906_s2 }
  0x3e   : > { %p1187_p4 = pnand %p1185_p1, %p1158_p13 }
  0x40   : > { %p1188_p6 = pneg %p1187_p4 }
  0x42   : > { %p1193_p3 = pnand %p1191_p10, %p1188_p6 }
  0x44   : > { %1196 = shalt.err (!%p1193_p3)
}
  0x45   : > { %s1197_s8 = scalar_lea.vmem %s1487_s11, 256  ;;  %p1205_p12 = scmp.lt.s32.totalorder %s1487_s11, %s1487_s11 }
  0x46   : > { %p1198_p5 = scmp.ne.s32.totalorder %s1487_s11, %s1197_s8  ;;  %p1206_p0 = scmp.lt.s32.totalorder %s1197_s8, %s1197_s8 }
  0x48   : > { %p1200_p7 = pnand %p1198_p5, %p1158_p13  ;;  %p1207_p1 = por %p1206_p0, %p1205_p12 }
  0x4a   : > { %p1201_p9 = pneg %p1200_p7 }
  0x4c   : > { %p1208_p4 = pnand %p1207_p1, %p1201_p9 }
  0x4e   : > { %1211 = shalt.err (!%p1208_p4)
}
  0x4f   : > { %1054 = dma.hbm_to_vmem [thread:$0]  (!%p1483_p11), %s1906_s2, 256, %s1487_s11, [#allocation7], %s1366_s3, %s1366_s3, %s1367_s26  }
  0x50   : > { %s35_s10 = sadd.s32 1, %s1358_s24  ;;  %s45_s12 = sadd.s32 1, %s1350_s22 }
  0x51   : > { %p36_p13 = scmp.ge.s32.totalorder %s35_s10, 2  ;;  %p52_p6 = scmp.ne.s32.totalorder %s1350_s22, %s1346_s21 }
  0x52   : > { %p53_p10 = scmp.eq.s32.totalorder %s1362_s25, 0  ;;  %p1068_p3 = scmp.lt.s32.totalorder %s1362_s25, 2 }
  0x53   : > { %s1922_s10 = smov (%p36_p13, %s35_s10), 0  ;;  %p1551_p7 = por %p1456_p2, %p52_p6 }
  0x54   : > { %p54_p5 = por %p53_p10, %p52_p6  ;;  %s42_s13 = ssub.s32 %s1358_s24, %s1922_s10 }
  0x55   : > { %s1907_s9 = scalar_select %p1551_p7, 1, 0 }
  0x56   : > { %s1558_s14 = sand.u32 1, %s1350_s22   ;;  %p43_p11 = scmp.eq.s32.totalorder %s42_s13, 0 }
  0x57   : > { %s1894_s11 = smul.u32 40, %s1558_s14  ;;  %p1561_p9 = pnand %p1068_p3, %p54_p5 }
  0x58   : > { %s1566_s26 = scalar_select %p43_p11, %s1350_s22, %s45_s12  }
  0x59   : > { %s1030_s28 = smul.u32 640, %s1358_s24  ;;  %s251_s15 = scalar_lea.vmem [#allocation3], %s1894_s11 }
  0x5a   : > { %s258_s16 = sshll.u32 %s251_s15, 4  ;;  %s1909_s0 = sld [smem:[#allocation16_spill]]  ;;  %s1578_s16 = int_to_ptr.vmem [resolvable:$true] %s258_s16 }
  0x5b   : > { %s248_s19 = scalar_lea.sflag [#allocation4], %s1558_s14  ;;  %p1214_p12 = pneg %p1561_p9 }
  0x60   : > { %s1576_s8 = scalar_lea.hbm %s1909_s0, %s1030_s28  ;;  %s1217_s15 = scalar_lea.hbm %s1909_s0, 1280 }
  0x61   : > { %s1212_s7 = scalar_lea.hbm %s1576_s8, 640  ;;  %p1218_p4 = scmp.lt.u32.totalorder %s1576_s8, %s1909_s0 }
  0x62   : > { %p1213_p2 = scmp.ne.s32.totalorder %s1576_s8, %s1212_s7  ;;  %p1219_p13 = scmp.lt.u32.totalorder %s1217_s15, %s1212_s7 }
  0x63   : > { %p1221_p10 = scmp.lt.u32.totalorder %s1212_s7, %s1576_s8 }
  0x64   : > { %p1215_p0 = pnand %p1214_p12, %p1213_p2  ;;  %p1220_p6 = por %p1219_p13, %p1218_p4 }
  0x66   : > { %p1216_p1 = pneg %p1215_p0  ;;  %p1222_p3 = por %p1221_p10, %p1220_p6 }
  0x68   : > { %p1223_p5 = pnand %p1222_p3, %p1216_p1 }
  0x6a   : > { %1226 = shalt.err (!%p1223_p5)
}
  0x6b   : > { %s1227_s11 = scalar_lea.vmem %s1578_s16, 640  ;;  %s1368_s12 = smov [#allocation3]  }
  0x6c   : > { %p1228_p11 = scmp.ne.s32.totalorder %s1578_s16, %s1227_s11  ;;  %s1232_s13 = sshll.u32 %s1368_s12, 4  ;;  %s1233_s13 = int_to_ptr.vmem [resolvable:$false] %s1232_s13 }
  0x6d   : > { %s1234_s17 = scalar_lea.vmem %s1233_s13, 1280  ;;  %p1235_p7 = scmp.lt.s32.totalorder %s1578_s16, %s1233_s13 }
  0x6e   : > { %p1230_p2 = pnand %p1228_p11, %p1214_p12  ;;  %p1236_p4 = scmp.lt.s32.totalorder %s1234_s17, %s1227_s11 }
  0x70   : > { %p1231_p0 = pneg %p1230_p2  ;;  %p1237_p13 = por %p1236_p4, %p1235_p7 }
  0x72   : > { %p1238_p6 = pnand %p1237_p13, %p1231_p0 }
  0x74   : > { %1241 = shalt.err (!%p1238_p6)
}
  0x75   : > { %s1369_s7 = smov 320   ;;  %s1370_s15 = smov 20  }
  0x76   : > { %1058 = dma.hbm_to_vmem [thread:$0]  (!%p1561_p9), %s1576_s8, 640, %s1578_s16, %s248_s19, %s1369_s7, %s1369_s7, %s1370_s15  }
  0x77   : > { %s1616_s12 = scalar_lea.hbm %s1889_s4, %s1030_s28  ;;  %s1910_s13 = smul.u32 40, %s1558_s14 }
  0x78   : > { %s269_s1 = scalar_lea.sflag [#allocation10], %s1558_s14  ;;  %s1242_s2 = scalar_lea.hbm %s1616_s12, 640 }
  0x79   : > { %s272_s17 = scalar_lea.vmem [#allocation9], %s1910_s13  ;;  %p1243_p7 = scmp.ne.s32.totalorder %s1616_s12, %s1242_s2 }
  0x7a   : > { %s282_s0 = sshll.u32 %s272_s17, 4  ;;  %s1247_s28 = scalar_lea.hbm %s1889_s4, 1280  ;;  %s1620_s0 = int_to_ptr.vmem [resolvable:$true] %s282_s0 }
  0x7b   : > { %p1245_p1 = pnand %p1243_p7, %p1214_p12  ;;  %p1248_p3 = scmp.lt.u32.totalorder %s1616_s12, %s1889_s4 }
  0x7c   : > { %p1249_p5 = scmp.lt.u32.totalorder %s1247_s28, %s1242_s2  ;;  %p1251_p2 = scmp.lt.u32.totalorder %s1242_s2, %s1616_s12 }
  0x7d   : > { %p1246_p10 = pneg %p1245_p1 }
  0x7e   : > { %p1250_p11 = por %p1249_p5, %p1248_p3 }
  0x80   : > { %p1252_p0 = por %p1251_p2, %p1250_p11 }
  0x82   : > { %p1253_p4 = pnand %p1252_p0, %p1246_p10 }
  0x84   : > { %1256 = shalt.err (!%p1253_p4)
}
  0x85   : > { %s1257_s18 = scalar_lea.vmem %s1620_s0, 640  ;;  %s1371_s13 = smov [#allocation9]  }
  0x86   : > { %p1258_p13 = scmp.ne.s32.totalorder %s1620_s0, %s1257_s18  ;;  %s1262_s17 = sshll.u32 %s1371_s13, 4  ;;  %s1263_s17 = int_to_ptr.vmem [resolvable:$false] %s1262_s17 }
  0x87   : > { %s1264_s16 = scalar_lea.vmem %s1263_s17, 1280  ;;  %p1265_p1 = scmp.lt.s32.totalorder %s1620_s0, %s1263_s17 }
  0x88   : > { %p1260_p6 = pnand %p1258_p13, %p1214_p12  ;;  %p1266_p3 = scmp.lt.s32.totalorder %s1264_s16, %s1257_s18 }
  0x8a   : > { %p1261_p7 = pneg %p1260_p6  ;;  %p1267_p5 = por %p1266_p3, %p1265_p1 }
  0x8c   : > { %p1268_p11 = pnand %p1267_p5, %p1261_p7 }
  0x8e   : > { %1271 = shalt.err (!%p1268_p11)
}
  0x8f   : > { %1061 = dma.hbm_to_vmem [thread:$0]  (!%p1561_p9), %s1616_s12, 640, %s1620_s0, %s269_s1, %s1369_s7, %s1369_s7, %s1370_s15  }
  0x90   : > { %294 = sbr.rel (%p1472_p8) target bundleno = 739 (0x2e3), region = 40  ;;  %s1654_s2 = sand.u32 (!%p1472_p8), 1, %s1346_s21  }
  0x91   : > { %s1033_s8 = smul.u32 (!%p1472_p8), 40, %s1654_s2  ;;  %s297_s28 = scalar_lea.sflag (!%p1472_p8), [#allocation4], %s1654_s2 }
  0x92   : > { %p1911_p12 = scmp.ne.s32.totalorder (!%p1472_p8), %s1901_s29, 0 }
  0x93   : > { %s1658_s3 = scalar_lea.vmem (!%p1472_p8), [#allocation3], %s1033_s8 }
  0x97   : > { %1325 = dma.done.wait (%p1911_p12), %s297_s28, 640  }
  0x98   : > { %1327 = vsyncadd (%p1911_p12), %s297_s28, 4294966656  ;;  %p1912_p9 = scmp.ne.s32.totalorder %s1899_s27, 0 }
  0x9a   : > { %1329 = dma.done.wait (%p1912_p9), [#allocation7], 512  }
  0x9b   : > { %1331 = vsyncadd (%p1912_p9), [#allocation7], 4294966784  ;;  %s314_s0 = scalar_lea.sflag [#allocation10], %s1654_s2  ;;  %s1669_s1 = scalar_lea.vmem [#allocation9], %s1033_s8 }
  0x9c   : > { %1333 = dma.done.wait (%p1911_p12), %s314_s0, 640  }
  0x9d   : > { %1335 = vsyncadd (%p1911_p12), %s314_s0, 4294966656  ;;  %v1140_v0 = vld [vmem:[%s1658_s3 + $0xc] ss:$20 sps:$4 sm:$0xff]   ;;  %v1142_v1 = vld [vmem:[%s1658_s3 + $0x4] ss:$20 sps:$4 sm:$0xff]   ;;  %s1372_s6 = smov 127  }
  0x9e   : > { %396 = vrot.lane.b32.xlu1 %v1140_v0, %s1372_s6  ;;  %v1144_v2 = vld [vmem:[%s1658_s3 + $0x10] ss:$20 sps:$4 sm:$0xff]   ;;  %392 = vrot.lane.b32.xlu0 %v1142_v1, %s1372_s6  ;;  %v1145_v3 = vld [vmem:[%s1658_s3 + $0x8] ss:$20 sps:$4 sm:$0xff]   ;;  %s1373_s27 = smov 126   ;;  %s1374_s29 = smov 108  }
  0x9f   : > { %v1146_v4 = vld [vmem:[%s1658_s3] ss:$20 sps:$4 sm:$0xff]   ;;  %s1375_s14 = smov 107   ;;  %s1376_s7 = smov 106   ;;  %v1147_v5 = vld [vmem:[%s1658_s3 + $0x4] ss:$20 sps:$4 sm:$0xff]  }
  0xa0   : > { %s1377_s15 = smov 88   ;;  %s1378_s12 = smov 87   ;;  %v1150_v6 = vld [vmem:[%s1658_s3 + $0xc] ss:$20 sps:$4 sm:$0xff]   ;;  %v1149_v7 = vld [vmem:[%s1658_s3 + $0x8] ss:$20 sps:$4 sm:$0xff]  }
  0xa1   : > { %s1379_s19 = smov 86   ;;  %v1152_v8 = vld [vmem:[%s1658_s3 + $0x10] ss:$20 sps:$4 sm:$0xff]   ;;  %s1380_s11 = smov 42   ;;  %vm400_vm0 = vcmask 1039360   ;;  %vm415_vm1 = vcmask 1031168  }
  0xa2   : > { %398 = vrot.lane.b32.xlu1 %v1144_v2, %s1372_s6  ;;  %394 = vrot.lane.b32.xlu0 %v1145_v3, %s1372_s6  ;;  %vm430_vm2 = vcmask 883712   ;;  %vm445_vm3 = vcmask 875520   ;;  %vm460_vm4 = vcmask 867328   ;;  %vm475_vm5 = vcmask 719872   ;;  %s358_s18 = sld [smem:[#allocation2]]  ;;  %s1009_s13 = sshll.u32 %s1654_s2, 6 }
  0xa3   : > { %vm490_vm6 = vcmask 711680   ;;  %vm632_vm7 = vcmask 343040   ;;  %vm519_vm8 = vcmask 703488   ;;  %vm705_vm9 = vcmask 130048   ;;  %s1818_s17 = scalar_lea.vmem [#allocation11], %s1009_s13  ;;  %s1028_s16 = sshll.u32 %s1354_s23, 10 }
  0xa4   : > { %s865_s8 = sshll.u32 %s1818_s17, 4  ;;  %s1831_s0 = scalar_lea.hbm %s1890_s5, %s1028_s16  ;;  %s1833_s8 = int_to_ptr.vmem [resolvable:$true] %s865_s8 }
  0xa5   : > { %s849_s23 = scalar_lea.sflag [#allocation5], %s1654_s2  ;;  %p1913_p10 = scmp.ne.s32.totalorder %s1907_s9, 0 }
  0xa6   : > { %407 = vrot.lane.b32.xlu1 %v1142_v1, %s1373_s27  ;;  %390 = vrot.lane.b32.xlu0 %v1146_v4, %s1372_s6  ;;  %s1382_s6 = smov [#allocation11]  }
  0xaa   : > { %411 = vrot.lane.b32.xlu1 %v1140_v0, %s1373_s27  ;;  %409 = vrot.lane.b32.xlu0 %v1145_v3, %s1373_s27 }
  0xae   : > { %405 = vrot.lane.b32.xlu1 %v1146_v4, %s1373_s27  ;;  %413 = vrot.lane.b32.xlu0 %v1144_v2, %s1373_s27  ;;  %s1276_s27 = sshll.u32 %s1382_s6, 4  ;;  %s1277_s27 = int_to_ptr.vmem [resolvable:$false] %s1276_s27 }
  0xaf   : > { %p1279_p4 = scmp.lt.s32.totalorder %s1833_s8, %s1277_s27 }
  0xb2   : > { %424 = vrot.lane.b32.xlu1 %v1145_v3, %s1374_s29  ;;  %422 = vrot.lane.b32.xlu0 %v1142_v1, %s1374_s29 }
  0xb6   : > { %428 = vrot.lane.b32.xlu1 %v1144_v2, %s1374_s29  ;;  %426 = vrot.lane.b32.xlu0 %v1140_v0, %s1374_s29 }
  0xba   : > { %437 = vrot.lane.b32.xlu1 %v1142_v1, %s1375_s14  ;;  %420 = vrot.lane.b32.xlu0 %v1146_v4, %s1374_s29  ;;  %s1278_s29 = scalar_lea.vmem %s1277_s27, 2048 }
  0xbe   : > { %441 = vrot.lane.b32.xlu1 %v1140_v0, %s1375_s14  ;;  %439 = vrot.lane.b32.xlu0 %v1145_v3, %s1375_s14 }
  0xc2   : > { %435 = vrot.lane.b32.xlu1 %v1146_v4, %s1375_s14  ;;  %443 = vrot.lane.b32.xlu0 %v1144_v2, %s1375_s14 }
  0xc6   : > { %454 = vrot.lane.b32.xlu1 %v1145_v3, %s1376_s7  ;;  %452 = vrot.lane.b32.xlu0 %v1142_v1, %s1376_s7 }
  0xca   : > { %458 = vrot.lane.b32.xlu1 %v1144_v2, %s1376_s7  ;;  %456 = vrot.lane.b32.xlu0 %v1140_v0, %s1376_s7 }
  0xce   : > { %467 = vrot.lane.b32.xlu1 %v1142_v1, %s1377_s15  ;;  %450 = vrot.lane.b32.xlu0 %v1146_v4, %s1376_s7 }
  0xd2   : > { %471 = vrot.lane.b32.xlu1 %v1140_v0, %s1377_s15  ;;  %469 = vrot.lane.b32.xlu0 %v1145_v3, %s1377_s15 }
  0xd6   : > { %465 = vrot.lane.b32.xlu1 %v1146_v4, %s1377_s15  ;;  %473 = vrot.lane.b32.xlu0 %v1144_v2, %s1377_s15 }
  0xda   : > { %484 = vrot.lane.b32.xlu1 %v1145_v3, %s1378_s12  ;;  %482 = vrot.lane.b32.xlu0 %v1142_v1, %s1378_s12 }
  0xde   : > { %488 = vrot.lane.b32.xlu1 %v1144_v2, %s1378_s12  ;;  %486 = vrot.lane.b32.xlu0 %v1140_v0, %s1378_s12 }
  0xe2   : > { %511 = vrot.lane.b32.xlu1 %v1147_v5, %s1379_s19  ;;  %480 = vrot.lane.b32.xlu0 %v1146_v4, %s1378_s12 }
  0xe6   : > { %515 = vrot.lane.b32.xlu1 %v1150_v6, %s1379_s19  ;;  %513 = vrot.lane.b32.xlu0 %v1149_v7, %s1379_s19 }
  0xea   : > { %544 = vrot.lane.b32.xlu1 %v1142_v1, %s1380_s11  ;;  %517 = vrot.lane.b32.xlu0 %v1152_v8, %s1379_s19 }
  0xee   : > { %548 = vrot.lane.b32.xlu1 %v1140_v0, %s1380_s11  ;;  %546 = vrot.lane.b32.xlu0 %v1145_v3, %s1380_s11 }
  0xf2   : > { %542 = vrot.lane.b32.xlu1 %v1146_v4, %s1380_s11  ;;  %550 = vrot.lane.b32.xlu0 %v1144_v2, %s1380_s11 }
 0x110   : > { %v397_v9 = vpop.permute.xlu1 %396  ;;  %v393_v10 = vpop.permute.xlu0 %392 }
 0x114   : > { %v399_v11 = vpop.permute.xlu1 %398  ;;  %v395_v12 = vpop.permute.xlu0 %394 }
 0x115   : > { %560 = vrot.lane.b32.xlu1 %v399_v11, %s1380_s11  ;;  %v403_v24 = vsel %vm400_vm0, %v395_v12, %v397_v9  ;;  %v402_v34 = vsel %vm400_vm0, %v393_v10, %v395_v12  ;;  %v404_v38 = vsel %vm400_vm0, %v397_v9, %v399_v11 }
 0x118   : > { %v408_v13 = vpop.permute.xlu1 %407  ;;  %v391_v14 = vpop.permute.xlu0 %390 }
 0x119   : > { %v401_v42 = vsel %vm400_vm0, %v391_v14, %v393_v10 }
 0x11c   : > { %v412_v15 = vpop.permute.xlu1 %411  ;;  %v410_v16 = vpop.permute.xlu0 %409 }
 0x11d   : > { %v417_v27 = vsel %vm415_vm1, %v408_v13, %v410_v16  ;;  %v418_v46 = vsel %vm415_vm1, %v410_v16, %v412_v15 }
 0x120   : > { %v406_v17 = vpop.permute.xlu1 %405  ;;  %v414_v18 = vpop.permute.xlu0 %413 }
 0x121   : > { %570 = vrot.lane.b32.xlu0 %v414_v18, %s1380_s11  ;;  %v419_v29 = vsel %vm415_vm1, %v412_v15, %v414_v18  ;;  %v416_v32 = vsel %vm415_vm1, %v406_v17, %v408_v13 }
 0x124   : > { %v425_v19 = vpop.permute.xlu1 %424  ;;  %v423_v20 = vpop.permute.xlu0 %422 }
 0x125   : > { %v432_v50 = vsel %vm430_vm2, %v423_v20, %v425_v19 }
 0x128   : > { %v429_v21 = vpop.permute.xlu1 %428  ;;  %v427_v22 = vpop.permute.xlu0 %426 }
 0x129   : > { %580 = vrot.lane.b32.xlu1 %v429_v21, %s1380_s11  ;;  %v433_v36 = vsel %vm430_vm2, %v425_v19, %v427_v22  ;;  %v434_v54 = vsel %vm430_vm2, %v427_v22, %v429_v21  ;;  %v1155_v21 = vld [vmem:[#allocation6 + $0x4] ss:$8 sps:$4 sm:$0xff]  }
 0x12a   : > { %1021 = vmatprep.mubr.msk.bf16.mxu0 %vm705_vm9, %v1155_v21  ;;  %1022 = vmatprep.mubr.msk.bf16.mxu1 %vm705_vm9, %v1155_v21 }
 0x12c   : > { %v438_v23 = vpop.permute.xlu1 %437  ;;  %v421_v25 = vpop.permute.xlu0 %420 }
 0x12d   : > { %556 = vrot.lane.b32.xlu1 %v403_v24, %s1380_s11  ;;  %v431_v57 = vsel %vm430_vm2, %v421_v25, %v423_v20  ;;  %v357_v24 = vld [vmem:[#allocation8 + $0x8] sm:$0xff]  ;;  %v1381_v25 = vmov 0  }
 0x12e   : > { %1139 = vset.pattern.permute.xlu1 %v1381_v25  ;;  %1138 = vset.pattern.permute.xlu0 %v1381_v25 }
 0x130   : > { %v442_v26 = vpop.permute.xlu1 %441  ;;  %v440_v28 = vpop.permute.xlu0 %439 }
 0x131   : > { %564 = vrot.lane.b32.xlu1 %v417_v27, %s1380_s11  ;;  %v447_v40 = vsel %vm445_vm3, %v438_v23, %v440_v28  ;;  %v448_v61 = vsel %vm445_vm3, %v440_v28, %v442_v26  ;;  %v356_v27 = vld [vmem:[#allocation8] sm:$0xff] }
 0x134   : > { %v436_v30 = vpop.permute.xlu1 %435  ;;  %v444_v31 = vpop.permute.xlu0 %443 }
 0x135   : > { %568 = vrot.lane.b32.xlu1 %v419_v29, %s1380_s11  ;;  %590 = vrot.lane.b32.xlu0 %v444_v31, %s1380_s11  ;;  %v449_v44 = vsel %vm445_vm3, %v442_v26, %v444_v31  ;;  %v446_v48 = vsel %vm445_vm3, %v436_v30, %v438_v23 }
 0x138   : > { %v455_v33 = vpop.permute.xlu1 %454  ;;  %v1702_v35 = vpop.permute.xlu0 %452 }
 0x139   : > { %562 = vrot.lane.b32.xlu1 %v416_v32, %s1380_s11  ;;  %554 = vrot.lane.b32.xlu0 %v402_v34, %s1380_s11  ;;  %v462_v1 = vsel %vm460_vm4, %v1702_v35, %v455_v33 }
 0x13c   : > { %v459_v37 = vpop.permute.xlu1 %458  ;;  %v457_v39 = vpop.permute.xlu0 %456 }
 0x13d   : > { %576 = vrot.lane.b32.xlu1 %v433_v36, %s1380_s11  ;;  %558 = vrot.lane.b32.xlu0 %v404_v38, %s1380_s11  ;;  %v463_v52 = vsel %vm460_vm4, %v455_v33, %v457_v39  ;;  %v464_v5 = vsel %vm460_vm4, %v457_v39, %v459_v37 }
 0x140   : > { %v468_v41 = vpop.permute.xlu1 %467  ;;  %v451_v43 = vpop.permute.xlu0 %450 }
 0x141   : > { %584 = vrot.lane.b32.xlu1 %v447_v40, %s1380_s11  ;;  %552 = vrot.lane.b32.xlu0 %v401_v42, %s1380_s11  ;;  %v461_v9 = vsel %vm460_vm4, %v451_v43, %v1702_v35 }
 0x144   : > { %v472_v45 = vpop.permute.xlu1 %471  ;;  %v470_v47 = vpop.permute.xlu0 %469 }
 0x145   : > { %588 = vrot.lane.b32.xlu1 %v449_v44, %s1380_s11  ;;  %566 = vrot.lane.b32.xlu0 %v418_v46, %s1380_s11  ;;  %v477_v59 = vsel %vm475_vm5, %v468_v41, %v470_v47  ;;  %v478_v13 = vsel %vm475_vm5, %v470_v47, %v472_v45 }
 0x148   : > { %v466_v49 = vpop.permute.xlu1 %465  ;;  %v474_v51 = vpop.permute.xlu0 %473 }
 0x149   : > { %582 = vrot.lane.b32.xlu1 %v446_v48, %s1380_s11  ;;  %574 = vrot.lane.b32.xlu0 %v432_v50, %s1380_s11  ;;  %v479_v63 = vsel %vm475_vm5, %v472_v45, %v474_v51  ;;  %v476_v3 = vsel %vm475_vm5, %v466_v49, %v468_v41 }
 0x14c   : > { %v485_v53 = vpop.permute.xlu1 %484  ;;  %v1724_v55 = vpop.permute.xlu0 %482 }
 0x14d   : > { %596 = vrot.lane.b32.xlu1 %v463_v52, %s1380_s11  ;;  %578 = vrot.lane.b32.xlu0 %v434_v54, %s1380_s11  ;;  %v492_v20 = vsel %vm490_vm6, %v1724_v55, %v485_v53 }
 0x150   : > { %v489_v56 = vpop.permute.xlu1 %488  ;;  %v487_v58 = vpop.permute.xlu0 %486 }
 0x151   : > { %600 = vrot.lane.b32.xlu1 %v459_v37, %s1380_s11  ;;  %572 = vrot.lane.b32.xlu0 %v431_v57, %s1380_s11  ;;  %v493_v7 = vsel %vm490_vm6, %v485_v53, %v487_v58  ;;  %v494_v22 = vsel %vm490_vm6, %v487_v58, %v489_v56 }
 0x154   : > { %v512_v60 = vpop.permute.xlu1 %511  ;;  %v481_v62 = vpop.permute.xlu0 %480 }
 0x155   : > { %604 = vrot.lane.b32.xlu1 %v477_v59, %s1380_s11  ;;  %586 = vrot.lane.b32.xlu0 %v448_v61, %s1380_s11  ;;  %v491_v23 = vsel %vm490_vm6, %v481_v62, %v1724_v55 }
 0x158   : > { %v516_v0 = vpop.permute.xlu1 %515  ;;  %v514_v2 = vpop.permute.xlu0 %513 }
 0x159   : > { %608 = vrot.lane.b32.xlu1 %v479_v63, %s1380_s11  ;;  %594 = vrot.lane.b32.xlu0 %v462_v1, %s1380_s11  ;;  %v520_v17 = vsel %vm519_vm8, %v512_v60, %v514_v2  ;;  %v521_v26 = vsel %vm519_vm8, %v514_v2, %v516_v0 }
 0x15c   : > { %v545_v4 = vpop.permute.xlu1 %544  ;;  %v518_v6 = vpop.permute.xlu0 %517 }
 0x15d   : > { %602 = vrot.lane.b32.xlu1 %v476_v3, %s1380_s11  ;;  %598 = vrot.lane.b32.xlu0 %v464_v5, %s1380_s11  ;;  %v522_v19 = vsel %vm519_vm8, %v516_v0, %v518_v6 }
 0x160   : > { %v549_v8 = vpop.permute.xlu1 %548  ;;  %v547_v10 = vpop.permute.xlu0 %546 }
 0x161   : > { %616 = vrot.lane.b32.xlu1 %v493_v7, %s1380_s11  ;;  %592 = vrot.lane.b32.xlu0 %v461_v9, %s1380_s11  ;;  %v634_v11 = vsel %vm632_vm7, %v545_v4, %v547_v10  ;;  %v635_v16 = vsel %vm632_vm7, %v547_v10, %v549_v8 }
 0x162   : > { %709 = vmatprep.subr.bf16.mxu0 %v634_v11 }
 0x164   : > { %v543_v12 = vpop.permute.xlu1 %542  ;;  %v551_v14 = vpop.permute.xlu0 %550 }
 0x165   : > { %620 = vrot.lane.b32.xlu1 %v489_v56, %s1380_s11  ;;  %v633_v15 = vsel %vm632_vm7, %v543_v12, %v545_v4  ;;  %606 = vrot.lane.b32.xlu0 %v478_v13, %s1380_s11  ;;  %v636_v18 = vsel %vm632_vm7, %v549_v8, %v551_v14 }
 0x166   : > { %710 = vmatpush1.bf16.msra.mxu0 %v633_v15  ;;  %752 = vmatprep.subr.bf16.mxu1 %v636_v18 }
 0x167   : > { %753 = vmatpush1.bf16.msra.mxu1 %v635_v16 }
 0x169   : > { %624 = vrot.lane.b32.xlu1 %v520_v17, %s1380_s11  ;;  %610 = vrot.lane.b32.xlu0 %v474_v51, %s1380_s11 }
 0x16d   : > { %628 = vrot.lane.b32.xlu1 %v522_v19, %s1380_s11  ;;  %614 = vrot.lane.b32.xlu0 %v492_v20, %s1380_s11 }
 0x171   : > { %622 = vrot.lane.b32.xlu1 %v512_v60, %s1380_s11  ;;  %618 = vrot.lane.b32.xlu0 %v494_v22, %s1380_s11 }
 0x175   : > { %612 = vrot.lane.b32.xlu0 %v491_v23, %s1380_s11  ;;  %530 = vperm.xlu1 %1139, %v357_v24  }
 0x179   : > { %626 = vrot.lane.b32.xlu0 %v521_v26, %s1380_s11 }
 0x17d   : > { %630 = vrot.lane.b32.xlu0 %v518_v6, %s1380_s11 }
 0x181   : > { %525 = vperm.xlu0 %1138, %v356_v27  }
 0x187   : > { %v561_v28 = vpop.permute.xlu1 %560 }
 0x193   : > { %v571_v32 = vpop.permute.xlu0 %570 }
 0x19b   : > { %v581_v29 = vpop.permute.xlu1 %580 }
 0x19f   : > { %v557_v30 = vpop.permute.xlu1 %556 }
 0x1a3   : > { %v565_v31 = vpop.permute.xlu1 %564 }
 0x1a7   : > { %v569_v33 = vpop.permute.xlu1 %568  ;;  %v591_v34 = vpop.permute.xlu0 %590 }
 0x1a8   : > { %v644_v43 = vsel %vm632_vm7, %v569_v33, %v571_v32 }
 0x1ab   : > { %v563_v35 = vpop.permute.xlu1 %562  ;;  %v555_v36 = vpop.permute.xlu0 %554 }
 0x1ac   : > { %v638_v37 = vsel %vm632_vm7, %v555_v36, %v557_v30  ;;  %v641_v50 = vsel %vm632_vm7, %v563_v35, %v565_v31 }
 0x1ad   : > { %711 = vmatprep.subr.bf16.mxu0 %v638_v37  ;;  %v820_v37 = vld [vmem:[%s1669_s1] sm:$0xff] }
 0x1af   : > { %v577_v38 = vpop.permute.xlu1 %576  ;;  %v559_v39 = vpop.permute.xlu0 %558 }
 0x1b0   : > { %v640_v40 = vsel %vm632_vm7, %v559_v39, %v561_v28  ;;  %v639_v41 = vsel %vm632_vm7, %v557_v30, %v559_v39  ;;  %v822_v39 = vld [vmem:[%s1669_s1 + $0x14] sm:$0xff] }
 0x1b1   : > { %754 = vmatprep.subr.bf16.mxu1 %v640_v40  ;;  %v1807_v40 = vld [vmem:[%s1669_s1 + $0x8] sm:$0xff] }
 0x1b2   : > { %755 = vmatpush1.bf16.msra.mxu1 %v639_v41 }
 0x1b3   : > { %v585_v42 = vpop.permute.xlu1 %584  ;;  %756 = vmatprep.subr.bf16.mxu1 %v644_v43  ;;  %v553_v44 = vpop.permute.xlu0 %552  ;;  %v803_v43 = vstv %s358_s18 }
 0x1b4   : > { %v637_v45 = vsel %vm632_vm7, %v553_v44, %v555_v36 }
 0x1b5   : > { %712 = vmatpush1.bf16.msra.mxu0 %v637_v45  ;;  %v824_v45 = vunpack.c.l.bf16 %v820_v37 }
 0x1b7   : > { %v589_v46 = vpop.permute.xlu1 %588  ;;  %v567_v47 = vpop.permute.xlu0 %566 }
 0x1b8   : > { %v642_v48 = vsel %vm632_vm7, %v565_v31, %v567_v47  ;;  %v643_v49 = vsel %vm632_vm7, %v567_v47, %v569_v33  ;;  %v652_v58 = vsel %vm632_vm7, %v589_v46, %v591_v34  ;;  %v1153_v33 = vld [vmem:[#allocation6] ss:$8 sps:$4 sm:$0xff]  }
 0x1b9   : > { %713 = vmatprep.subr.bf16.mxu0 %v642_v48  ;;  %757 = vmatpush1.bf16.msra.mxu1 %v643_v49  ;;  %v1810_v48 = vld [vmem:[%s1669_s1 + $0x1c] sm:$0xff]  ;;  %s1272_s1 = scalar_lea.vmem %s1833_s8, 1024 }
 0x1ba   : > { %714 = vmatpush1.bf16.msra.mxu0 %v641_v50  ;;  %p1273_p8 = scmp.ne.s32.totalorder %s1833_s8, %s1272_s1  ;;  %p1280_p13 = scmp.lt.s32.totalorder %s1278_s29, %s1272_s1 }
 0x1bb   : > { %v583_v51 = vpop.permute.xlu1 %582  ;;  %v575_v52 = vpop.permute.xlu0 %574 }
 0x1bc   : > { %v646_v53 = vsel %vm632_vm7, %v575_v52, %v577_v38  ;;  %v649_v2 = vsel %vm632_vm7, %v583_v51, %v585_v42  ;;  %v828_v51 = vunpack.c.l.bf16 %v822_v39  ;;  %p1274_p2 = pnand %p1273_p8, %p1913_p10  ;;  %p1281_p6 = por %p1280_p13, %p1279_p4 }
 0x1bd   : > { %715 = vmatprep.subr.bf16.mxu0 %v646_v53  ;;  %v826_v53 = vunpack.c.l.bf16 %v1807_v40 }
 0x1be   : > { %p1275_p0 = pneg %p1274_p2 }
 0x1bf   : > { %v597_v54 = vpop.permute.xlu1 %596  ;;  %v579_v55 = vpop.permute.xlu0 %578 }
 0x1c0   : > { %v648_v56 = vsel %vm632_vm7, %v579_v55, %v581_v29  ;;  %v647_v57 = vsel %vm632_vm7, %v577_v38, %v579_v55  ;;  %p1282_p7 = pnand %p1281_p6, %p1275_p0 }
 0x1c1   : > { %758 = vmatprep.subr.bf16.mxu1 %v648_v56 }
 0x1c2   : > { %759 = vmatpush1.bf16.msra.mxu1 %v647_v57  ;;  %v827_v57 = vunpack.c.h.bf16 %v1807_v40 }
 0x1c3   : > { %v601_v59 = vpop.permute.xlu1 %600  ;;  %760 = vmatprep.subr.bf16.mxu1 %v652_v58  ;;  %v573_v60 = vpop.permute.xlu0 %572 }
 0x1c4   : > { %v645_v61 = vsel %vm632_vm7, %v573_v60, %v575_v52  ;;  %v829_v52 = vunpack.c.h.bf16 %v822_v39 }
 0x1c5   : > { %716 = vmatpush1.bf16.msra.mxu0 %v645_v61  ;;  %v830_v61 = vunpack.c.l.bf16 %v1810_v48 }
 0x1c7   : > { %v605_v62 = vpop.permute.xlu1 %604  ;;  %v587_v63 = vpop.permute.xlu0 %586 }
 0x1c8   : > { %v650_v0 = vsel %vm632_vm7, %v585_v42, %v587_v63  ;;  %v651_v1 = vsel %vm632_vm7, %v587_v63, %v589_v46  ;;  %v825_v46 = vunpack.c.h.bf16 %v820_v37 }
 0x1c9   : > { %717 = vmatprep.subr.bf16.mxu0 %v650_v0  ;;  %761 = vmatpush1.bf16.msra.mxu1 %v651_v1 }
 0x1ca   : > { %718 = vmatpush1.bf16.msra.mxu0 %v649_v2 }
 0x1cb   : > { %v609_v3 = vpop.permute.xlu1 %608  ;;  %v595_v4 = vpop.permute.xlu0 %594 }
 0x1cc   : > { %v654_v5 = vsel %vm632_vm7, %v595_v4, %v597_v54 }
 0x1cd   : > { %719 = vmatprep.subr.bf16.mxu0 %v654_v5 }
 0x1cf   : > { %v603_v6 = vpop.permute.xlu1 %602  ;;  %v599_v7 = vpop.permute.xlu0 %598 }
 0x1d0   : > { %v656_v8 = vsel %vm632_vm7, %v599_v7, %v601_v59  ;;  %v655_v9 = vsel %vm632_vm7, %v597_v54, %v599_v7  ;;  %v657_v16 = vsel %vm632_vm7, %v603_v6, %v605_v62 }
 0x1d1   : > { %762 = vmatprep.subr.bf16.mxu1 %v656_v8 }
 0x1d2   : > { %763 = vmatpush1.bf16.msra.mxu1 %v655_v9 }
 0x1d3   : > { %v617_v10 = vpop.permute.xlu1 %616  ;;  %v593_v11 = vpop.permute.xlu0 %592 }
 0x1d4   : > { %v653_v12 = vsel %vm632_vm7, %v593_v11, %v595_v4 }
 0x1d5   : > { %720 = vmatpush1.bf16.msra.mxu0 %v653_v12 }
 0x1d7   : > { %v607_v13 = vpop.permute.xlu0 %606  ;;  %v621_v15 = vpop.permute.xlu1 %620 }
 0x1d8   : > { %v658_v14 = vsel %vm632_vm7, %v605_v62, %v607_v13  ;;  %v659_v19 = vsel %vm632_vm7, %v607_v13, %v609_v3 }
 0x1d9   : > { %721 = vmatprep.subr.bf16.mxu0 %v658_v14 }
 0x1da   : > { %722 = vmatpush1.bf16.msra.mxu0 %v657_v16 }
 0x1db   : > { %v611_v17 = vpop.permute.xlu0 %610  ;;  %v625_v20 = vpop.permute.xlu1 %624 }
 0x1dc   : > { %v660_v18 = vsel %vm632_vm7, %v609_v3, %v611_v17  ;;  %v831_v17 = vunpack.c.h.bf16 %v1810_v48 }
 0x1dd   : > { %764 = vmatprep.subr.bf16.mxu1 %v660_v18 }
 0x1de   : > { %765 = vmatpush1.bf16.msra.mxu1 %v659_v19 }
 0x1df   : > { %v615_v21 = vpop.permute.xlu0 %614  ;;  %v629_v24 = vpop.permute.xlu1 %628 }
 0x1e0   : > { %v662_v22 = vsel %vm632_vm7, %v615_v21, %v617_v10 }
 0x1e1   : > { %723 = vmatprep.subr.bf16.mxu0 %v662_v22 }
 0x1e3   : > { %v619_v23 = vpop.permute.xlu0 %618  ;;  %v623_v29 = vpop.permute.xlu1 %622 }
 0x1e4   : > { %v664_v25 = vsel %vm632_vm7, %v619_v23, %v621_v15  ;;  %v663_v26 = vsel %vm632_vm7, %v617_v10, %v619_v23  ;;  %v665_v32 = vsel %vm632_vm7, %v623_v29, %v625_v20 }
 0x1e5   : > { %766 = vmatprep.subr.bf16.mxu1 %v664_v25 }
 0x1e6   : > { %767 = vmatpush1.bf16.msra.mxu1 %v663_v26 }
 0x1e7   : > { %v613_v27 = vpop.permute.xlu0 %612 }
 0x1e8   : > { %v661_v28 = vsel %vm632_vm7, %v613_v27, %v615_v21 }
 0x1e9   : > { %724 = vmatpush1.bf16.msra.mxu0 %v661_v28 }
 0x1eb   : > { %v627_v30 = vpop.permute.xlu0 %626 }
 0x1ec   : > { %v666_v31 = vsel %vm632_vm7, %v625_v20, %v627_v30  ;;  %v667_v36 = vsel %vm632_vm7, %v627_v30, %v629_v24 }
 0x1ed   : > { %725 = vmatprep.subr.bf16.mxu0 %v666_v31 }
 0x1ee   : > { %726 = vmatpush1.bf16.msra.mxu0 %v665_v32 }
 0x1ef   : > { %v631_v34 = vpop.permute.xlu0 %630 }
 0x1f0   : > { %v668_v35 = vsel %vm632_vm7, %v629_v24, %v631_v34 }
 0x1f1   : > { %742 = vmatmul.mubr.bf16.vlgmr.msra.gmra.mrb[0].mxu0 %v1153_v33  ;;  %768 = vmatprep.subr.bf16.mxu1 %v668_v35 }
 0x1f2   : > { %769 = vmatpush1.bf16.msra.mxu1 %v667_v36 }
 0x1f4   : > { %v531_v42 = vpop.permute.xlu1 %530 }
 0x1f5   : > { %785 = vmatmul.mubr.bf16.vlgmr.msra.gmra.mrb[0].mxu1 %v1153_v33 }
 0x200   : > { %v526_v38 = vpop.permute.xlu0 %525 }
 0x2c4   : > { %v743_v41 = vpop.f32.mrb[0].mxu0 }
 0x2c5   : > { %v745_v44 = vpop.f32.mrb[1].mxu0  ;;  %v744_v47 = vadd.f32 %v743_v41, %v526_v38 }
 0x2c6   : > { %v746_v49 = vadd.f32 %v745_v44, %v526_v38  ;;  %v747_v50 = vpop.f32.mrb[2].mxu0 }
 0x2c7   : > { %vm795_vm10 = vcmp.ge.f32.partialorder %v744_v47, 0.0  ;;  %v804_v54 = vmul.f32 %v803_v43, %v744_v47  ;;  %v748_v55 = vadd.f32 %v747_v50, %v531_v42  ;;  %v749_v56 = vpop.f32.mrb[3].mxu0 }
 0x2c8   : > { %vm796_vm11 = vcmp.ge.f32.partialorder %v746_v49, 0.0  ;;  %v805_v58 = vmul.f32 %v803_v43, %v746_v49  ;;  %v750_v59 = vadd.f32 %v749_v56, %v531_v42  ;;  %v786_v60 = vpop.f32.mrb[0].mxu1 }
 0x2c9   : > { %v812_v62 = vsel %vm795_vm10, %v744_v47, %v804_v54  ;;  %vm799_vm12 = vcmp.ge.f32.partialorder %v748_v55, 0.0  ;;  %v808_v63 = vmul.f32 %v803_v43, %v748_v55  ;;  %v787_v0 = vadd.f32 %v786_v60, %v526_v38  ;;  %v788_v1 = vpop.f32.mrb[1].mxu1 }
 0x2ca   : > { %v813_v2 = vsel %vm796_vm11, %v746_v49, %v805_v58  ;;  %v832_v3 = vadd.f32 %v824_v45, %v812_v62  ;;  %vm800_vm13 = vcmp.ge.f32.partialorder %v750_v59, 0.0  ;;  %v809_v4 = vmul.f32 %v803_v43, %v750_v59  ;;  %v790_v5 = vpop.f32.mrb[2].mxu1 }
 0x2cb   : > { %v833_v6 = vadd.f32 %v825_v46, %v813_v2  ;;  %v816_v7 = vsel %vm799_vm12, %v748_v55, %v808_v63  ;;  %vm797_vm14 = vcmp.ge.f32.partialorder %v787_v0, 0.0  ;;  %v806_v8 = vmul.f32 %v803_v43, %v787_v0  ;;  %v792_v9 = vpop.f32.mrb[3].mxu1 }
 0x2cc   : > { %840 = vst [vmem:[%s1818_s17] sm:$0xff] %v832_v3  ;;  %v836_v10 = vadd.f32 %v828_v51, %v816_v7  ;;  %v817_v11 = vsel %vm800_vm13, %v750_v59, %v809_v4  ;;  %v789_v12 = vadd.f32 %v788_v1, %v526_v38  ;;  %v791_v13 = vadd.f32 %v790_v5, %v531_v42 }
 0x2cd   : > { %841 = vst [vmem:[%s1818_s17 + $0x8] sm:$0xff] %v833_v6  ;;  %v837_v14 = vadd.f32 %v829_v52, %v817_v11  ;;  %v814_v15 = vsel %vm797_vm14, %v787_v0, %v806_v8  ;;  %v793_v16 = vadd.f32 %v792_v9, %v531_v42 }
 0x2ce   : > { %844 = vst [vmem:[%s1818_s17 + $0x20] sm:$0xff] %v836_v10  ;;  %v834_v18 = vadd.f32 %v826_v53, %v814_v15  ;;  %vm798_vm15 = vcmp.ge.f32.partialorder %v789_v12, 0.0  ;;  %v807_v19 = vmul.f32 %v803_v43, %v789_v12  ;;  %vm801_vm0 = vcmp.ge.f32.partialorder %v791_v13, 0.0 }
 0x2cf   : > { %845 = vst [vmem:[%s1818_s17 + $0x28] sm:$0xff] %v837_v14  ;;  %v810_v20 = vmul.f32 %v803_v43, %v791_v13  ;;  %vm802_vm1 = vcmp.ge.f32.partialorder %v793_v16, 0.0  ;;  %v811_v21 = vmul.f32 %v803_v43, %v793_v16 }
 0x2d0   : > { %842 = vst [vmem:[%s1818_s17 + $0x10] sm:$0xff] %v834_v18  ;;  %v815_v22 = vsel %vm798_vm15, %v789_v12, %v807_v19 }
 0x2d1   : > { %v835_v23 = vadd.f32 %v827_v57, %v815_v22  ;;  %v818_v24 = vsel %vm801_vm0, %v791_v13, %v810_v20  ;;  %v819_v25 = vsel %vm802_vm1, %v793_v16, %v811_v21 }
 0x2d2   : > { %v838_v26 = vadd.f32 %v830_v61, %v818_v24  ;;  %v839_v27 = vadd.f32 %v831_v17, %v819_v25 }
 0x2d3   : > { %843 = vst [vmem:[%s1818_s17 + $0x18] sm:$0xff] %v835_v23 }
 0x2d4   : > { %846 = vst [vmem:[%s1818_s17 + $0x30] sm:$0xff] %v838_v26  ;;  %847 = vst [vmem:[%s1818_s17 + $0x38] sm:$0xff] %v839_v27 }
 0x2d5   : > { %1285 = shalt.err (!%p1282_p7)
}
 0x2d6   : > { %s1286_s14 = scalar_lea.hbm %s1831_s0, 1024  ;;  %s1290_s12 = scalar_lea.hbm %s1890_s5, 2048 }
 0x2d7   : > { %p1287_p1 = scmp.ne.s32.totalorder %s1831_s0, %s1286_s14  ;;  %p1291_p11 = scmp.lt.u32.totalorder %s1831_s0, %s1890_s5 }
 0x2d8   : > { %p1292_p12 = scmp.lt.u32.totalorder %s1290_s12, %s1286_s14  ;;  %p1294_p8 = scmp.lt.u32.totalorder %s1286_s14, %s1831_s0 }
 0x2d9   : > { %p1288_p3 = pnand %p1287_p1, %p1913_p10 }
 0x2da   : > { %p1293_p9 = por %p1292_p12, %p1291_p11 }
 0x2db   : > { %p1289_p5 = pneg %p1288_p3 }
 0x2dc   : > { %p1295_p2 = por %p1294_p8, %p1293_p9 }
 0x2de   : > { %p1296_p0 = pnand %p1295_p2, %p1289_p5 }
 0x2e0   : > { %1299 = shalt.err (!%p1296_p0)
}
 0x2e1   : > { %s1383_s18 = smov 512   ;;  %s1384_s13 = smov 32  }
 0x2e2   : > { %1046 = dma.vmem_to_hbm [thread:$0]  (%p1913_p10), %s1833_s8, 1024, %s1831_s0, %s849_s23, %s1383_s18, %s1383_s18, %s1384_s13  }
 0x2e3 PF: > { %s880_s17 = sand.u32 1, %s1342_s20   ;;  %p1914_p4 = scmp.ne.s32.totalorder %s1902_s30, 0 }
 0x2e4   : > { %p1915_p13 = scmp.ge.s32.totalorder %s1362_s25, 2  ;;  %s881_s16 = scalar_lea.sflag [#allocation5], %s880_s17 }
 0x2e6   : > { %p1063_p6 = pnand %p1915_p13, %p1914_p4 }
 0x2e8   : > { %1337 = dma.done.wait (!%p1063_p6), %s881_s16, 1024  }
 0x2e9   : > { %1339 = vsyncadd (!%p1063_p6), %s881_s16, 4294966272  ;;  %s26_s25 = sadd.s32 1, %s1362_s25   ;;  %s1916_s20 = smov %s1346_s21 }
 0x2ea   : > { %p23_p7 = scmp.ge.s32.totalorder %s26_s25, 4   ;;  %s1917_s21 = smov %s1350_s22 }
 0x2eb   : > { %s1918_s22 = smov %s1566_s26  ;;  %s1919_s23 = smov %s1358_s24 }
 0x2ec   : > { %s1920_s24 = smov %s1922_s10  ;;  %25 = sbr.rel (!%p23_p7) target bundleno = 14 (0xe), region = 108 }
 0x2f3   :  { %886 = vsyncpa [#allocation4], 1 }
 0x2f4   :  { %888 = vsyncpa [#allocation4 + $0x1], 1 }
 0x2f5   :  { %889 = vsyncpa [#allocation7], 1 }
 0x2f6   :  { %890 = vsyncpa [#allocation10], 1 }
 0x2f7   :  { %892 = vsyncpa [#allocation10 + $0x1], 1 }
 0x2f8   :  { %893 = vsyncpa [#allocation5], 1 }
 0x2f9   :  { %895 = vsyncpa [#allocation5 + $0x1], 1 }

</bundles_post_ra>
